<compile_context>
chip_gen: v5e
topology: v5e:2x2
jax: 0.10.0
libtpu: 0.0.40
codegen_flags: <defaults>
</compile_context>

<pallas_src>
import jax
import jax.numpy as jnp
from jax.experimental import pallas as pl
from jax.experimental.pallas import tpu as pltpu


# ---------------------------------------------------------------------------
# Static layout of the two packed parameter arrays.
# ---------------------------------------------------------------------------
def _layout(B, infeat, hid, outfeat, num_nodes, n_pad=128):
    dims = ((infeat, hid), (hid, hid // 2), (hid // 2, hid // 4), (hid // 4, outfeat))
    w_segs, ro = [], 0
    for fin, fout in dims:
        w_segs.append((ro, B * fin, B * fout))      # (row_off, rows, cols)
        ro += -(-(B * fin) // 16) * 16              # 16-row align (bf16 sublane packing)
    w_rows = -(-ro // 16) * 16
    b_cols = tuple(B * fout for _, fout in dims)
    w_cols = max(b_cols)
    return dict(batch=B, num_nodes=num_nodes, n_pad=n_pad,
                fin0=infeat, dims=dims, fout_last=dims[-1][1],
                w_segs=tuple(w_segs), w_rows=w_rows, w_cols=w_cols,
                b_cols=b_cols, v_rows=8 + n_pad, v_cols=max(w_cols, 8),
                adj_first=tuple(fin < fout for fin, fout in dims))


# ---------------------------------------------------------------------------
# Fused forward kernel (single program, everything in VMEM, 4 inputs total).
# ---------------------------------------------------------------------------
def _make_fused_kernel(meta):
    n_pad = meta["n_pad"]
    w_segs = meta["w_segs"]
    adj_first = meta["adj_first"]

    def kernel(h_ref, adj_ref, w_ref, v_ref, o_ref):
        adj = adj_ref[...]                              # (n_pad, n_pad) bf16
        bias_blk = v_ref[0:8, :]                        # rows 0:4 = biases (f32)
        gb = v_ref[8:8 + n_pad, :]                      # lanes 0:6 = gamma/beta (f32)

        def gcn(h_bf, li):
            ro, rr, cc = w_segs[li]                     # static offsets (multiples of 16)
            w = w_ref[ro:ro + rr, 0:cc]                 # (B*Fin, B*Fout) bf16 blockdiag
            if adj_first[li]:                           # (adj @ h) @ W   (Fin < Fout)
                ah = jnp.dot(adj, h_bf, preferred_element_type=jnp.float32)
                out = jnp.dot(ah.astype(jnp.bfloat16), w,
                              preferred_element_type=jnp.float32)
            else:                                       # adj @ (h @ W)
                hw = jnp.dot(h_bf, w, preferred_element_type=jnp.float32)
                out = jnp.dot(adj, hw.astype(jnp.bfloat16),
                              preferred_element_type=jnp.float32)
            return out + bias_blk[li:li + 1, 0:cc]      # bias tiled over batch, f32

        def bn_relu(y, li):
            # BatchNorm1d(N): per-node stats over (batch, feature) == row-wise
            # over the (unpadded) lane axis.  All math in f32.
            gamma = gb[:, 2 * li:2 * li + 1]            # (n_pad, 1)
            beta = gb[:, 2 * li + 1:2 * li + 2]
            inv_cnt = 1.0 / y.shape[-1]                 # lane axis is NOT padded
            mean = jnp.sum(y, axis=-1, keepdims=True) * inv_cnt
            ex2 = jnp.sum(y * y, axis=-1, keepdims=True) * inv_cnt
            var = jnp.maximum(ex2 - mean * mean, 0.0)   # biased variance
            inv = jax.lax.rsqrt(var + 1e-5)             # EUP path
            y = (y - mean) * (inv * gamma) + beta
            return jnp.maximum(y, 0.0)

        h = bn_relu(gcn(h_ref[...], 0), 0)
        h = bn_relu(gcn(h.astype(jnp.bfloat16), 1), 1)
        h = bn_relu(gcn(h.astype(jnp.bfloat16), 2), 2)
        o_ref[...] = jnp.tanh(gcn(h.astype(jnp.bfloat16), 3)).astype(o_ref.dtype)

    return kernel


# ---------------------------------------------------------------------------
# One-time parameter packing (hoisted out of the per-step forward).
# ---------------------------------------------------------------------------
def _block_diag(w, B):
    """(Fin, Fout) -> (B*Fin, B*Fout) block-diagonal replication of w."""
    fin, fout = w.shape
    z = jnp.zeros((fin, fout), w.dtype)
    rows = []
    for i in range(B):
        rows.append(jnp.concatenate([w if j == i else z for j in range(B)], axis=1))
    return jnp.concatenate(rows, axis=0)


def pack_generator_params(params, meta):
    B, n, n_pad = meta["batch"], meta["num_nodes"], meta["n_pad"]

    # Packed bf16 block-diagonal weights (MXU operands).
    w_packed = jnp.zeros((meta["w_rows"], meta["w_cols"]), jnp.float32)
    for i, (ro, rr, cc) in enumerate(meta["w_segs"], start=1):
        w_packed = w_packed.at[ro:ro + rr, 0:cc].set(_block_diag(params[f"w{i}"], B))
    w_packed = w_packed.astype(jnp.bfloat16)

    # Packed f32 "vector" params: rows 0:4 biases, rows 8:8+n_pad gamma/beta cols.
    v_packed = jnp.zeros((meta["v_rows"], meta["v_cols"]), jnp.float32)
    for i in range(1, 5):
        bt = jnp.tile(params[f"b{i}"], (1, B))          # (1, B*Fout) batch-major lanes
        v_packed = v_packed.at[i - 1, 0:bt.shape[1]].set(bt[0])
    for i in range(1, 4):
        g = jnp.pad(params[f"gamma{i}"].reshape(n), (0, n_pad - n), constant_values=1.0)
        b = jnp.pad(params[f"beta{i}"].reshape(n), (0, n_pad - n))
        v_packed = v_packed.at[8:8 + n_pad, 2 * (i - 1)].set(g)
        v_packed = v_packed.at[8:8 + n_pad, 2 * (i - 1) + 1].set(b)
    return w_packed, v_packed


# ---------------------------------------------------------------------------
# Parameter construction (deterministic, Kipf-style uniform init).
# ---------------------------------------------------------------------------
def init_params(key, infeat, hid, outfeat, num_nodes):
    dims = [(infeat, hid), (hid, hid // 2), (hid // 2, hid // 4), (hid // 4, outfeat)]
    params = {}
    for i, (fin, fout) in enumerate(dims, start=1):
        key, kw, kb = jax.random.split(key, 3)
        stdv = 1.0 / jnp.sqrt(jnp.float32(fout))
        params[f"w{i}"] = jax.random.uniform(kw, (fin, fout), jnp.float32, -stdv, stdv)
        params[f"b{i}"] = jax.random.uniform(kb, (1, fout), jnp.float32, -stdv, stdv)
    for i in range(1, 4):   # BatchNorm1d(num_nodes) affine params: gamma=1, beta=0
        params[f"gamma{i}"] = jnp.ones((num_nodes, 1), jnp.float32)
        params[f"beta{i}"] = jnp.zeros((num_nodes, 1), jnp.float32)
    return params


# ---------------------------------------------------------------------------
# Generator.forward — one fused pallas_call (built once per static config).
# ---------------------------------------------------------------------------
def make_generator_forward(meta):
    kernel = _make_fused_kernel(meta)
    B, n, n_pad = meta["batch"], meta["num_nodes"], meta["n_pad"]
    fin0, fout_last = meta["fin0"], meta["fout_last"]

    # Static advisory cost estimate for XLA's scheduler.
    flops = 0
    for (fin, fout), first in zip(meta["dims"], meta["adj_first"]):
        bi, bo = B * fin, B * fout
        if first:
            flops += 2 * n_pad * n_pad * bi + 2 * n_pad * bi * bo
        else:
            flops += 2 * n_pad * bi * bo + 2 * n_pad * n_pad * bo
    transcendentals = n_pad * B * fout_last + 3 * n_pad
    bytes_accessed = (2 * (n_pad * B * fin0 + n_pad * n_pad)       # bf16 h0 + adj
                      + 2 * meta["w_rows"] * meta["w_cols"]         # bf16 weights
                      + 4 * meta["v_rows"] * meta["v_cols"]         # f32 bias/gamma/beta
                      + 4 * n_pad * B * fout_last)                  # f32 output
    cost = pl.CostEstimate(flops=flops, transcendentals=transcendentals,
                           bytes_accessed=bytes_accessed)
    vmem = pl.BlockSpec(memory_space=pltpu.MemorySpace.VMEM)

    @jax.jit
    def forward(w_packed, v_packed, x, adj, c):
        # torch.cat((x, c), dim=2): (B, N, fin0); then pack batch into lanes.
        h0 = jnp.concatenate([x, c], axis=2)
        h0 = jnp.transpose(h0, (1, 0, 2)).reshape(n, B * fin0)
        # Pad ONLY the node (sublane) axis to 128; cast MXU operands to bf16.
        h0 = jnp.pad(h0, ((0, n_pad - n), (0, 0))).astype(jnp.bfloat16)
        adj_p = jnp.pad(adj, ((0, n_pad - n), (0, n_pad - n))).astype(jnp.bfloat16)

        out = pl.pallas_call(
            kernel,
            out_shape=jax.ShapeDtypeStruct((n_pad, B * fout_last), jnp.float32),
            in_specs=[vmem, vmem, vmem, vmem],
            out_specs=vmem,
            cost_estimate=cost,
        )(h0, adj_p, w_packed, v_packed)

        # (n_pad, B*Fout) -> drop node padding -> (B, N, Fout)
        return out[:n].reshape(n, B, fout_last).transpose(1, 0, 2)

    return forward


if __name__ == "__main__":
    B = 2            # batch
    N = 100          # nodes (fixed by nn.BatchNorm1d(100))
    X_FEAT = 12      # node-feature part of the input
    C_FEAT = 4       # condition-feature part of the input
    INFEAT = X_FEAT + C_FEAT
    HID = 32
    OUTFEAT = 4

    key = jax.random.PRNGKey(0)
    kp, kx, ka, kc = jax.random.split(key, 4)

    params = init_params(kp, INFEAT, HID, OUTFEAT, N)
    meta = _layout(B, INFEAT, HID, OUTFEAT, N)
    w_packed, v_packed = pack_generator_params(params, meta)   # one-time packing
    forward = make_generator_forward(meta)

    x = jax.random.normal(kx, (B, N, X_FEAT), jnp.float32)
    c = jax.random.normal(kc, (B, N, C_FEAT), jnp.float32)
    adj_raw = jax.random.uniform(ka, (N, N), jnp.float32)
    adj = adj_raw / jnp.sum(adj_raw, axis=1, keepdims=True)    # row-normalized, shared

    out = forward(w_packed, v_packed, x, adj, c)
    jax.block_until_ready(out)
    assert out.shape == (B, N, OUTFEAT)
    assert bool(jnp.all(jnp.isfinite(out)))
    assert bool(jnp.all(out <= 1.0)) and bool(jnp.all(out >= -1.0))  # tanh head
    print("KERNEL_OK")
</pallas_src>

<mosaic_0001>
module attributes {stable_mosaic.version = 11 : i64} {
  func.func @kernel(%arg0: memref<128x32xbf16, #tpu.memory_space<vmem>>, %arg1: memref<128x128xbf16, #tpu.memory_space<vmem>>, %arg2: memref<144x64xbf16, #tpu.memory_space<vmem>>, %arg3: memref<136x64xf32, #tpu.memory_space<vmem>>, %arg4: memref<128x8xf32, #tpu.memory_space<vmem>>) attributes {dimension_semantics = [], scalar_prefetch = 0 : i64, scratch_operands = 0 : i64, tpu.core_type = #tpu.core_type<tc>} {
    %c0 = arith.constant 0 : index
    %c0_0 = arith.constant 0 : index
    %0 = vector.load %arg1[%c0, %c0_0] : memref<128x128xbf16, #tpu.memory_space<vmem>>, vector<128x128xbf16>
    %c0_1 = arith.constant 0 : index
    %c0_2 = arith.constant 0 : index
    %1 = vector.load %arg3[%c0_1, %c0_2] : memref<136x64xf32, #tpu.memory_space<vmem>>, vector<8x64xf32>
    %c8 = arith.constant 8 : index
    %c0_3 = arith.constant 0 : index
    %2 = vector.load %arg3[%c8, %c0_3] : memref<136x64xf32, #tpu.memory_space<vmem>>, vector<128x64xf32>
    %c0_4 = arith.constant 0 : index
    %c0_5 = arith.constant 0 : index
    %3 = vector.load %arg0[%c0_4, %c0_5] : memref<128x32xbf16, #tpu.memory_space<vmem>>, vector<128x32xbf16>
    %c0_6 = arith.constant 0 : index
    %c0_7 = arith.constant 0 : index
    %4 = vector.load %arg2[%c0_6, %c0_7] : memref<144x64xbf16, #tpu.memory_space<vmem>>, vector<32x64xbf16>
    %cst = arith.constant dense<0.000000e+00> : vector<128x32xf32>
    %5 = tpu.matmul %0, %3, %cst {dimension_numbers = #tpu.dot_dimension_numbers<[1], [0], [0], [1], [0, 0, 1, 1], [], []>} : vector<128x128xbf16>, vector<128x32xbf16>, vector<128x32xf32> -> vector<128x32xf32>
    %6 = arith.truncf %5 : vector<128x32xf32> to vector<128x32xbf16>
    %cst_8 = arith.constant dense<0.000000e+00> : vector<128x64xf32>
    %7 = tpu.matmul %6, %4, %cst_8 {dimension_numbers = #tpu.dot_dimension_numbers<[1], [0], [0], [1], [0, 0, 1, 1], [], []>} : vector<128x32xbf16>, vector<32x64xbf16>, vector<128x64xf32> -> vector<128x64xf32>
    %8 = vector.extract_strided_slice %1 {offsets = [0, 0], sizes = [1, 64], strides = [1, 1]} : vector<8x64xf32> to vector<1x64xf32>
    %9 = vector.broadcast %8 : vector<1x64xf32> to vector<128x64xf32>
    %10 = arith.addf %7, %9 : vector<128x64xf32>
    %11 = vector.extract_strided_slice %2 {offsets = [0, 0], sizes = [128, 1], strides = [1, 1]} : vector<128x64xf32> to vector<128x1xf32>
    %12 = vector.extract_strided_slice %2 {offsets = [0, 1], sizes = [128, 1], strides = [1, 1]} : vector<128x64xf32> to vector<128x1xf32>
    %cst_9 = arith.constant dense<0.000000e+00> : vector<128xf32>
    %13 = vector.multi_reduction <add>, %10, %cst_9 [1] : vector<128x64xf32> to vector<128xf32>
    %14 = vector.shape_cast %13 : vector<128xf32> to vector<128x1xf32>
    %cst_10 = arith.constant 1.562500e-02 : f32
    %15 = vector.broadcast %cst_10 : f32 to vector<128x1xf32>
    %16 = arith.mulf %14, %15 : vector<128x1xf32>
    %17 = arith.mulf %10, %10 : vector<128x64xf32>
    %cst_11 = arith.constant dense<0.000000e+00> : vector<128xf32>
    %18 = vector.multi_reduction <add>, %17, %cst_11 [1] : vector<128x64xf32> to vector<128xf32>
    %19 = vector.shape_cast %18 : vector<128xf32> to vector<128x1xf32>
    %cst_12 = arith.constant 1.562500e-02 : f32
    %20 = vector.broadcast %cst_12 : f32 to vector<128x1xf32>
    %21 = arith.mulf %19, %20 : vector<128x1xf32>
    %22 = arith.mulf %16, %16 : vector<128x1xf32>
    %23 = arith.subf %21, %22 : vector<128x1xf32>
    %cst_13 = arith.constant 0.000000e+00 : f32
    %24 = vector.broadcast %cst_13 : f32 to vector<128x1xf32>
    %25 = arith.maximumf %23, %24 : vector<128x1xf32>
    %cst_14 = arith.constant 9.99999974E-6 : f32
    %26 = vector.broadcast %cst_14 : f32 to vector<128x1xf32>
    %27 = arith.addf %25, %26 : vector<128x1xf32>
    %28 = math.rsqrt %27 : vector<128x1xf32>
    %29 = vector.broadcast %16 : vector<128x1xf32> to vector<128x64xf32>
    %30 = arith.subf %10, %29 : vector<128x64xf32>
    %31 = arith.mulf %28, %11 : vector<128x1xf32>
    %32 = vector.broadcast %31 : vector<128x1xf32> to vector<128x64xf32>
    %33 = arith.mulf %30, %32 : vector<128x64xf32>
    %34 = vector.broadcast %12 : vector<128x1xf32> to vector<128x64xf32>
    %35 = arith.addf %33, %34 : vector<128x64xf32>
    %cst_15 = arith.constant 0.000000e+00 : f32
    %36 = vector.broadcast %cst_15 : f32 to vector<128x64xf32>
    %37 = arith.maximumf %35, %36 : vector<128x64xf32>
    %38 = arith.truncf %37 : vector<128x64xf32> to vector<128x64xbf16>
    %c32 = arith.constant 32 : index
    %c0_16 = arith.constant 0 : index
    %39 = vector.load %arg2[%c32, %c0_16] : memref<144x64xbf16, #tpu.memory_space<vmem>>, vector<64x32xbf16>
    %cst_17 = arith.constant dense<0.000000e+00> : vector<128x32xf32>
    %40 = tpu.matmul %38, %39, %cst_17 {dimension_numbers = #tpu.dot_dimension_numbers<[1], [0], [0], [1], [0, 0, 1, 1], [], []>} : vector<128x64xbf16>, vector<64x32xbf16>, vector<128x32xf32> -> vector<128x32xf32>
    %41 = arith.truncf %40 : vector<128x32xf32> to vector<128x32xbf16>
    %cst_18 = arith.constant dense<0.000000e+00> : vector<128x32xf32>
    %42 = tpu.matmul %0, %41, %cst_18 {dimension_numbers = #tpu.dot_dimension_numbers<[1], [0], [0], [1], [0, 0, 1, 1], [], []>} : vector<128x128xbf16>, vector<128x32xbf16>, vector<128x32xf32> -> vector<128x32xf32>
    %43 = vector.extract_strided_slice %1 {offsets = [1, 0], sizes = [1, 32], strides = [1, 1]} : vector<8x64xf32> to vector<1x32xf32>
    %44 = vector.broadcast %43 : vector<1x32xf32> to vector<128x32xf32>
    %45 = arith.addf %42, %44 : vector<128x32xf32>
    %46 = vector.extract_strided_slice %2 {offsets = [0, 2], sizes = [128, 1], strides = [1, 1]} : vector<128x64xf32> to vector<128x1xf32>
    %47 = vector.extract_strided_slice %2 {offsets = [0, 3], sizes = [128, 1], strides = [1, 1]} : vector<128x64xf32> to vector<128x1xf32>
    %cst_19 = arith.constant dense<0.000000e+00> : vector<128xf32>
    %48 = vector.multi_reduction <add>, %45, %cst_19 [1] : vector<128x32xf32> to vector<128xf32>
    %49 = vector.shape_cast %48 : vector<128xf32> to vector<128x1xf32>
    %cst_20 = arith.constant 3.125000e-02 : f32
    %50 = vector.broadcast %cst_20 : f32 to vector<128x1xf32>
    %51 = arith.mulf %49, %50 : vector<128x1xf32>
    %52 = arith.mulf %45, %45 : vector<128x32xf32>
    %cst_21 = arith.constant dense<0.000000e+00> : vector<128xf32>
    %53 = vector.multi_reduction <add>, %52, %cst_21 [1] : vector<128x32xf32> to vector<128xf32>
    %54 = vector.shape_cast %53 : vector<128xf32> to vector<128x1xf32>
    %cst_22 = arith.constant 3.125000e-02 : f32
    %55 = vector.broadcast %cst_22 : f32 to vector<128x1xf32>
    %56 = arith.mulf %54, %55 : vector<128x1xf32>
    %57 = arith.mulf %51, %51 : vector<128x1xf32>
    %58 = arith.subf %56, %57 : vector<128x1xf32>
    %cst_23 = arith.constant 0.000000e+00 : f32
    %59 = vector.broadcast %cst_23 : f32 to vector<128x1xf32>
    %60 = arith.maximumf %58, %59 : vector<128x1xf32>
    %cst_24 = arith.constant 9.99999974E-6 : f32
    %61 = vector.broadcast %cst_24 : f32 to vector<128x1xf32>
    %62 = arith.addf %60, %61 : vector<128x1xf32>
    %63 = math.rsqrt %62 : vector<128x1xf32>
    %64 = vector.broadcast %51 : vector<128x1xf32> to vector<128x32xf32>
    %65 = arith.subf %45, %64 : vector<128x32xf32>
    %66 = arith.mulf %63, %46 : vector<128x1xf32>
    %67 = vector.broadcast %66 : vector<128x1xf32> to vector<128x32xf32>
    %68 = arith.mulf %65, %67 : vector<128x32xf32>
    %69 = vector.broadcast %47 : vector<128x1xf32> to vector<128x32xf32>
    %70 = arith.addf %68, %69 : vector<128x32xf32>
    %cst_25 = arith.constant 0.000000e+00 : f32
    %71 = vector.broadcast %cst_25 : f32 to vector<128x32xf32>
    %72 = arith.maximumf %70, %71 : vector<128x32xf32>
    %73 = arith.truncf %72 : vector<128x32xf32> to vector<128x32xbf16>
    %c96 = arith.constant 96 : index
    %c0_26 = arith.constant 0 : index
    %74 = vector.load %arg2[%c96, %c0_26] : memref<144x64xbf16, #tpu.memory_space<vmem>>, vector<32x16xbf16>
    %cst_27 = arith.constant dense<0.000000e+00> : vector<128x16xf32>
    %75 = tpu.matmul %73, %74, %cst_27 {dimension_numbers = #tpu.dot_dimension_numbers<[1], [0], [0], [1], [0, 0, 1, 1], [], []>} : vector<128x32xbf16>, vector<32x16xbf16>, vector<128x16xf32> -> vector<128x16xf32>
    %76 = arith.truncf %75 : vector<128x16xf32> to vector<128x16xbf16>
    %cst_28 = arith.constant dense<0.000000e+00> : vector<128x16xf32>
    %77 = tpu.matmul %0, %76, %cst_28 {dimension_numbers = #tpu.dot_dimension_numbers<[1], [0], [0], [1], [0, 0, 1, 1], [], []>} : vector<128x128xbf16>, vector<128x16xbf16>, vector<128x16xf32> -> vector<128x16xf32>
    %78 = vector.extract_strided_slice %1 {offsets = [2, 0], sizes = [1, 16], strides = [1, 1]} : vector<8x64xf32> to vector<1x16xf32>
    %79 = vector.broadcast %78 : vector<1x16xf32> to vector<128x16xf32>
    %80 = arith.addf %77, %79 : vector<128x16xf32>
    %81 = vector.extract_strided_slice %2 {offsets = [0, 4], sizes = [128, 1], strides = [1, 1]} : vector<128x64xf32> to vector<128x1xf32>
    %82 = vector.extract_strided_slice %2 {offsets = [0, 5], sizes = [128, 1], strides = [1, 1]} : vector<128x64xf32> to vector<128x1xf32>
    %cst_29 = arith.constant dense<0.000000e+00> : vector<128xf32>
    %83 = vector.multi_reduction <add>, %80, %cst_29 [1] : vector<128x16xf32> to vector<128xf32>
    %84 = vector.shape_cast %83 : vector<128xf32> to vector<128x1xf32>
    %cst_30 = arith.constant 6.250000e-02 : f32
    %85 = vector.broadcast %cst_30 : f32 to vector<128x1xf32>
    %86 = arith.mulf %84, %85 : vector<128x1xf32>
    %87 = arith.mulf %80, %80 : vector<128x16xf32>
    %cst_31 = arith.constant dense<0.000000e+00> : vector<128xf32>
    %88 = vector.multi_reduction <add>, %87, %cst_31 [1] : vector<128x16xf32> to vector<128xf32>
    %89 = vector.shape_cast %88 : vector<128xf32> to vector<128x1xf32>
    %cst_32 = arith.constant 6.250000e-02 : f32
    %90 = vector.broadcast %cst_32 : f32 to vector<128x1xf32>
    %91 = arith.mulf %89, %90 : vector<128x1xf32>
    %92 = arith.mulf %86, %86 : vector<128x1xf32>
    %93 = arith.subf %91, %92 : vector<128x1xf32>
    %cst_33 = arith.constant 0.000000e+00 : f32
    %94 = vector.broadcast %cst_33 : f32 to vector<128x1xf32>
    %95 = arith.maximumf %93, %94 : vector<128x1xf32>
    %cst_34 = arith.constant 9.99999974E-6 : f32
    %96 = vector.broadcast %cst_34 : f32 to vector<128x1xf32>
    %97 = arith.addf %95, %96 : vector<128x1xf32>
    %98 = math.rsqrt %97 : vector<128x1xf32>
    %99 = vector.broadcast %86 : vector<128x1xf32> to vector<128x16xf32>
    %100 = arith.subf %80, %99 : vector<128x16xf32>
    %101 = arith.mulf %98, %81 : vector<128x1xf32>
    %102 = vector.broadcast %101 : vector<128x1xf32> to vector<128x16xf32>
    %103 = arith.mulf %100, %102 : vector<128x16xf32>
    %104 = vector.broadcast %82 : vector<128x1xf32> to vector<128x16xf32>
    %105 = arith.addf %103, %104 : vector<128x16xf32>
    %cst_35 = arith.constant 0.000000e+00 : f32
    %106 = vector.broadcast %cst_35 : f32 to vector<128x16xf32>
    %107 = arith.maximumf %105, %106 : vector<128x16xf32>
    %108 = arith.truncf %107 : vector<128x16xf32> to vector<128x16xbf16>
    %c128 = arith.constant 128 : index
    %c0_36 = arith.constant 0 : index
    %109 = vector.load %arg2[%c128, %c0_36] : memref<144x64xbf16, #tpu.memory_space<vmem>>, vector<16x8xbf16>
    %cst_37 = arith.constant dense<0.000000e+00> : vector<128x8xf32>
    %110 = tpu.matmul %108, %109, %cst_37 {dimension_numbers = #tpu.dot_dimension_numbers<[1], [0], [0], [1], [0, 0, 1, 1], [], []>} : vector<128x16xbf16>, vector<16x8xbf16>, vector<128x8xf32> -> vector<128x8xf32>
    %111 = arith.truncf %110 : vector<128x8xf32> to vector<128x8xbf16>
    %cst_38 = arith.constant dense<0.000000e+00> : vector<128x8xf32>
    %112 = tpu.matmul %0, %111, %cst_38 {dimension_numbers = #tpu.dot_dimension_numbers<[1], [0], [0], [1], [0, 0, 1, 1], [], []>} : vector<128x128xbf16>, vector<128x8xbf16>, vector<128x8xf32> -> vector<128x8xf32>
    %113 = vector.extract_strided_slice %1 {offsets = [3, 0], sizes = [1, 8], strides = [1, 1]} : vector<8x64xf32> to vector<1x8xf32>
    %114 = vector.broadcast %113 : vector<1x8xf32> to vector<128x8xf32>
    %115 = arith.addf %112, %114 : vector<128x8xf32>
    %116 = math.tanh %115 : vector<128x8xf32>
    %c0_39 = arith.constant 0 : index
    %c0_40 = arith.constant 0 : index
    %117 = vector.load %arg4[%c0_39, %c0_40] : memref<128x8xf32, #tpu.memory_space<vmem>>, vector<128x8xf32>
    tpu.vector_store %arg4[%c0_39, %c0_40], %116 {strides = array<i32>} : memref<128x8xf32, #tpu.memory_space<vmem>>, vector<128x8xf32>,
    return
  }
}

</mosaic_0001>

<bundles_post_ra>
// kernel: forward.1
= control target key start
LH: loop header
LB: loop body
LE: loop exit
PB: predicated region body
PF: predicated region fallthrough
CT: control target
= control target key end

     0   :  { %vm237_vm0 = vcmask 261120   ;;  %v3019_v26 = vmov 1   ;;  %vm311_vm1 = vcmask 523264   ;;  %s4712_s0 = inlined_call_operand.vmem [shape: bf16[128,32], index: 0, kind: input, shape index: {}]   ;;  %s4713_s1 = inlined_call_operand.vmem [shape: bf16[128,128], index: 1, kind: input, shape index: {}]   ;;  %s4714_s2 = inlined_call_operand.vmem [shape: bf16[144,64], index: 2, kind: input, shape index: {}]   ;;  %s4715_s3 = inlined_call_operand.vmem [shape: f32[136,64], index: 3, kind: input, shape index: {}]   ;;  %s4716_s4 = inlined_call_operand.vmem [shape: f32[128,8], index: 4, kind: output, shape index: {}]  }
   0x1   :  { %v2762_v0 = vld [vmem:[%s4712_s0 + $0x38] sm:$0xff]  ;;  %v2761_v1 = vld [vmem:[%s4712_s0 + $0x30] sm:$0xff]  ;;  %v2760_v2 = vld [vmem:[%s4712_s0 + $0x28] sm:$0xff]  ;;  %2778 = vset.pattern.permute.xlu1 %v3019_v26  ;;  %2780 = vset.pattern.permute.xlu0 %v3019_v26 }
   0x2   :  { %167 = vmatpush.bf16.msra.mxu0 %v2762_v0  ;;  %v2759_v3 = vld [vmem:[%s4712_s0 + $0x20] sm:$0xff]  ;;  %v2758_v4 = vld [vmem:[%s4712_s0 + $0x18] sm:$0xff]  ;;  %v2757_v5 = vld [vmem:[%s4712_s0 + $0x10] sm:$0xff]  ;;  %2779 = vset.pattern.permute.xlu2 %v3019_v26 }
   0x3   :  { %v2756_v6 = vld [vmem:[%s4712_s0 + $0x8] sm:$0xff]  ;;  %v2755_v7 = vld [vmem:[%s4712_s0] sm:$0xff]  ;;  %v2749_v10 = vld [vmem:[%s4713_s1 + $0x10] sm:$0xff] }
   0x4   :  { %v2747_v8 = vld [vmem:[%s4713_s1] sm:$0xff]  ;;  %v2748_v9 = vld [vmem:[%s4713_s1 + $0x8] sm:$0xff]  ;;  %v2750_v11 = vld [vmem:[%s4713_s1 + $0x18] sm:$0xff] }
   0x5   :  { %v2751_v12 = vld [vmem:[%s4713_s1 + $0x20] sm:$0xff]  ;;  %v2752_v13 = vld [vmem:[%s4713_s1 + $0x28] sm:$0xff]  ;;  %v2753_v14 = vld [vmem:[%s4713_s1 + $0x30] sm:$0xff] }
   0x6   :  { %168 = vmatpush.bf16.msra.mxu0 %v2761_v1  ;;  %v2764_v15 = vld [vmem:[%s4714_s2 + $0x8] sm:$0xff]  ;;  %v2763_v16 = vld [vmem:[%s4714_s2] sm:$0xff]  ;;  %v2754_v17 = vld [vmem:[%s4713_s1 + $0x38] sm:$0xff] }
   0x7   :  { %268 = vmatpush.bf16.msra.mxu1 %v2764_v15  ;;  %v3109_v25 = vld [vmem:[%s4715_s3 + $0x8] sm:$0xff]  ;;  %v3119_v29 = vld [vmem:[%s4715_s3 + $0x20] sm:$0xff]  ;;  %v3125_v31 = vld [vmem:[%s4715_s3 + $0x18] sm:$0xff] }
   0x8   :  { %810 = vperm.xlu1 %2778, %v3109_v25   ;;  %820 = vperm.xlu0 %2780, %v3125_v31   ;;  %v3131_v32 = vld [vmem:[%s4715_s3 + $0x30] sm:$0xff]  ;;  %v3137_v35 = vld [vmem:[%s4715_s3 + $0x28] sm:$0xff]  ;;  %v34_v49 = vld [vmem:[%s4715_s3] sm:$0xff] }
   0x9   :  { %v3145_v40 = vld [vmem:[%s4715_s3 + $0x10] sm:$0xff]  ;;  %v3154_v50 = vperm.slane %v34_v49, 0 }
   0xa   :  { %169 = vmatpush.bf16.msra.mxu0 %v2760_v2  ;;  %815 = vperm.xlu2 %2779, %v3145_v40  }
   0xb   :  { %269 = vmatpush.bf16.msra.mxu1 %v2763_v16 }
   0xe   :  { %170 = vmatpush.bf16.msra.mxu0 %v2759_v3 }
  0x10   :  { %825 = vperm.xlu1 %2778, %v3119_v29   ;;  %830 = vperm.xlu0 %2780, %v3137_v35  }
  0x12   :  { %171 = vmatpush.bf16.msra.mxu0 %v2758_v4 }
  0x16   :  { %172 = vmatpush.bf16.msra.mxu0 %v2757_v5 }
  0x18   :  { %835 = vperm.xlu1 %2778, %v3131_v32  }
  0x1a   :  { %173 = vmatpush.bf16.msra.mxu0 %v2756_v6 }
  0x1e   :  { %174 = vmatpush.bf16.msra.mxu0 %v2755_v7 }
  0x21   :  { %175 = vmatmul.bf16.vlgmr.msra.gmra.mxu0 %v2747_v8 }
  0x31   :  { %180 = vmatmul.bf16.gmra.mxu0 %v2748_v9 }
  0x41   :  { %185 = vmatmul.bf16.gmra.mxu0 %v2749_v10 }
  0x51   :  { %190 = vmatmul.bf16.gmra.mxu0 %v2750_v11 }
  0x61   :  { %195 = vmatmul.bf16.gmra.mxu0 %v2751_v12 }
  0x71   :  { %200 = vmatmul.bf16.gmra.mxu0 %v2752_v13 }
  0x81   :  { %205 = vmatmul.bf16.gmra.mxu0 %v2753_v14 }
  0x91   :  { %210 = vmatmul.bf16.gmra.mxu0 %v2754_v17 }
  0x9e   :  { %v176_v18 = vpop.f32.mrf.mxu0 }
  0xa6   :  { %v178_v19 = vpop.f32.mrf.mxu0 }
  0xa7   :  { %v216_v20 = vpack.c.bf16 %v178_v19, %v176_v18 }
  0xa9   :  { %2687 = vmatmul.msk.bf16.vlgmr.msra.gmra.mxu1 %vm237_vm0, %v216_v20 }
  0xae   :  { %v181_v21 = vpop.f32.mrf.mxu0 }
  0xb6   :  { %v183_v22 = vpop.f32.mrf.mxu0 }
  0xb7   :  { %v217_v23 = vpack.c.bf16 %v183_v22, %v181_v21 }
  0xb9   :  { %2688 = vmatmul.msk.bf16.gmra.mxu1 %vm237_vm0, %v217_v23 }
  0xbe   :  { %v186_v24 = vpop.f32.mrf.mxu0 }
  0xc6   :  { %v188_v27 = vpop.f32.mrf.mxu0 }
  0xc7   :  { %v218_v28 = vpack.c.bf16 %v188_v27, %v186_v24 }
  0xc9   :  { %2689 = vmatmul.msk.bf16.gmra.mxu1 %vm237_vm0, %v218_v28 }
  0xce   :  { %v191_v30 = vpop.f32.mrf.mxu0 }
  0xd6   :  { %v193_v33 = vpop.f32.mrf.mxu0 }
  0xd7   :  { %v219_v34 = vpack.c.bf16 %v193_v33, %v191_v30 }
  0xd9   :  { %2690 = vmatmul.msk.bf16.gmra.mxu1 %vm237_vm0, %v219_v34 }
  0xde   :  { %v196_v36 = vpop.f32.mrf.mxu0 }
  0xe6   :  { %v198_v37 = vpop.f32.mrf.mxu0 }
  0xe7   :  { %v220_v38 = vpack.c.bf16 %v198_v37, %v196_v36 }
  0xe9   :  { %2691 = vmatmul.msk.bf16.gmra.mxu1 %vm237_vm0, %v220_v38 }
  0xee   :  { %v201_v39 = vpop.f32.mrf.mxu0 }
  0xf6   :  { %v203_v41 = vpop.f32.mrf.mxu0 }
  0xf7   :  { %v221_v42 = vpack.c.bf16 %v203_v41, %v201_v39 }
  0xf9   :  { %2692 = vmatmul.msk.bf16.gmra.mxu1 %vm237_vm0, %v221_v42 }
  0xfe   :  { %v206_v43 = vpop.f32.mrf.mxu0 }
 0x106   :  { %v208_v44 = vpop.f32.mrf.mxu0 }
 0x107   :  { %v222_v45 = vpack.c.bf16 %v208_v44, %v206_v43 }
 0x109   :  { %2693 = vmatmul.msk.bf16.gmra.mxu1 %vm237_vm0, %v222_v45 }
 0x10e   :  { %v211_v46 = vpop.f32.mrf.mxu0 }
 0x116   :  { %v213_v47 = vpop.f32.mrf.mxu0 }
 0x117   :  { %v223_v48 = vpack.c.bf16 %v213_v47, %v211_v46 }
 0x119   :  { %2694 = vmatmul.msk.bf16.gmra.mxu1 %vm237_vm0, %v223_v48 }
 0x126   :  { %v271_v51 = vpop.f32.mrf.mxu1 }
 0x127   :  { %v3157_v52 = vadd.f32 %v271_v51, %v3154_v50 }
 0x129   :  { %v312_v53 = vsel %vm311_vm1, %v3157_v52, 0.0  ;;  %v376_v54 = vmul.f32 %v3157_v52, %v3157_v52 }
 0x12a   :  { %313 = vadd.xlane.f32.xlu0 %v312_v53 }
 0x12b   :  { %v392_v55 = vsel %vm311_vm1, %v376_v54, 0.0 }
 0x12c   :  { %393 = vadd.xlane.f32.xlu1 %v392_v55  ;;  %v3251_v55 = vpop.permute.xlu1 %810 }
 0x12e   :  { %v273_v56 = vpop.f32.mrf.mxu1 }
 0x12f   :  { %v3165_v57 = vadd.f32 %v273_v56, %v3154_v50 }
 0x131   :  { %v315_v58 = vsel %vm311_vm1, %v3165_v57, 0.0  ;;  %v377_v59 = vmul.f32 %v3165_v57, %v3165_v57 }
 0x132   :  { %316 = vadd.xlane.f32.xlu0 %v315_v58 }
 0x133   :  { %v395_v60 = vsel %vm311_vm1, %v377_v59, 0.0 }
 0x134   :  { %396 = vadd.xlane.f32.xlu1 %v395_v60 }
 0x136   :  { %v276_v61 = vpop.f32.mrf.mxu1 }
 0x137   :  { %v3173_v62 = vadd.f32 %v276_v61, %v3154_v50 }
 0x139   :  { %v318_v63 = vsel %vm311_vm1, %v3173_v62, 0.0  ;;  %v378_v0 = vmul.f32 %v3173_v62, %v3173_v62 }
 0x13a   :  { %319 = vadd.xlane.f32.xlu2 %v318_v63  ;;  %v3261_v63 = vpop.permute.xlu0 %820 }
 0x13b   :  { %v398_v1 = vsel %vm311_vm1, %v378_v0, 0.0 }
 0x13c   :  { %399 = vadd.xlane.f32.xlu0 %v398_v1  ;;  %v3264_v1 = vpop.permute.xlu1 %825 }
 0x13e   :  { %v278_v2 = vpop.f32.mrf.mxu1 }
 0x13f   :  { %v3181_v3 = vadd.f32 %v278_v2, %v3154_v50 }
 0x141   :  { %v321_v4 = vsel %vm311_vm1, %v3181_v3, 0.0  ;;  %v379_v5 = vmul.f32 %v3181_v3, %v3181_v3 }
 0x142   :  { %322 = vadd.xlane.f32.xlu2 %v321_v4 }
 0x143   :  { %v401_v6 = vsel %vm311_vm1, %v379_v5, 0.0 }
 0x144   :  { %402 = vadd.xlane.f32.xlu1 %v401_v6 }
 0x146   :  { %v281_v7 = vpop.f32.mrf.mxu1 }
 0x147   :  { %v3189_v8 = vadd.f32 %v281_v7, %v3154_v50 }
 0x149   :  { %v324_v9 = vsel %vm311_vm1, %v3189_v8, 0.0  ;;  %v380_v10 = vmul.f32 %v3189_v8, %v3189_v8 }
 0x14a   :  { %325 = vadd.xlane.f32.xlu2 %v324_v9  ;;  %v3274_v9 = vpop.permute.xlu0 %830 }
 0x14b   :  { %v404_v11 = vsel %vm311_vm1, %v380_v10, 0.0 }
 0x14c   :  { %405 = vadd.xlane.f32.xlu1 %v404_v11  ;;  %v3276_v11 = vpop.permute.xlu1 %835 }
 0x14e   :  { %v283_v12 = vpop.f32.mrf.mxu1 }
 0x14f   :  { %v3197_v13 = vadd.f32 %v283_v12, %v3154_v50 }
 0x151   :  { %v327_v14 = vsel %vm311_vm1, %v3197_v13, 0.0  ;;  %v381_v15 = vmul.f32 %v3197_v13, %v3197_v13 }
 0x152   :  { %328 = vadd.xlane.f32.xlu0 %v327_v14 }
 0x153   :  { %v407_v16 = vsel %vm311_vm1, %v381_v15, 0.0  ;;  %v3020_v15 = vmov 0  }
 0x154   :  { %408 = vadd.xlane.f32.xlu2 %v407_v16  ;;  %2782 = vset.pattern.permute.xlu0 %v3020_v15 }
 0x155   :  { %2781 = vset.pattern.permute.xlu2 %v3020_v15  ;;  %2783 = vset.pattern.permute.xlu1 %v3020_v15 }
 0x156   :  { %v286_v17 = vpop.f32.mrf.mxu1 }
 0x157   :  { %v3205_v18 = vadd.f32 %v286_v17, %v3154_v50 }
 0x159   :  { %v330_v19 = vsel %vm311_vm1, %v3205_v18, 0.0  ;;  %v382_v20 = vmul.f32 %v3205_v18, %v3205_v18 }
 0x15a   :  { %331 = vadd.xlane.f32.xlu0 %v330_v19 }
 0x15b   :  { %v410_v21 = vsel %vm311_vm1, %v382_v20, 0.0 }
 0x15c   :  { %411 = vadd.xlane.f32.xlu2 %v410_v21 }
 0x15e   :  { %v288_v22 = vpop.f32.mrf.mxu1 }
 0x15f   :  { %v3213_v23 = vadd.f32 %v288_v22, %v3154_v50 }
 0x161   :  { %v333_v24 = vsel %vm311_vm1, %v3213_v23, 0.0  ;;  %v383_v27 = vmul.f32 %v3213_v23, %v3213_v23 }
 0x162   :  { %334 = vadd.xlane.f32.xlu1 %v333_v24 }
 0x163   :  { %v413_v28 = vsel %vm311_vm1, %v383_v27, 0.0  ;;  %v3290_v27 = vpop.permute.xlu2 %815 }
 0x164   :  { %414 = vadd.xlane.f32.xlu0 %v413_v28 }
 0x166   :  { %v291_v30 = vpop.f32.mrf.mxu1 }
 0x167   :  { %v3221_v33 = vadd.f32 %v291_v30, %v3154_v50 }
 0x169   :  { %v336_v34 = vsel %vm311_vm1, %v3221_v33, 0.0  ;;  %v384_v36 = vmul.f32 %v3221_v33, %v3221_v33 }
 0x16a   :  { %337 = vadd.xlane.f32.xlu1 %v336_v34 }
 0x16b   :  { %v416_v37 = vsel %vm311_vm1, %v384_v36, 0.0 }
 0x16c   :  { %417 = vadd.xlane.f32.xlu0 %v416_v37 }
 0x16e   :  { %v293_v38 = vpop.f32.mrf.mxu1 }
 0x16f   :  { %v3229_v39 = vadd.f32 %v293_v38, %v3154_v50 }
 0x171   :  { %v339_v41 = vsel %vm311_vm1, %v3229_v39, 0.0  ;;  %v385_v42 = vmul.f32 %v3229_v39, %v3229_v39 }
 0x172   :  { %340 = vadd.xlane.f32.xlu2 %v339_v41 }
 0x173   :  { %v419_v43 = vsel %vm311_vm1, %v385_v42, 0.0 }
 0x174   :  { %420 = vadd.xlane.f32.xlu1 %v419_v43 }
 0x176   :  { %v296_v44 = vpop.f32.mrf.mxu1 }
 0x177   :  { %v3237_v45 = vadd.f32 %v296_v44, %v3154_v50 }
 0x179   :  { %v342_v46 = vsel %vm311_vm1, %v3237_v45, 0.0  ;;  %v386_v47 = vmul.f32 %v3237_v45, %v3237_v45 }
 0x17a   :  { %343 = vadd.xlane.f32.xlu2 %v342_v46 }
 0x17b   :  { %v422_v48 = vsel %vm311_vm1, %v386_v47, 0.0 }
 0x17c   :  { %423 = vadd.xlane.f32.xlu0 %v422_v48 }
 0x17e   :  { %v298_v49 = vpop.f32.mrf.mxu1 }
 0x17f   :  { %v3245_v51 = vadd.f32 %v298_v49, %v3154_v50 }
 0x181   :  { %v345_v53 = vsel %vm311_vm1, %v3245_v51, 0.0  ;;  %v387_v54 = vmul.f32 %v3245_v51, %v3245_v51 }
 0x182   :  { %346 = vadd.xlane.f32.xlu1 %v345_v53 }
 0x183   :  { %v425_v56 = vsel %vm311_vm1, %v387_v54, 0.0 }
 0x184   :  { %426 = vadd.xlane.f32.xlu2 %v425_v56 }
 0x186   :  { %v301_v58 = vpop.f32.mrf.mxu1 }
 0x187   :  { %v3255_v59 = vadd.f32 %v301_v58, %v3154_v50 }
 0x189   :  { %v348_v60 = vsel %vm311_vm1, %v3255_v59, 0.0  ;;  %v388_v61 = vmul.f32 %v3255_v59, %v3255_v59 }
 0x18b   :  { %v428_v0 = vsel %vm311_vm1, %v388_v61, 0.0 }
 0x18c   :  { %349 = vadd.xlane.f32.xlu2 %v348_v60  ;;  %429 = vadd.xlane.f32.xlu0 %v428_v0 }
 0x18e   :  { %v303_v2 = vpop.f32.mrf.mxu1 }
 0x18f   :  { %v3267_v4 = vadd.f32 %v303_v2, %v3154_v50 }
 0x191   :  { %v351_v5 = vsel %vm311_vm1, %v3267_v4, 0.0  ;;  %v389_v6 = vmul.f32 %v3267_v4, %v3267_v4 }
 0x192   :  { %352 = vadd.xlane.f32.xlu1 %v351_v5 }
 0x193   :  { %v431_v7 = vsel %vm311_vm1, %v389_v6, 0.0 }
 0x194   :  { %432 = vadd.xlane.f32.xlu2 %v431_v7 }
 0x196   :  { %v306_v10 = vpop.f32.mrf.mxu1 }
 0x197   :  { %v3279_v12 = vadd.f32 %v306_v10, %v3154_v50 }
 0x199   :  { %v354_v14 = vsel %vm311_vm1, %v3279_v12, 0.0 }
 0x19c   :  { %355 = vadd.xlane.f32.xlu2 %v354_v14 }
 0x19d   :  { %v314_v16 = vpop.xlane.xlu0 %313 }
 0x19e   :  { %v3286_v17 = vmul.f32 0.015625, %v314_v16 }
 0x19f   :  { %v394_v19 = vpop.xlane.xlu1 %393 }
 0x1a0   :  { %v456_v20 = vmul.f32 %v3286_v17, %v3286_v17  ;;  %v440_v21 = vmul.f32 0.015625, %v394_v19 }
 0x1a2   :  { %v472_v22 = vsub.f32 %v440_v21, %v456_v20 }
 0x1a4   :  { %v488_v24 = vmax.f32 %v472_v22, 0.0 }
 0x1a5   :  { %v317_v28 = vpop.xlane.xlu0 %316 }
 0x1a6   :  { %v504_v30 = vadd.f32 1e-05, %v488_v24  ;;  %v3292_v34 = vmul.f32 0.015625, %v317_v28 }
 0x1a7   :  { %v397_v36 = vpop.xlane.xlu1 %396 }
 0x1a8   :  { %2832 = vrsqrt.f32 %v504_v30  ;;  %v457_v37 = vmul.f32 %v3292_v34, %v3292_v34  ;;  %v441_v38 = vmul.f32 0.015625, %v397_v36  ;;  %vm526_vm3 = vweird.f32 %v504_v30 }
 0x1aa   :  { %v473_v41 = vsub.f32 %v441_v38, %v457_v37 }
 0x1ac   :  { %v489_v42 = vmax.f32 %v473_v41, 0.0 }
 0x1ad   :  { %v320_v43 = vpop.xlane.xlu2 %319 }
 0x1ae   :  { %v2833_v44 = vpop.eup %2832  ;;  %v505_v46 = vadd.f32 1e-05, %v489_v42  ;;  %v3296_v47 = vmul.f32 0.015625, %v320_v43 }
 0x1af   :  { %v521_v48 = vmul.f32 %v2833_v44, %v504_v30  ;;  %v400_v49 = vpop.xlane.xlu0 %399  ;;  %vm527_vm2 = vweird.f32 %v2833_v44 }
 0x1b0   :  { %2834 = vrsqrt.f32 %v505_v46  ;;  %v458_v53 = vmul.f32 %v3296_v47, %v3296_v47  ;;  %v442_v54 = vmul.f32 0.015625, %v400_v49  ;;  %vm528_vm4 = vmor %vm526_vm3, %vm527_vm2  ;;  %vm536_vm6 = vweird.f32 %v505_v46 }
 0x1b1   :  { %v522_v56 = vmul.f32 %v2833_v44, %v521_v48 }
 0x1b2   :  { %v474_v58 = vsub.f32 %v442_v54, %v458_v53 }
 0x1b3   :  { %v523_v60 = vmul.f32 0.5, %v522_v56 }
 0x1b4   :  { %v490_v61 = vmax.f32 %v474_v58, 0.0 }
 0x1b5   :  { %v323_v0 = vpop.xlane.xlu2 %322  ;;  %v524_v2 = vsub.f32 1.5, %v523_v60 }
 0x1b6   :  { %v2835_v5 = vpop.eup %2834  ;;  %v506_v6 = vadd.f32 1e-05, %v490_v61  ;;  %v3300_v7 = vmul.f32 0.015625, %v323_v0 }
 0x1b7   :  { %v531_v10 = vmul.f32 %v2835_v5, %v505_v46  ;;  %v403_v14 = vpop.xlane.xlu1 %402  ;;  %v525_v16 = vmul.f32 %v2833_v44, %v524_v2  ;;  %vm537_vm5 = vweird.f32 %v2835_v5 }
 0x1b8   :  { %2836 = vrsqrt.f32 %v506_v6  ;;  %v459_v19 = vmul.f32 %v3300_v7, %v3300_v7  ;;  %v443_v20 = vmul.f32 0.015625, %v403_v14  ;;  %vm538_vm7 = vmor %vm536_vm6, %vm537_vm5  ;;  %vm546_vm9 = vweird.f32 %v506_v6 }
 0x1b9   :  { %v532_v21 = vmul.f32 %v2835_v5, %v531_v10  ;;  %v529_v22 = vsel %vm528_vm4, %v2833_v44, %v525_v16 }
 0x1ba   :  { %v475_v24 = vsub.f32 %v443_v20, %v459_v19  ;;  %v696_v28 = vmul.f32 %v529_v22, %v3109_v25 }
 0x1bb   :  { %v533_v36 = vmul.f32 0.5, %v532_v21 }
 0x1bc   :  { %v491_v37 = vmax.f32 %v475_v24, 0.0  ;;  %714 = vperm.xlu2 %2781, %v696_v28  }
 0x1bd   :  { %v326_v38 = vpop.xlane.xlu2 %325  ;;  %v534_v41 = vsub.f32 1.5, %v533_v36 }
 0x1be   :  { %v2837_v42 = vpop.eup %2836  ;;  %v507_v43 = vadd.f32 1e-05, %v491_v37  ;;  %v3305_v30 = vmul.f32 0.015625, %v326_v38 }
 0x1bf   :  { %v541_v48 = vmul.f32 %v2837_v42, %v506_v6  ;;  %v406_v49 = vpop.xlane.xlu1 %405  ;;  %v535_v53 = vmul.f32 %v2835_v5, %v534_v41  ;;  %vm547_vm8 = vweird.f32 %v2837_v42 }
 0x1c0   :  { %2838 = vrsqrt.f32 %v507_v43  ;;  %v460_v44 = vmul.f32 %v3305_v30, %v3305_v30  ;;  %v444_v54 = vmul.f32 0.015625, %v406_v49  ;;  %vm548_vm10 = vmor %vm546_vm9, %vm547_vm8  ;;  %vm556_vm12 = vweird.f32 %v507_v43 }
 0x1c1   :  { %v542_v25 = vmul.f32 %v2837_v42, %v541_v48  ;;  %v539_v56 = vsel %vm538_vm7, %v2835_v5, %v535_v53 }
 0x1c2   :  { %v476_v58 = vsub.f32 %v444_v54, %v460_v44  ;;  %v697_v60 = vmul.f32 %v539_v56, %v3145_v40 }
 0x1c3   :  { %v543_v61 = vmul.f32 0.5, %v542_v25 }
 0x1c4   :  { %v492_v0 = vmax.f32 %v476_v58, 0.0  ;;  %719 = vperm.xlu0 %2782, %v697_v60  }
 0x1c5   :  { %v544_v2 = vsub.f32 1.5, %v543_v61  ;;  %v329_v10 = vpop.xlane.xlu0 %328 }
 0x1c6   :  { %v2839_v14 = vpop.eup %2838  ;;  %v508_v16 = vadd.f32 1e-05, %v492_v0  ;;  %v3310_v46 = vmul.f32 0.015625, %v329_v10 }
 0x1c7   :  { %v551_v19 = vmul.f32 %v2839_v14, %v507_v43  ;;  %v409_v20 = vpop.xlane.xlu2 %408  ;;  %v545_v21 = vmul.f32 %v2837_v42, %v544_v2  ;;  %vm557_vm11 = vweird.f32 %v2839_v14 }
 0x1c8   :  { %2840 = vrsqrt.f32 %v508_v16  ;;  %v461_v5 = vmul.f32 %v3310_v46, %v3310_v46  ;;  %v445_v22 = vmul.f32 0.015625, %v409_v20  ;;  %vm558_vm13 = vmor %vm556_vm12, %vm557_vm11  ;;  %vm566_vm15 = vweird.f32 %v508_v16 }
 0x1c9   :  { %v552_v40 = vmul.f32 %v2839_v14, %v551_v19  ;;  %v549_v24 = vsel %vm548_vm10, %v2837_v42, %v545_v21 }
 0x1ca   :  { %v477_v28 = vsub.f32 %v445_v22, %v461_v5  ;;  %v698_v36 = vmul.f32 %v549_v24, %v3125_v31 }
 0x1cb   :  { %v553_v37 = vmul.f32 0.5, %v552_v40 }
 0x1cc   :  { %v493_v38 = vmax.f32 %v477_v28, 0.0  ;;  %724 = vperm.xlu1 %2783, %v698_v36   ;;  %2784 = vset.pattern.permute.xlu0 %v3019_v26  ;;  %v390_v36 = vmul.f32 %v3279_v12, %v3279_v12 }
 0x1cd   :  { %v554_v6 = vsub.f32 1.5, %v553_v37  ;;  %v332_v24 = vpop.xlane.xlu0 %331 }
 0x1ce   :  { %v2841_v41 = vpop.eup %2840  ;;  %v509_v48 = vadd.f32 1e-05, %v493_v38  ;;  %v3325_v38 = vmul.f32 0.015625, %v332_v24 }
 0x1cf   :  { %v561_v49 = vmul.f32 %v2841_v41, %v508_v16  ;;  %v555_v53 = vmul.f32 %v2839_v14, %v554_v6  ;;  %vm567_vm14 = vweird.f32 %v2841_v41  ;;  %v412_v19 = vpop.xlane.xlu2 %411 }
 0x1d0   :  { %2842 = vrsqrt.f32 %v509_v48  ;;  %vm568_vm2 = vmor %vm566_vm15, %vm567_vm14  ;;  %vm576_vm4 = vweird.f32 %v509_v48 }
 0x1d1   :  { %v562_v44 = vmul.f32 %v2841_v41, %v561_v49  ;;  %v559_v54 = vsel %vm558_vm13, %v2839_v14, %v555_v53 }
 0x1d2   :  { %v699_v42 = vmul.f32 %v559_v54, %v3119_v29 }
 0x1d3   :  { %v563_v25 = vmul.f32 0.5, %v562_v44 }
 0x1d4   :  { %729 = vperm.xlu2 %2781, %v699_v42  }
 0x1d5   :  { %v335_v31 = vpop.xlane.xlu1 %334  ;;  %v564_v56 = vsub.f32 1.5, %v563_v25 }
 0x1d6   :  { %v2843_v58 = vpop.eup %2842  ;;  %v3330_v53 = vmul.f32 0.015625, %v335_v31 }
 0x1d7   :  { %v571_v60 = vmul.f32 %v2843_v58, %v509_v48  ;;  %v565_v61 = vmul.f32 %v2841_v41, %v564_v56  ;;  %vm577_vm3 = vweird.f32 %v2843_v58  ;;  %v434_v48 = vsel %vm311_vm1, %v390_v36, 0.0  ;;  %v415_v44 = vpop.xlane.xlu0 %414 }
 0x1d8   :  { %vm578_vm5 = vmor %vm576_vm4, %vm577_vm3  ;;  %v463_v42 = vmul.f32 %v3330_v53, %v3330_v53  ;;  %v447_v25 = vmul.f32 0.015625, %v415_v44  ;;  %v3364_v44 = vld [vmem:[%s4715_s3 + $0x50] sm:$0xff] }
 0x1d9   :  { %v572_v0 = vmul.f32 %v2843_v58, %v571_v60  ;;  %v569_v2 = vsel %vm568_vm2, %v2841_v41, %v565_v61  ;;  %v446_v41 = vmul.f32 0.015625, %v412_v19 }
 0x1da   :  { %v700_v43 = vmul.f32 %v569_v2, %v3137_v35  ;;  %v479_v60 = vsub.f32 %v447_v25, %v463_v42 }
 0x1db   :  { %v573_v10 = vmul.f32 0.5, %v572_v0 }
 0x1dc   :  { %734 = vperm.xlu1 %2783, %v700_v43   ;;  %v495_v31 = vmax.f32 %v479_v60, 0.0 }
 0x1dd   :  { %v574_v14 = vsub.f32 1.5, %v573_v10  ;;  %v338_v29 = vpop.xlane.xlu1 %337 }
 0x1de   :  { %v3336_v43 = vmul.f32 0.015625, %v338_v29 }
 0x1df   :  { %v575_v20 = vmul.f32 %v2843_v58, %v574_v14  ;;  %v418_v0 = vpop.xlane.xlu0 %417 }
 0x1e0   :  { %v464_v14 = vmul.f32 %v3336_v43, %v3336_v43 }
 0x1e1   :  { %v579_v21 = vsel %vm578_vm5, %v2843_v58, %v575_v20  ;;  %v448_v20 = vmul.f32 0.015625, %v418_v0 }
 0x1e2   :  { %v701_v5 = vmul.f32 %v579_v21, %v3131_v32  ;;  %v462_v32 = vmul.f32 %v3325_v38, %v3325_v38 }
 0x1e3   :  { %v480_v24 = vsub.f32 %v448_v20, %v464_v14 }
 0x1e4   :  { %739 = vperm.xlu2 %2781, %v701_v5   ;;  %v478_v54 = vsub.f32 %v446_v41, %v462_v32  ;;  %v308_v5 = vpop.f32.mrf.mxu1 }
 0x1e5   :  { %v341_v22 = vpop.xlane.xlu2 %340  ;;  %v3344_v29 = vadd.f32 %v308_v5, %v3154_v50 }
 0x1e6   :  { %v3319_v16 = vmul.f32 0.015625, %v341_v22  ;;  %v494_v56 = vmax.f32 %v478_v54, 0.0 }
 0x1e7   :  { %v421_v40 = vpop.xlane.xlu1 %420  ;;  %v357_v50 = vsel %vm311_vm1, %v3344_v29, 0.0  ;;  %v391_v60 = vmul.f32 %v3344_v29, %v3344_v29 }
 0x1e8   :  { %v465_v35 = vmul.f32 %v3319_v16, %v3319_v16  ;;  %v449_v28 = vmul.f32 0.015625, %v421_v40  ;;  %v3334_v2 = vadd.f32 1e-05, %v494_v56  ;;  %v3341_v40 = vadd.f32 1e-05, %v495_v31 }
 0x1e9   :  { %v437_v20 = vsel %vm311_vm1, %v391_v60, 0.0  ;;  %v3401_v60 = vld [vmem:[%s4715_s3 + $0x58] sm:$0xff] }
 0x1ea   :  { %v481_v37 = vsub.f32 %v449_v28, %v465_v35  ;;  %v3349_v35 = vld [vmem:[%s4715_s3 + $0x38] sm:$0xff]  ;;  %vm586_vm9 = vweird.f32 %v3334_v2  ;;  %vm596_vm12 = vweird.f32 %v3341_v40 }
 0x1ec   :  { %v497_v6 = vmax.f32 %v481_v37, 0.0 }
 0x1ed   :  { %v344_v19 = vpop.xlane.xlu2 %343 }
 0x1ee   :  { %v513_v49 = vadd.f32 1e-05, %v497_v6  ;;  %435 = vadd.xlane.f32.xlu0 %v434_v48  ;;  %v496_v6 = vmax.f32 %v480_v24, 0.0  ;;  %v3355_v41 = vmul.f32 0.015625, %v344_v19 }
 0x1ef   :  { %v424_v32 = vpop.xlane.xlu0 %423 }
 0x1f0   :  { %2844 = vrsqrt.f32 %v513_v49  ;;  %vm616_vm6 = vweird.f32 %v513_v49  ;;  %v3366_v42 = vadd.f32 1e-05, %v496_v6  ;;  %v466_v25 = vmul.f32 %v3355_v41, %v3355_v41 }
 0x1f1   :  { %2846 = vrsqrt.f32 %v3334_v2  ;;  %v450_v56 = vmul.f32 0.015625, %v424_v32 }
 0x1f2   :  { %2848 = vrsqrt.f32 %v3341_v40  ;;  %vm606_vm15 = vweird.f32 %v3366_v42 }
 0x1f3   :  { %2850 = vrsqrt.f32 %v3366_v42 }
 0x1f6   :  { %v2845_v58 = vpop.eup %2844 }
 0x1f7   :  { %v611_v61 = vmul.f32 %v2845_v58, %v513_v49  ;;  %vm617_vm7 = vweird.f32 %v2845_v58  ;;  %v427_v28 = vpop.xlane.xlu2 %426  ;;  %v3352_v37 = vpop.eup %2846 }
 0x1f8   :  { %vm618_vm8 = vmor %vm616_vm6, %vm617_vm7  ;;  %v581_v48 = vmul.f32 %v3352_v37, %v3334_v2  ;;  %v347_v49 = vpop.xlane.xlu1 %346  ;;  %v451_v5 = vmul.f32 0.015625, %v427_v28  ;;  %v2767_v28 = vld [vmem:[%s4714_s2 + $0x20] sm:$0xff]  ;;  %vm587_vm10 = vweird.f32 %v3352_v37  ;;  %v2766_v2 = vld [vmem:[%s4714_s2 + $0x18] sm:$0xff] }
 0x1f9   :  { %v612_v10 = vmul.f32 %v2845_v58, %v611_v61  ;;  %v3372_v61 = vpop.eup %2848  ;;  %v3374_v0 = vmul.f32 0.015625, %v347_v49  ;;  %vm3415_vm11 = vmor %vm586_vm9, %vm587_vm10 }
 0x1fa   :  { %v582_v19 = vmul.f32 %v3352_v37, %v581_v48  ;;  %v591_v31 = vmul.f32 %v3372_v61, %v3341_v40  ;;  %v3389_v32 = vpop.eup %2850  ;;  %vm597_vm13 = vweird.f32 %v3372_v61 }
 0x1fb   :  { %v613_v21 = vmul.f32 0.5, %v612_v10  ;;  %vm598_vm14 = vmor %vm596_vm12, %vm597_vm13  ;;  %vm607_vm2 = vweird.f32 %v3389_v32 }
 0x1fc   :  { %v592_v6 = vmul.f32 %v3372_v61, %v591_v31  ;;  %vm608_vm3 = vmor %vm606_vm15, %vm607_vm2 }
 0x1fd   :  { %v614_v22 = vsub.f32 1.5, %v613_v21  ;;  %v467_v21 = vmul.f32 %v3374_v0, %v3374_v0 }
 0x1ff   :  { %v615_v36 = vmul.f32 %v2845_v58, %v614_v22  ;;  %v350_v14 = vpop.xlane.xlu2 %349  ;;  %v583_v22 = vmul.f32 0.5, %v582_v19  ;;  %v430_v49 = vpop.xlane.xlu0 %429  ;;  %v601_v19 = vmul.f32 %v3389_v32, %v3366_v42 }
 0x201   :  { %v619_v54 = vsel %vm618_vm8, %v2845_v58, %v615_v36  ;;  %v482_v58 = vsub.f32 %v450_v56, %v466_v25  ;;  %v2768_v36 = vld [vmem:[%s4714_s2 + $0x28] sm:$0xff]  ;;  %v3393_v56 = vmul.f32 0.015625, %v350_v14 }
 0x202   :  { %840 = vperm.xlu0 %2784, %v3349_v35   ;;  %v705_v10 = vmul.f32 %v619_v54, %v3364_v44  ;;  %988 = vmatpush.bf16.msra.mxu2 %v2768_v36  ;;  %v584_v54 = vsub.f32 1.5, %v583_v22  ;;  %v602_v36 = vmul.f32 %v3389_v32, %v601_v19  ;;  %v42_v22 = vld [vmem:[%s4715_s3 + $0x40] sm:$0xff] }
 0x203   :  { %v498_v24 = vmax.f32 %v482_v58, 0.0  ;;  %v468_v31 = vmul.f32 %v3393_v56, %v3393_v56 }
 0x204   :  { %v603_v19 = vmul.f32 0.5, %v602_v36 }
 0x205   :  { %v353_v48 = vpop.xlane.xlu1 %352  ;;  %v3391_v25 = vadd.f32 1e-05, %v498_v24 }
 0x206   :  { %358 = vadd.xlane.f32.xlu1 %v357_v50  ;;  %v483_v50 = vsub.f32 %v451_v5, %v467_v21  ;;  %v3411_v14 = vmul.f32 0.015625, %v353_v48  ;;  %989 = vmatpush.bf16.msra.mxu2 %v2767_v28  ;;  %v585_v5 = vmul.f32 %v3352_v37, %v584_v54  ;;  %v2765_v28 = vld [vmem:[%s4714_s2 + $0x10] sm:$0xff] }
 0x207   :  { %v433_v21 = vpop.xlane.xlu2 %432  ;;  %2852 = vrsqrt.f32 %v3391_v25  ;;  %vm626_vm4 = vweird.f32 %v3391_v25 }
 0x208   :  { %v499_v58 = vmax.f32 %v483_v50, 0.0  ;;  %v469_v50 = vmul.f32 %v3411_v14, %v3411_v14  ;;  %v453_v48 = vmul.f32 0.015625, %v433_v21  ;;  %v589_v54 = vsel %vm3415_vm11, %v3352_v37, %v585_v5 }
 0x209   :  { %v604_v21 = vsub.f32 1.5, %v603_v19  ;;  %v43_v19 = vld [vmem:[%s4715_s3 + $0x48] sm:$0xff] }
 0x20a   :  { %2786 = vset.pattern.permute.xlu0 %v3020_v15  ;;  %990 = vmatpush.bf16.msra.mxu2 %v2766_v2  ;;  %v485_v37 = vsub.f32 %v453_v48, %v469_v50 }
 0x20b   :  { %759 = vperm.xlu0 %2786, %v705_v10   ;;  %v593_v10 = vmul.f32 0.5, %v592_v6  ;;  %v3423_v6 = vadd.f32 1e-05, %v499_v58 }
 0x20d   :  { %438 = vadd.xlane.f32.xlu2 %v437_v20  ;;  %v452_v20 = vmul.f32 0.015625, %v430_v49  ;;  %v594_v24 = vsub.f32 1.5, %v593_v10  ;;  %v3438_v10 = vld [vmem:[%s4715_s3 + $0x70] sm:$0xff]  ;;  %v3442_v40 = vpop.eup %2852  ;;  %2854 = vrsqrt.f32 %v3423_v6  ;;  %vm636_vm7 = vweird.f32 %v3423_v6 }
 0x20e   :  { %991 = vmatpush.bf16.msra.mxu2 %v2765_v28  ;;  %v621_v5 = vmul.f32 %v3442_v40, %v3391_v25  ;;  %vm627_vm5 = vweird.f32 %v3442_v40 }
 0x20f   :  { %v484_v49 = vsub.f32 %v452_v20, %v468_v31  ;;  %v595_v58 = vmul.f32 %v3372_v61, %v594_v24  ;;  %v702_v20 = vmul.f32 %v589_v54, %v3349_v35  ;;  %v501_v24 = vmax.f32 %v485_v37, 0.0  ;;  %v3465_v28 = vpop.xlane.xlu2 %355  ;;  %vm3485_vm6 = vmor %vm626_vm4, %vm627_vm5 }
 0x210   :  { %v622_v48 = vmul.f32 %v3442_v40, %v621_v5 }
 0x211   :  { %v500_v31 = vmax.f32 %v484_v49, 0.0  ;;  %v599_v2 = vsel %vm598_vm14, %v3372_v61, %v595_v58  ;;  %v605_v49 = vmul.f32 %v3389_v32, %v604_v21  ;;  %v3460_v54 = vadd.f32 1e-05, %v501_v24 }
 0x212   :  { %v703_v50 = vmul.f32 %v599_v2, %v42_v22  ;;  %v623_v42 = vmul.f32 0.5, %v622_v48 }
 0x213   :  { %2790 = vset.pattern.permute.xlu0 %v3019_v26  ;;  %v3452_v36 = vadd.f32 1e-05, %v500_v31  ;;  %v3456_v35 = vpop.eup %2854  ;;  %v609_v58 = vsel %vm608_vm3, %v3389_v32, %v605_v49  ;;  %vm656_vm13 = vweird.f32 %v3460_v54 }
 0x214   :  { %860 = vperm.xlu0 %2790, %v3401_v60   ;;  %v631_v61 = vmul.f32 %v3456_v35, %v3423_v6  ;;  %v624_v21 = vsub.f32 1.5, %v623_v42  ;;  %vm637_vm8 = vweird.f32 %v3456_v35 }
 0x215   :  { %2856 = vrsqrt.f32 %v3452_v36  ;;  %vm3505_vm9 = vmor %vm636_vm7, %vm637_vm8  ;;  %vm646_vm10 = vweird.f32 %v3452_v36 }
 0x216   :  { %2858 = vrsqrt.f32 %v3460_v54  ;;  %v632_v37 = vmul.f32 %v3456_v35, %v631_v61  ;;  %v625_v24 = vmul.f32 %v3442_v40, %v624_v21 }
 0x217   :  { %v715_v32 = vpop.permute.xlu2 %714 }
 0x218   :  { %v633_v5 = vmul.f32 0.5, %v632_v37 }
 0x21a   :  { %v634_v61 = vsub.f32 1.5, %v633_v5 }
 0x21b   :  { %v3474_v31 = vpop.eup %2856 }
 0x21c   :  { %875 = vperm.xlu0 %2790, %v3438_v10   ;;  %v3480_v2 = vpop.eup %2858  ;;  %vm647_vm11 = vweird.f32 %v3474_v31 }
 0x21d   :  { %v651_v25 = vmul.f32 %v3480_v2, %v3460_v54  ;;  %vm648_vm12 = vmor %vm646_vm10, %vm647_vm11  ;;  %vm657_vm14 = vweird.f32 %v3480_v2 }
 0x21e   :  { %vm658_vm15 = vmor %vm656_vm13, %vm657_vm14 }
 0x21f   :  { %744 = vperm.xlu1 %2783, %v702_v20   ;;  %v704_v20 = vmul.f32 %v609_v58, %v43_v19 }
 0x225   :  { %749 = vperm.xlu2 %2781, %v703_v50   ;;  %v680_v50 = vsub.f32 %v3157_v52, %v3286_v17  ;;  %v681_v52 = vsub.f32 %v3165_v57, %v3292_v34  ;;  %v652_v17 = vmul.f32 %v3480_v2, %v651_v25  ;;  %v683_v57 = vsub.f32 %v3181_v3, %v3300_v7 }
 0x226   :  { %v682_v3 = vsub.f32 %v3173_v62, %v3296_v47  ;;  %v47_v47 = vld [vmem:[%s4715_s3 + $0x68] sm:$0xff] }
 0x227   :  { %2785 = vset.pattern.permute.xlu1 %v3019_v26  ;;  %v792_v42 = vmul.f32 %v715_v32, %v680_v50 }
 0x228   :  { %845 = vperm.xlu1 %2785, %v42_v22   ;;  %v641_v22 = vmul.f32 %v3474_v31, %v3452_v36 }
 0x229   :  { %v888_v21 = vadd.f32 %v3251_v55, %v792_v42  ;;  %v46_v55 = vld [vmem:[%s4715_s3 + $0x60] sm:$0xff] }
 0x22a   :  { %v642_v49 = vmul.f32 %v3474_v31, %v641_v22 }
 0x22c   :  { %v643_v58 = vmul.f32 0.5, %v642_v49 }
 0x22d   :  { %754 = vperm.xlu2 %2781, %v704_v20   ;;  %v635_v20 = vmul.f32 %v3456_v35, %v634_v61 }
 0x22e   :  { %v730_v22 = vpop.permute.xlu2 %729  ;;  %v644_v32 = vsub.f32 1.5, %v643_v58 }
 0x22f   :  { %v795_v50 = vmul.f32 %v730_v22, %v683_v57 }
 0x230   :  { %850 = vperm.xlu1 %2785, %v43_v19   ;;  %v629_v19 = vsel %vm3485_vm6, %v3442_v40, %v625_v24  ;;  %v904_v24 = vmax.f32 %v888_v21, 0.0  ;;  %v645_v49 = vmul.f32 %v3474_v31, %v644_v32 }
 0x231   :  { %v706_v6 = vmul.f32 %v629_v19, %v3401_v60  ;;  %v639_v60 = vsel %vm3505_vm9, %v3456_v35, %v635_v20  ;;  %v891_v35 = vadd.f32 %v3264_v1, %v795_v50  ;;  %v685_v20 = vsub.f32 %v3197_v13, %v3310_v46 }
 0x232   :  { %v649_v1 = vsel %vm648_vm12, %v3474_v31, %v645_v49 }
 0x233   :  { %v907_v19 = vmax.f32 %v891_v35, 0.0  ;;  %v50_v35 = vld [vmem:[%s4715_s3 + $0x80] sm:$0xff] }
 0x235   :  { %2787 = vset.pattern.permute.xlu2 %v3019_v26 }
 0x236   :  { %v720_v37 = vpop.permute.xlu0 %719  ;;  %855 = vperm.xlu2 %2787, %v3364_v44   ;;  %v653_v44 = vmul.f32 0.5, %v652_v17  ;;  %v708_v17 = vmul.f32 %v649_v1, %v47_v47 }
 0x237   :  { %v793_v40 = vmul.f32 %v720_v37, %v681_v52 }
 0x238   :  { %2788 = vset.pattern.permute.xlu1 %v3020_v15  ;;  %v654_v61 = vsub.f32 1.5, %v653_v44 }
 0x239   :  { %v889_v34 = vadd.f32 %v3290_v27, %v793_v40  ;;  %764 = vperm.xlu1 %2788, %v706_v6   ;;  %v707_v27 = vmul.f32 %v639_v60, %v46_v55  ;;  %v684_v40 = vsub.f32 %v3189_v8, %v3305_v30  ;;  %v3553_v8 = vmul.f32 0.015625, %v3465_v28 }
 0x23a   :  { %v655_v36 = vmul.f32 %v3480_v2, %v654_v61 }
 0x23b   :  { %v905_v48 = vmax.f32 %v889_v34, 0.0 }
 0x23c   :  { %v659_v58 = vsel %vm658_vm15, %v3480_v2, %v655_v36 }
 0x23d   :  { %v920_v7 = vpack.c.bf16 %v905_v48, %v904_v24  ;;  %v709_v31 = vmul.f32 %v659_v58, %v3438_v10 }
 0x23e   :  { %v725_v25 = vpop.permute.xlu1 %724  ;;  %2789 = vset.pattern.permute.xlu2 %v3020_v15  ;;  %v740_v37 = vpop.permute.xlu2 %739 }
 0x23f   :  { %v794_v42 = vmul.f32 %v725_v25, %v682_v3  ;;  %769 = vperm.xlu2 %2789, %v707_v27   ;;  %2711 = vmatmul.msk.bf16.vlgmr.msra.gmra.mxu2 %vm311_vm1, %v920_v7  ;;  %v797_v21 = vmul.f32 %v740_v37, %v685_v20 }
 0x241   :  { %v890_v62 = vadd.f32 %v3261_v63, %v794_v42  ;;  %2791 = vset.pattern.permute.xlu1 %v3019_v26  ;;  %v49_v63 = vld [vmem:[%s4715_s3 + $0x78] sm:$0xff]  ;;  %v893_v6 = vadd.f32 %v3276_v11, %v797_v21  ;;  %v470_v11 = vmul.f32 %v3553_v8, %v3553_v8 }
 0x242   :  { %865 = vperm.xlu1 %2791, %v46_v55   ;;  %880 = vperm.xlu0 %2790, %v49_v63  }
 0x243   :  { %v906_v52 = vmax.f32 %v890_v62, 0.0  ;;  %v909_v46 = vmax.f32 %v893_v6, 0.0 }
 0x245   :  { %v921_v54 = vpack.c.bf16 %v907_v19, %v906_v52 }
 0x247   :  { %774 = vperm.xlu2 %2789, %v708_v17  }
 0x24a   :  { %2792 = vset.pattern.permute.xlu1 %v3020_v15 }
 0x24b   :  { %779 = vperm.xlu1 %2792, %v709_v31  }
 0x24e   :  { %v735_v2 = vpop.permute.xlu1 %734 }
 0x24f   :  { %v796_v5 = vmul.f32 %v735_v2, %v684_v40  ;;  %2712 = vmatmul.msk.bf16.gmra.mxu2 %vm311_vm1, %v921_v54  ;;  %2793 = vset.pattern.permute.xlu2 %v3019_v26  ;;  %v686_v54 = vsub.f32 %v3205_v18, %v3325_v38  ;;  %v689_v18 = vsub.f32 %v3229_v39, %v3319_v16 }
 0x250   :  { %870 = vperm.xlu2 %2793, %v47_v47   ;;  %v690_v16 = vsub.f32 %v3237_v45, %v3355_v41  ;;  %v693_v41 = vsub.f32 %v3267_v4, %v3411_v14 }
 0x251   :  { %v892_v13 = vadd.f32 %v3274_v9, %v796_v5 }
 0x253   :  { %v908_v10 = vmax.f32 %v892_v13, 0.0 }
 0x255   :  { %v922_v22 = vpack.c.bf16 %v909_v46, %v908_v10 }
 0x258   :  { %2794 = vset.pattern.permute.xlu2 %v3020_v15 }
 0x25f   :  { %2713 = vmatmul.msk.bf16.gmra.mxu2 %vm311_vm1, %v922_v22 }
 0x261   :  { %v436_v30 = vpop.xlane.xlu0 %435 }
 0x262   :  { %v454_v57 = vmul.f32 0.015625, %v436_v30 }
 0x264   :  { %v486_v34 = vsub.f32 %v454_v57, %v470_v11 }
 0x266   :  { %v502_v44 = vmax.f32 %v486_v34, 0.0 }
 0x268   :  { %v518_v32 = vadd.f32 1e-05, %v502_v44 }
 0x26a   :  { %2860 = vrsqrt.f32 %v518_v32  ;;  %vm666_vm3 = vweird.f32 %v518_v32 }
 0x270   :  { %v2861_v9 = vpop.eup %2860 }
 0x271   :  { %v661_v55 = vmul.f32 %v2861_v9, %v518_v32  ;;  %vm667_vm2 = vweird.f32 %v2861_v9 }
 0x272   :  { %vm668_vm4 = vmor %vm666_vm3, %vm667_vm2 }
 0x273   :  { %v662_v60 = vmul.f32 %v2861_v9, %v661_v55 }
 0x274   :  { %v841_v52 = vpop.permute.xlu0 %840 }
 0x275   :  { %v663_v24 = vmul.f32 0.5, %v662_v60 }
 0x277   :  { %v664_v50 = vsub.f32 1.5, %v663_v24 }
 0x279   :  { %v665_v15 = vmul.f32 %v2861_v9, %v664_v50  ;;  %v359_v48 = vpop.xlane.xlu1 %358 }
 0x27a   :  { %v3557_v27 = vmul.f32 0.015625, %v359_v48 }
 0x27b   :  { %v669_v28 = vsel %vm668_vm4, %v2861_v9, %v665_v15 }
 0x27c   :  { %v710_v3 = vmul.f32 %v669_v28, %v49_v63  ;;  %v471_v25 = vmul.f32 %v3557_v27, %v3557_v27  ;;  %v695_v4 = vsub.f32 %v3344_v29, %v3557_v27 }
 0x27d   :  { %v760_v46 = vpop.permute.xlu0 %759 }
 0x27e   :  { %784 = vperm.xlu1 %2792, %v710_v3   ;;  %v801_v30 = vmul.f32 %v760_v46, %v689_v18 }
 0x280   :  { %v439_v7 = vpop.xlane.xlu2 %438 }
 0x281   :  { %v455_v49 = vmul.f32 0.015625, %v439_v7 }
 0x283   :  { %v487_v61 = vsub.f32 %v455_v49, %v471_v25 }
 0x285   :  { %v503_v42 = vmax.f32 %v487_v61, 0.0  ;;  %v692_v61 = vsub.f32 %v3255_v59, %v3393_v56  ;;  %v694_v59 = vsub.f32 %v3279_v12, %v3553_v8 }
 0x286   :  { %2795 = vset.pattern.permute.xlu1 %v3019_v26  ;;  %v687_v26 = vsub.f32 %v3213_v23, %v3330_v53  ;;  %v688_v23 = vsub.f32 %v3221_v33, %v3336_v43  ;;  %v861_v50 = vpop.permute.xlu0 %860  ;;  %v691_v33 = vsub.f32 %v3245_v51, %v3374_v0 }
 0x287   :  { %v519_v62 = vadd.f32 1e-05, %v503_v42  ;;  %885 = vperm.xlu1 %2795, %v50_v35  }
 0x288   :  { %v750_v47 = vpop.permute.xlu2 %749 }
 0x289   :  { %2862 = vrsqrt.f32 %v519_v62  ;;  %vm676_vm6 = vweird.f32 %v519_v62  ;;  %v799_v21 = vmul.f32 %v750_v47, %v687_v26 }
 0x28e   :  { %v876_v51 = vpop.permute.xlu0 %875 }
 0x28f   :  { %v2863_v1 = vpop.eup %2862 }
 0x290   :  { %v671_v36 = vmul.f32 %v2863_v1, %v519_v62  ;;  %v755_v58 = vpop.permute.xlu2 %754  ;;  %vm677_vm5 = vweird.f32 %v2863_v1 }
 0x291   :  { %v745_v19 = vpop.permute.xlu1 %744  ;;  %vm678_vm7 = vmor %vm676_vm6, %vm677_vm5  ;;  %v800_v11 = vmul.f32 %v755_v58, %v688_v23 }
 0x292   :  { %v672_v17 = vmul.f32 %v2863_v1, %v671_v36  ;;  %v798_v37 = vmul.f32 %v745_v19, %v686_v54 }
 0x294   :  { %v673_v63 = vmul.f32 0.5, %v672_v17  ;;  %v894_v40 = vadd.f32 %v841_v52, %v798_v37 }
 0x296   :  { %v674_v20 = vsub.f32 1.5, %v673_v63  ;;  %v910_v38 = vmax.f32 %v894_v40, 0.0 }
 0x298   :  { %v675_v31 = vmul.f32 %v2863_v1, %v674_v20  ;;  %v856_v10 = vpop.permute.xlu2 %855 }
 0x299   :  { %v897_v57 = vadd.f32 %v856_v10, %v801_v30 }
 0x29a   :  { %v846_v2 = vpop.permute.xlu1 %845  ;;  %v679_v6 = vsel %vm678_vm7, %v2863_v1, %v675_v31 }
 0x29b   :  { %v895_v5 = vadd.f32 %v846_v2, %v799_v21  ;;  %v711_v13 = vmul.f32 %v679_v6, %v50_v35  ;;  %v913_v32 = vmax.f32 %v897_v57, 0.0 }
 0x29d   :  { %v911_v22 = vmax.f32 %v895_v5, 0.0  ;;  %789 = vperm.xlu2 %2794, %v711_v13  }
 0x29f   :  { %v923_v53 = vpack.c.bf16 %v911_v22, %v910_v38 }
 0x2a0   :  { %v770_v55 = vpop.permute.xlu2 %769 }
 0x2a1   :  { %2714 = vmatmul.msk.bf16.gmra.mxu2 %vm311_vm1, %v923_v53  ;;  %v803_v15 = vmul.f32 %v770_v55, %v691_v33  ;;  %v2960_v55 = vld [vmem:[%s4713_s1] sm:$0xff]  ;;  %v3617_v33 = vld [vmem:[%s4715_s3 + $0x28] sm:$0xff] }
 0x2a2   :  { %v851_v34 = vpop.permute.xlu1 %850 }
 0x2a3   :  { %v896_v44 = vadd.f32 %v851_v34, %v800_v11 }
 0x2a5   :  { %v912_v9 = vmax.f32 %v896_v44, 0.0 }
 0x2a7   :  { %v924_v60 = vpack.c.bf16 %v913_v32, %v912_v9 }
 0x2a8   :  { %v775_v43 = vpop.permute.xlu2 %774 }
 0x2a9   :  { %v804_v45 = vmul.f32 %v775_v43, %v692_v61  ;;  %v3623_v43 = vld [vmem:[%s4715_s3 + $0x20] sm:$0xff] }
 0x2aa   :  { %v2974_v61 = vld [vmem:[%s4715_s3] sm:$0xff] }
 0x2ab   :  { %v765_v39 = vpop.permute.xlu1 %764 }
 0x2ac   :  { %v802_v24 = vmul.f32 %v765_v39, %v690_v16  ;;  %v2962_v39 = vld [vmem:[%s4713_s1 + $0x10] sm:$0xff]  ;;  %v3021_v16 = vmov 3  }
 0x2ad   :  { %2797 = vset.pattern.permute.xlu2 %v3021_v16  ;;  %2796 = vset.pattern.permute.xlu0 %v3021_v16 }
 0x2ae   :  { %v898_v48 = vadd.f32 %v861_v50, %v802_v24  ;;  %v3604_v24 = vld [vmem:[%s4715_s3 + $0x10] sm:$0xff]  ;;  %v3610_v50 = vld [vmem:[%s4715_s3 + $0x8] sm:$0xff]  ;;  %2798 = vset.pattern.permute.xlu1 %v3021_v16 }
 0x2af   :  { %1592 = vperm.xlu2 %2797, %v3604_v24   ;;  %1588 = vperm.xlu0 %2796, %v3610_v50  }
 0x2b0   :  { %v914_v7 = vmax.f32 %v898_v48, 0.0  ;;  %v871_v35 = vpop.permute.xlu2 %870  ;;  %1604 = vperm.xlu1 %2798, %v3617_v33   ;;  %v2968_v48 = vld [vmem:[%s4713_s1 + $0x18] sm:$0xff] }
 0x2b1   :  { %2715 = vmatmul.msk.bf16.gmra.mxu2 %vm311_vm1, %v924_v60  ;;  %v900_v0 = vadd.f32 %v871_v35, %v804_v45  ;;  %v2961_v60 = vld [vmem:[%s4713_s1 + $0x8] sm:$0xff]  ;;  %v3656_v35 = vperm.slane %v2974_v61, 1 }
 0x2b3   :  { %v916_v1 = vmax.f32 %v900_v0, 0.0 }
 0x2b4   :  { %v866_v28 = vpop.permute.xlu1 %865  ;;  %v881_v14 = vpop.permute.xlu0 %880 }
 0x2b5   :  { %v899_v3 = vadd.f32 %v866_v28, %v803_v15  ;;  %v3629_v15 = vld [vmem:[%s4715_s3 + $0x18] sm:$0xff]  ;;  %v3638_v28 = vld [vmem:[%s4715_s3 + $0x30] sm:$0xff] }
 0x2b7   :  { %v915_v25 = vmax.f32 %v899_v3, 0.0  ;;  %1600 = vperm.xlu2 %2797, %v3623_v43   ;;  %1596 = vperm.xlu0 %2796, %v3629_v15   ;;  %v2970_v3 = vld [vmem:[%s4713_s1 + $0x20] sm:$0xff] }
 0x2b9   :  { %v925_v49 = vpack.c.bf16 %v915_v25, %v914_v7  ;;  %v2971_v7 = vld [vmem:[%s4713_s1 + $0x28] sm:$0xff]  ;;  %v2972_v25 = vld [vmem:[%s4713_s1 + $0x30] sm:$0xff] }
 0x2bd   :  { %v780_v42 = vpop.permute.xlu1 %779 }
 0x2be   :  { %v805_v62 = vmul.f32 %v780_v42, %v693_v41 }
 0x2bf   :  { %1608 = vperm.xlu2 %2797, %v3638_v28  }
 0x2c0   :  { %v901_v47 = vadd.f32 %v876_v51, %v805_v62 }
 0x2c1   :  { %2716 = vmatmul.msk.bf16.gmra.mxu2 %vm311_vm1, %v925_v49  ;;  %v2973_v49 = vld [vmem:[%s4713_s1 + $0x38] sm:$0xff] }
 0x2c2   :  { %v917_v36 = vmax.f32 %v901_v47, 0.0  ;;  %v993_v20 = vpop.f32.mrf.mxu2 }
 0x2c4   :  { %v926_v19 = vpack.c.bf16 %v917_v36, %v916_v1 }
 0x2ca   :  { %v995_v40 = vpop.f32.mrf.mxu2 }
 0x2cb   :  { %v1033_v9 = vpack.c.bf16 %v995_v40, %v993_v20 }
 0x2d1   :  { %2717 = vmatmul.msk.bf16.gmra.mxu2 %vm311_vm1, %v926_v19 }
 0x2d2   :  { %v998_v2 = vpop.f32.mrf.mxu2 }
 0x2da   :  { %v1000_v6 = vpop.f32.mrf.mxu2 }
 0x2db   :  { %v1034_v32 = vpack.c.bf16 %v1000_v6, %v998_v2 }
 0x2e2   :  { %v1003_v12 = vpop.f32.mrf.mxu2 }
 0x2ea   :  { %v1005_v8 = vpop.f32.mrf.mxu2 }
 0x2eb   :  { %v1035_v44 = vpack.c.bf16 %v1005_v8, %v1003_v12 }
 0x2f0   :  { %v785_v52 = vpop.permute.xlu1 %784 }
 0x2f1   :  { %v806_v56 = vmul.f32 %v785_v52, %v694_v59 }
 0x2f3   :  { %v902_v54 = vadd.f32 %v881_v14, %v806_v56 }
 0x2f5   :  { %v918_v26 = vmax.f32 %v902_v54, 0.0 }
 0x2f7   :  { %v790_v17 = vpop.permute.xlu2 %789 }
 0x2f8   :  { %v807_v58 = vmul.f32 %v790_v17, %v695_v4 }
 0x2f9   :  { %v886_v63 = vpop.permute.xlu1 %885 }
 0x2fa   :  { %v903_v37 = vadd.f32 %v886_v63, %v807_v58 }
 0x2fc   :  { %v919_v31 = vmax.f32 %v903_v37, 0.0 }
 0x2fe   :  { %v927_v21 = vpack.c.bf16 %v919_v31, %v918_v26 }
 0x300   :  { %2718 = vmatmul.msk.bf16.gmra.mxu2 %vm311_vm1, %v927_v21 }
 0x324   :  { %v1008_v5 = vpop.f32.mrf.mxu2 }
 0x32c   :  { %v1010_v13 = vpop.f32.mrf.mxu2 }
 0x32d   :  { %v1036_v34 = vpack.c.bf16 %v1010_v13, %v1008_v5 }
 0x334   :  { %v1013_v29 = vpop.f32.mrf.mxu2 }
 0x33c   :  { %v1015_v27 = vpop.f32.mrf.mxu2 }
 0x33d   :  { %v1037_v57 = vpack.c.bf16 %v1015_v27, %v1013_v29 }
 0x344   :  { %v1018_v46 = vpop.f32.mrf.mxu2 }
 0x34c   :  { %v1020_v18 = vpop.f32.mrf.mxu2 }
 0x34d   :  { %v1038_v11 = vpack.c.bf16 %v1020_v18, %v1018_v46 }
 0x354   :  { %v1023_v38 = vpop.f32.mrf.mxu2 }
 0x35c   :  { %v1025_v10 = vpop.f32.mrf.mxu2 }
 0x35d   :  { %v1039_v53 = vpack.c.bf16 %v1025_v10, %v1023_v38 }
 0x383   :  { %v1028_v22 = vpop.f32.mrf.mxu2 }
 0x38b   :  { %v1030_v30 = vpop.f32.mrf.mxu2 }
 0x38c   :  { %v1040_v23 = vpack.c.bf16 %v1030_v30, %v1028_v22 }
 0x38e   :  { %1042 = vmatpush.bf16.msra.mxu3 %v1040_v23 }
 0x392   :  { %1043 = vmatpush.bf16.msra.mxu3 %v1039_v53 }
 0x396   :  { %1044 = vmatpush.bf16.msra.mxu3 %v1038_v11 }
 0x39a   :  { %1045 = vmatpush.bf16.msra.mxu3 %v1037_v57 }
 0x39e   :  { %1046 = vmatpush.bf16.msra.mxu3 %v1036_v34 }
 0x3a2   :  { %1047 = vmatpush.bf16.msra.mxu3 %v1035_v44 }
 0x3a6   :  { %1048 = vmatpush.bf16.msra.mxu3 %v1034_v32 }
 0x3aa   :  { %1049 = vmatpush.bf16.msra.mxu3 %v1033_v9 }
 0x3ad   :  { %1050 = vmatmul.bf16.vlgmr.msra.gmra.mxu3 %v2960_v55 }
 0x3bd   :  { %1055 = vmatmul.bf16.gmra.mxu3 %v2961_v60 }
 0x3cd   :  { %1060 = vmatmul.bf16.gmra.mxu3 %v2962_v39 }
 0x3dd   :  { %1065 = vmatmul.bf16.gmra.mxu3 %v2968_v48 }
 0x3ed   :  { %1070 = vmatmul.bf16.gmra.mxu3 %v2970_v3 }
 0x3fd   :  { %1075 = vmatmul.bf16.gmra.mxu3 %v2971_v7 }
 0x40d   :  { %1080 = vmatmul.bf16.gmra.mxu3 %v2972_v25 }
 0x41d   :  { %1085 = vmatmul.bf16.gmra.mxu3 %v2973_v49 }
 0x430   :  { %v1051_v45 = vpop.f32.mrf.mxu3 }
 0x431   :  { %v3659_v41 = vadd.f32 %v1051_v45, %v3656_v35  ;;  %v3748_v45 = vpop.permute.xlu2 %1592 }
 0x433   :  { %v1091_v42 = vsel %vm237_vm0, %v3659_v41, 0.0  ;;  %v1155_v51 = vmul.f32 %v3659_v41, %v3659_v41 }
 0x434   :  { %1092 = vadd.xlane.f32.xlu2 %v1091_v42 }
 0x435   :  { %v1171_v0 = vsel %vm237_vm0, %v1155_v51, 0.0 }
 0x436   :  { %1172 = vadd.xlane.f32.xlu1 %v1171_v0 }
 0x438   :  { %v1053_v62 = vpop.f32.mrf.mxu3 }
 0x439   :  { %v3667_v47 = vadd.f32 %v1053_v62, %v3656_v35 }
 0x43b   :  { %v1094_v1 = vsel %vm237_vm0, %v3667_v47, 0.0  ;;  %v1156_v36 = vmul.f32 %v3667_v47, %v3667_v47 }
 0x43c   :  { %1095 = vadd.xlane.f32.xlu0 %v1094_v1 }
 0x43d   :  { %v1174_v19 = vsel %vm237_vm0, %v1156_v36, 0.0 }
 0x43e   :  { %1175 = vadd.xlane.f32.xlu2 %v1174_v19 }
 0x440   :  { %v1056_v52 = vpop.f32.mrf.mxu3 }
 0x441   :  { %v3675_v59 = vadd.f32 %v1056_v52, %v3656_v35  ;;  %v3761_v52 = vpop.permute.xlu2 %1600 }
 0x443   :  { %v1097_v56 = vsel %vm237_vm0, %v3675_v59, 0.0  ;;  %v1157_v4 = vmul.f32 %v3675_v59, %v3675_v59 }
 0x444   :  { %1098 = vadd.xlane.f32.xlu0 %v1097_v56 }
 0x445   :  { %v1177_v14 = vsel %vm237_vm0, %v1157_v4, 0.0 }
 0x446   :  { %1178 = vadd.xlane.f32.xlu2 %v1177_v14 }
 0x448   :  { %v1058_v17 = vpop.f32.mrf.mxu3 }
 0x449   :  { %v3683_v54 = vadd.f32 %v1058_v17, %v3656_v35 }
 0x44b   :  { %v1100_v58 = vsel %vm237_vm0, %v3683_v54, 0.0  ;;  %v1158_v63 = vmul.f32 %v3683_v54, %v3683_v54 }
 0x44c   :  { %1101 = vadd.xlane.f32.xlu1 %v1100_v58  ;;  %v3770_v58 = vpop.permute.xlu0 %1588 }
 0x44d   :  { %v1180_v37 = vsel %vm237_vm0, %v1158_v63, 0.0 }
 0x44e   :  { %1181 = vadd.xlane.f32.xlu0 %v1180_v37  ;;  %v3773_v37 = vpop.permute.xlu2 %1608 }
 0x450   :  { %v1061_v20 = vpop.f32.mrf.mxu3 }
 0x451   :  { %v3691_v26 = vadd.f32 %v1061_v20, %v3656_v35 }
 0x453   :  { %v1103_v31 = vsel %vm237_vm0, %v3691_v26, 0.0  ;;  %v1159_v21 = vmul.f32 %v3691_v26, %v3691_v26 }
 0x454   :  { %1104 = vadd.xlane.f32.xlu1 %v1103_v31  ;;  %v3775_v31 = vpop.permute.xlu1 %1604 }
 0x455   :  { %v1183_v40 = vsel %vm237_vm0, %v1159_v21, 0.0 }
 0x456   :  { %1184 = vadd.xlane.f32.xlu0 %v1183_v40 }
 0x458   :  { %v1063_v2 = vpop.f32.mrf.mxu3 }
 0x459   :  { %v3699_v6 = vadd.f32 %v1063_v2, %v3656_v35 }
 0x45b   :  { %v1106_v12 = vsel %vm237_vm0, %v3699_v6, 0.0  ;;  %v1160_v8 = vmul.f32 %v3699_v6, %v3699_v6 }
 0x45c   :  { %1107 = vadd.xlane.f32.xlu2 %v1106_v12  ;;  %v4717_v12 = vmov 2  }
 0x45d   :  { %v1186_v5 = vsel %vm237_vm0, %v1160_v8, 0.0  ;;  %2800 = vset.pattern.permute.xlu2 %v4717_v12  ;;  %v3785_v8 = vpop.permute.xlu0 %1596  ;;  %2799 = vset.pattern.permute.xlu1 %v4717_v12 }
 0x45e   :  { %1187 = vadd.xlane.f32.xlu1 %v1186_v5  ;;  %2801 = vset.pattern.permute.xlu0 %v4717_v12 }
 0x460   :  { %v1066_v13 = vpop.f32.mrf.mxu3 }
 0x461   :  { %v3707_v29 = vadd.f32 %v1066_v13, %v3656_v35 }
 0x463   :  { %v1109_v27 = vsel %vm237_vm0, %v3707_v29, 0.0  ;;  %v1161_v46 = vmul.f32 %v3707_v29, %v3707_v29 }
 0x464   :  { %1110 = vadd.xlane.f32.xlu2 %v1109_v27 }
 0x465   :  { %v1189_v18 = vsel %vm237_vm0, %v1161_v46, 0.0 }
 0x466   :  { %1190 = vadd.xlane.f32.xlu1 %v1189_v18 }
 0x468   :  { %v1068_v38 = vpop.f32.mrf.mxu3 }
 0x469   :  { %v3715_v10 = vadd.f32 %v1068_v38, %v3656_v35 }
 0x46b   :  { %v1112_v22 = vsel %vm237_vm0, %v3715_v10, 0.0  ;;  %v1162_v30 = vmul.f32 %v3715_v10, %v3715_v10 }
 0x46c   :  { %1113 = vadd.xlane.f32.xlu0 %v1112_v22 }
 0x46d   :  { %v1192_v23 = vsel %vm237_vm0, %v1162_v30, 0.0 }
 0x46e   :  { %1193 = vadd.xlane.f32.xlu2 %v1192_v23 }
 0x470   :  { %v1071_v53 = vpop.f32.mrf.mxu3 }
 0x471   :  { %v3723_v11 = vadd.f32 %v1071_v53, %v3656_v35 }
 0x473   :  { %v1115_v57 = vsel %vm237_vm0, %v3723_v11, 0.0  ;;  %v1163_v34 = vmul.f32 %v3723_v11, %v3723_v11 }
 0x474   :  { %1116 = vadd.xlane.f32.xlu0 %v1115_v57 }
 0x475   :  { %v1195_v44 = vsel %vm237_vm0, %v1163_v34, 0.0 }
 0x476   :  { %1196 = vadd.xlane.f32.xlu2 %v1195_v44 }
 0x478   :  { %v1073_v32 = vpop.f32.mrf.mxu3 }
 0x479   :  { %v3731_v9 = vadd.f32 %v1073_v32, %v3656_v35 }
 0x47b   :  { %v1118_v55 = vsel %vm237_vm0, %v3731_v9, 0.0  ;;  %v1164_v48 = vmul.f32 %v3731_v9, %v3731_v9 }
 0x47c   :  { %1119 = vadd.xlane.f32.xlu1 %v1118_v55 }
 0x47d   :  { %v1198_v7 = vsel %vm237_vm0, %v1164_v48, 0.0 }
 0x47e   :  { %1199 = vadd.xlane.f32.xlu0 %v1198_v7 }
 0x480   :  { %v1076_v60 = vpop.f32.mrf.mxu3 }
 0x481   :  { %v3736_v39 = vadd.f32 %v1076_v60, %v3656_v35 }
 0x483   :  { %v1121_v3 = vsel %vm237_vm0, %v3736_v39, 0.0  ;;  %v1165_v61 = vmul.f32 %v3736_v39, %v3736_v39 }
 0x484   :  { %1122 = vadd.xlane.f32.xlu1 %v1121_v3 }
 0x485   :  { %v1201_v0 = vsel %vm237_vm0, %v1165_v61, 0.0 }
 0x486   :  { %1202 = vadd.xlane.f32.xlu0 %v1201_v0 }
 0x488   :  { %v1078_v25 = vpop.f32.mrf.mxu3 }
 0x489   :  { %v3744_v49 = vadd.f32 %v1078_v25, %v3656_v35 }
 0x48b   :  { %v1124_v42 = vsel %vm237_vm0, %v3744_v49, 0.0  ;;  %v1166_v51 = vmul.f32 %v3744_v49, %v3744_v49 }
 0x48c   :  { %1125 = vadd.xlane.f32.xlu2 %v1124_v42 }
 0x48d   :  { %v1204_v62 = vsel %vm237_vm0, %v1166_v51, 0.0 }
 0x48e   :  { %1205 = vadd.xlane.f32.xlu1 %v1204_v62 }
 0x490   :  { %v1081_v1 = vpop.f32.mrf.mxu3 }
 0x491   :  { %v3757_v36 = vadd.f32 %v1081_v1, %v3656_v35 }
 0x493   :  { %v1127_v19 = vsel %vm237_vm0, %v3757_v36, 0.0  ;;  %v1167_v2 = vmul.f32 %v3757_v36, %v3757_v36 }
 0x495   :  { %v1207_v13 = vsel %vm237_vm0, %v1167_v2, 0.0 }
 0x496   :  { %1128 = vadd.xlane.f32.xlu1 %v1127_v19  ;;  %1208 = vadd.xlane.f32.xlu0 %v1207_v13 }
 0x498   :  { %v1083_v56 = vpop.f32.mrf.mxu3 }
 0x499   :  { %v3764_v4 = vadd.f32 %v1083_v56, %v3656_v35 }
 0x49b   :  { %v1130_v14 = vsel %vm237_vm0, %v3764_v4, 0.0  ;;  %v1168_v17 = vmul.f32 %v3764_v4, %v3764_v4 }
 0x49c   :  { %1131 = vadd.xlane.f32.xlu2 %v1130_v14 }
 0x49d   :  { %v1210_v63 = vsel %vm237_vm0, %v1168_v17, 0.0 }
 0x49e   :  { %1211 = vadd.xlane.f32.xlu1 %v1210_v63 }
 0x4a0   :  { %v1086_v20 = vpop.f32.mrf.mxu3 }
 0x4a1   :  { %v3778_v21 = vadd.f32 %v1086_v20, %v3656_v35 }
 0x4a3   :  { %v1133_v40 = vsel %vm237_vm0, %v3778_v21, 0.0 }
 0x4a6   :  { %1134 = vadd.xlane.f32.xlu1 %v1133_v40 }
 0x4a7   :  { %v1093_v5 = vpop.xlane.xlu2 %1092 }
 0x4a8   :  { %v3790_v27 = vmul.f32 0.03125, %v1093_v5 }
 0x4a9   :  { %v1173_v46 = vpop.xlane.xlu1 %1172 }
 0x4aa   :  { %v1235_v18 = vmul.f32 %v3790_v27, %v3790_v27  ;;  %v1219_v38 = vmul.f32 0.03125, %v1173_v46 }
 0x4ac   :  { %v1251_v22 = vsub.f32 %v1219_v38, %v1235_v18 }
 0x4ae   :  { %v1267_v30 = vmax.f32 %v1251_v22, 0.0 }
 0x4af   :  { %v1096_v23 = vpop.xlane.xlu0 %1095 }
 0x4b0   :  { %v1283_v53 = vadd.f32 1e-05, %v1267_v30  ;;  %v3794_v57 = vmul.f32 0.03125, %v1096_v23 }
 0x4b1   :  { %v1176_v34 = vpop.xlane.xlu2 %1175 }
 0x4b2   :  { %2864 = vrsqrt.f32 %v1283_v53  ;;  %v1236_v44 = vmul.f32 %v3794_v57, %v3794_v57  ;;  %v1220_v32 = vmul.f32 0.03125, %v1176_v34  ;;  %vm1305_vm8 = vweird.f32 %v1283_v53 }
 0x4b4   :  { %v1252_v55 = vsub.f32 %v1220_v32, %v1236_v44 }
 0x4b6   :  { %v1268_v60 = vmax.f32 %v1252_v55, 0.0 }
 0x4b7   :  { %v1099_v48 = vpop.xlane.xlu0 %1098 }
 0x4b8   :  { %v2865_v3 = vpop.eup %2864  ;;  %v1284_v7 = vadd.f32 1e-05, %v1268_v60  ;;  %v3798_v25 = vmul.f32 0.03125, %v1099_v48 }
 0x4b9   :  { %v1300_v61 = vmul.f32 %v2865_v3, %v1283_v53  ;;  %v1179_v42 = vpop.xlane.xlu2 %1178  ;;  %vm1306_vm1 = vweird.f32 %v2865_v3 }
 0x4ba   :  { %2866 = vrsqrt.f32 %v1284_v7  ;;  %v1237_v51 = vmul.f32 %v3798_v25, %v3798_v25  ;;  %v1221_v0 = vmul.f32 0.03125, %v1179_v42  ;;  %vm1307_vm9 = vmor %vm1305_vm8, %vm1306_vm1  ;;  %vm1315_vm11 = vweird.f32 %v1284_v7 }
 0x4bb   :  { %v1301_v62 = vmul.f32 %v2865_v3, %v1300_v61 }
 0x4bc   :  { %v1253_v1 = vsub.f32 %v1221_v0, %v1237_v51 }
 0x4bd   :  { %v1302_v19 = vmul.f32 0.5, %v1301_v62 }
 0x4be   :  { %v1269_v56 = vmax.f32 %v1253_v1, 0.0 }
 0x4bf   :  { %v1303_v14 = vsub.f32 1.5, %v1302_v19  ;;  %v1102_v17 = vpop.xlane.xlu1 %1101 }
 0x4c0   :  { %v2867_v63 = vpop.eup %2866  ;;  %v1285_v20 = vadd.f32 1e-05, %v1269_v56  ;;  %v3802_v40 = vmul.f32 0.03125, %v1102_v17 }
 0x4c1   :  { %v1310_v2 = vmul.f32 %v2867_v63, %v1284_v7  ;;  %v1182_v5 = vpop.xlane.xlu0 %1181  ;;  %v1304_v13 = vmul.f32 %v2865_v3, %v1303_v14  ;;  %vm1316_vm10 = vweird.f32 %v2867_v63 }
 0x4c2   :  { %2868 = vrsqrt.f32 %v1285_v20  ;;  %v1238_v46 = vmul.f32 %v3802_v40, %v3802_v40  ;;  %v1222_v18 = vmul.f32 0.03125, %v1182_v5  ;;  %vm1317_vm12 = vmor %vm1315_vm11, %vm1316_vm10  ;;  %vm1325_vm14 = vweird.f32 %v1285_v20 }
 0x4c3   :  { %v1311_v38 = vmul.f32 %v2867_v63, %v1310_v2  ;;  %v1308_v22 = vsel %vm1307_vm9, %v2865_v3, %v1304_v13 }
 0x4c4   :  { %v1254_v30 = vsub.f32 %v1222_v18, %v1238_v46  ;;  %v1475_v23 = vmul.f32 %v3610_v50, %v1308_v22 }
 0x4c5   :  { %v1312_v34 = vmul.f32 0.5, %v1311_v38 }
 0x4c6   :  { %v1270_v44 = vmax.f32 %v1254_v30, 0.0  ;;  %1493 = vperm.xlu1 %2799, %v1475_v23  }
 0x4c7   :  { %v1313_v32 = vsub.f32 1.5, %v1312_v34  ;;  %v1105_v55 = vpop.xlane.xlu1 %1104 }
 0x4c8   :  { %v2869_v53 = vpop.eup %2868  ;;  %v1286_v60 = vadd.f32 1e-05, %v1270_v44  ;;  %v3807_v48 = vmul.f32 0.03125, %v1105_v55 }
 0x4c9   :  { %v1320_v61 = vmul.f32 %v2869_v53, %v1285_v20  ;;  %v1185_v42 = vpop.xlane.xlu0 %1184  ;;  %v1314_v51 = vmul.f32 %v2867_v63, %v1313_v32  ;;  %vm1326_vm13 = vweird.f32 %v2869_v53 }
 0x4ca   :  { %2870 = vrsqrt.f32 %v1286_v60  ;;  %v1239_v3 = vmul.f32 %v3807_v48, %v3807_v48  ;;  %v1223_v0 = vmul.f32 0.03125, %v1185_v42  ;;  %vm1327_vm15 = vmor %vm1325_vm14, %vm1326_vm13  ;;  %vm1335_vm3 = vweird.f32 %v1286_v60 }
 0x4cb   :  { %v1321_v50 = vmul.f32 %v2869_v53, %v1320_v61  ;;  %v1318_v62 = vsel %vm1317_vm12, %v2867_v63, %v1314_v51 }
 0x4cc   :  { %v1255_v1 = vsub.f32 %v1223_v0, %v1239_v3  ;;  %v1476_v19 = vmul.f32 %v3604_v24, %v1318_v62 }
 0x4cd   :  { %v1322_v56 = vmul.f32 0.5, %v1321_v50 }
 0x4ce   :  { %v1271_v14 = vmax.f32 %v1255_v1, 0.0  ;;  %1498 = vperm.xlu2 %2800, %v1476_v19  }
 0x4cf   :  { %v1323_v17 = vsub.f32 1.5, %v1322_v56  ;;  %v1108_v2 = vpop.xlane.xlu2 %1107 }
 0x4d0   :  { %v2871_v7 = vpop.eup %2870  ;;  %v1287_v5 = vadd.f32 1e-05, %v1271_v14  ;;  %v3812_v13 = vmul.f32 0.03125, %v1108_v2 }
 0x4d1   :  { %v1330_v46 = vmul.f32 %v2871_v7, %v1286_v60  ;;  %v1188_v18 = vpop.xlane.xlu1 %1187  ;;  %v1324_v38 = vmul.f32 %v2869_v53, %v1323_v17  ;;  %vm1336_vm2 = vweird.f32 %v2871_v7 }
 0x4d2   :  { %2872 = vrsqrt.f32 %v1287_v5  ;;  %v1240_v63 = vmul.f32 %v3812_v13, %v3812_v13  ;;  %v1224_v22 = vmul.f32 0.03125, %v1188_v18  ;;  %vm1337_vm4 = vmor %vm1335_vm3, %vm1336_vm2  ;;  %vm1345_vm6 = vweird.f32 %v1287_v5 }
 0x4d3   :  { %v1331_v24 = vmul.f32 %v2871_v7, %v1330_v46  ;;  %v1328_v30 = vsel %vm1327_vm15, %v2869_v53, %v1324_v38 }
 0x4d4   :  { %v1256_v23 = vsub.f32 %v1224_v22, %v1240_v63  ;;  %v1477_v34 = vmul.f32 %v3629_v15, %v1328_v30 }
 0x4d5   :  { %v1332_v44 = vmul.f32 0.5, %v1331_v24 }
 0x4d6   :  { %v1272_v32 = vmax.f32 %v1256_v23, 0.0  ;;  %1503 = vperm.xlu2 %2800, %v1477_v34  }
 0x4d7   :  { %v1333_v55 = vsub.f32 1.5, %v1332_v44  ;;  %v1111_v56 = vpop.xlane.xlu2 %1110 }
 0x4d8   :  { %v2873_v20 = vpop.eup %2872  ;;  %v1288_v61 = vadd.f32 1e-05, %v1272_v32  ;;  %v3824_v34 = vmul.f32 0.03125, %v1111_v56 }
 0x4d9   :  { %v1340_v42 = vmul.f32 %v2873_v20, %v1287_v5  ;;  %v1334_v51 = vmul.f32 %v2871_v7, %v1333_v55  ;;  %vm1346_vm5 = vweird.f32 %v2873_v20  ;;  %v1191_v46 = vpop.xlane.xlu1 %1190 }
 0x4da   :  { %2874 = vrsqrt.f32 %v1288_v61  ;;  %vm1347_vm7 = vmor %vm1345_vm6, %vm1346_vm5  ;;  %vm1355_vm8 = vweird.f32 %v1288_v61  ;;  %v1241_v32 = vmul.f32 %v3824_v34, %v3824_v34 }
 0x4db   :  { %v1341_v3 = vmul.f32 %v2873_v20, %v1340_v42  ;;  %v1338_v0 = vsel %vm1337_vm4, %v2871_v7, %v1334_v51 }
 0x4dc   :  { %v1478_v50 = vmul.f32 %v3623_v43, %v1338_v0 }
 0x4dd   :  { %v1342_v53 = vmul.f32 0.5, %v1341_v3 }
 0x4de   :  { %1508 = vperm.xlu1 %2799, %v1478_v50  }
 0x4df   :  { %v1343_v62 = vsub.f32 1.5, %v1342_v53  ;;  %v1114_v18 = vpop.xlane.xlu0 %1113 }
 0x4e0   :  { %v2875_v15 = vpop.eup %2874  ;;  %v3819_v63 = vmul.f32 0.03125, %v1114_v18 }
 0x4e1   :  { %v1350_v1 = vmul.f32 %v2875_v15, %v1288_v61  ;;  %v1344_v19 = vmul.f32 %v2873_v20, %v1343_v62  ;;  %vm1356_vm1 = vweird.f32 %v2875_v15  ;;  %v1194_v38 = vpop.xlane.xlu2 %1193 }
 0x4e2   :  { %vm1357_vm9 = vmor %vm1355_vm8, %vm1356_vm1  ;;  %v1242_v24 = vmul.f32 %v3819_v63, %v3819_v63  ;;  %v1226_v30 = vmul.f32 0.03125, %v1194_v38 }
 0x4e3   :  { %v1351_v14 = vmul.f32 %v2875_v15, %v1350_v1  ;;  %v1348_v60 = vsel %vm1347_vm7, %v2873_v20, %v1344_v19  ;;  %v1225_v20 = vmul.f32 0.03125, %v1191_v46  ;;  %v1088_v1 = vpop.f32.mrf.mxu3 }
 0x4e4   :  { %v1479_v17 = vmul.f32 %v3617_v33, %v1348_v60  ;;  %v1258_v44 = vsub.f32 %v1226_v30, %v1242_v24 }
 0x4e5   :  { %v1352_v2 = vmul.f32 0.5, %v1351_v14  ;;  %v1257_v3 = vsub.f32 %v1225_v20, %v1241_v32  ;;  %v3839_v14 = vadd.f32 %v1088_v1, %v3656_v35 }
 0x4e6   :  { %1513 = vperm.xlu2 %2800, %v1479_v17   ;;  %v1274_v42 = vmax.f32 %v1258_v44, 0.0 }
 0x4e7   :  { %v1353_v7 = vsub.f32 1.5, %v1352_v2  ;;  %v1117_v23 = vpop.xlane.xlu0 %1116  ;;  %v1170_v18 = vmul.f32 %v3839_v14, %v3839_v14 }
 0x4e8   :  { %v3828_v55 = vmul.f32 0.03125, %v1117_v23  ;;  %v3833_v0 = vadd.f32 1e-05, %v1274_v42 }
 0x4e9   :  { %v1354_v43 = vmul.f32 %v2875_v15, %v1353_v7  ;;  %v1197_v61 = vpop.xlane.xlu2 %1196  ;;  %v1216_v30 = vsel %vm237_vm0, %v1170_v18, 0.0 }
 0x4ea   :  { %v1227_v51 = vmul.f32 0.03125, %v1197_v61  ;;  %2876 = vrsqrt.f32 %v3833_v0  ;;  %vm1375_vm10 = vweird.f32 %v3833_v0 }
 0x4eb   :  { %v1358_v5 = vsel %vm1357_vm9, %v2875_v15, %v1354_v43  ;;  %v1273_v15 = vmax.f32 %v1257_v3, 0.0 }
 0x4ec   :  { %v1480_v22 = vmul.f32 %v3638_v28, %v1358_v5  ;;  %v1243_v28 = vmul.f32 %v3828_v55, %v3828_v55 }
 0x4ed   :  { %v3836_v56 = vadd.f32 1e-05, %v1273_v15 }
 0x4ee   :  { %1518 = vperm.xlu0 %2801, %v1480_v22   ;;  %v1259_v53 = vsub.f32 %v1227_v51, %v1243_v28 }
 0x4ef   :  { %v1120_v33 = vpop.xlane.xlu1 %1119  ;;  %2878 = vrsqrt.f32 %v3836_v56  ;;  %vm1365_vm13 = vweird.f32 %v3836_v56 }
 0x4f0   :  { %v1275_v19 = vmax.f32 %v1259_v53, 0.0  ;;  %v3843_v2 = vpop.eup %2876  ;;  %v3846_v46 = vmul.f32 0.03125, %v1120_v33  ;;  %v1136_v53 = vsel %vm237_vm0, %v3839_v14, 0.0 }
 0x4f1   :  { %v1200_v62 = vpop.xlane.xlu0 %1199  ;;  %v1370_v5 = vmul.f32 %v3843_v2, %v3833_v0  ;;  %vm1376_vm11 = vweird.f32 %v3843_v2 }
 0x4f2   :  { %v3841_v60 = vadd.f32 1e-05, %v1275_v19  ;;  %v1244_v43 = vmul.f32 %v3846_v46, %v3846_v46  ;;  %v1228_v35 = vmul.f32 0.03125, %v1200_v62  ;;  %vm3893_vm12 = vmor %vm1375_vm10, %vm1376_vm11 }
 0x4f3   :  { %v1371_v20 = vmul.f32 %v3843_v2, %v1370_v5 }
 0x4f4   :  { %2880 = vrsqrt.f32 %v3841_v60  ;;  %v1260_v32 = vsub.f32 %v1228_v35, %v1244_v43  ;;  %vm1385_vm15 = vweird.f32 %v3841_v60 }
 0x4f5   :  { %v3860_v23 = vpop.eup %2878  ;;  %v1372_v3 = vmul.f32 0.5, %v1371_v20 }
 0x4f6   :  { %2802 = vset.pattern.permute.xlu0 %v3021_v16  ;;  %v1360_v42 = vmul.f32 %v3860_v23, %v3836_v56  ;;  %v1276_v51 = vmax.f32 %v1260_v32, 0.0  ;;  %vm1366_vm14 = vweird.f32 %v3860_v23 }
 0x4f7   :  { %v1123_v50 = vpop.xlane.xlu1 %1122  ;;  %v1373_v43 = vsub.f32 1.5, %v1372_v3  ;;  %vm3922_vm3 = vmor %vm1365_vm13, %vm1366_vm14 }
 0x4f8   :  { %v3852_v38 = vmul.f32 0.03125, %v1123_v50  ;;  %v1361_v1 = vmul.f32 %v3860_v23, %v1360_v42 }
 0x4f9   :  { %v1203_v7 = vpop.xlane.xlu0 %1202  ;;  %v1374_v3 = vmul.f32 %v3843_v2, %v1373_v43 }
 0x4fa   :  { %v1245_v22 = vmul.f32 %v3852_v38, %v3852_v38  ;;  %v1229_v33 = vmul.f32 0.03125, %v1203_v7  ;;  %v3863_v61 = vpop.eup %2880  ;;  %v3874_v7 = vadd.f32 1e-05, %v1276_v51  ;;  %v1362_v32 = vmul.f32 0.5, %v1361_v1  ;;  %v2770_v1 = vld [vmem:[%s4714_s2 + $0x38] sm:$0xff] }
 0x4fb   :  { %v1380_v50 = vmul.f32 %v3863_v61, %v3841_v60  ;;  %1737 = vmatpush.bf16.msrb.mxu1 %v2770_v1  ;;  %vm1386_vm2 = vweird.f32 %v3863_v61  ;;  %v2769_v60 = vld [vmem:[%s4714_s2 + $0x30] sm:$0xff] }
 0x4fc   :  { %v1261_v28 = vsub.f32 %v1229_v33, %v1245_v22  ;;  %2882 = vrsqrt.f32 %v3874_v7  ;;  %vm3934_vm4 = vmor %vm1385_vm15, %vm1386_vm2  ;;  %vm1395_vm5 = vweird.f32 %v3874_v7 }
 0x4fd   :  { %v1381_v35 = vmul.f32 %v3863_v61, %v1380_v50 }
 0x4fe   :  { %v1277_v15 = vmax.f32 %v1261_v28, 0.0 }
 0x4ff   :  { %v1126_v24 = vpop.xlane.xlu2 %1125  ;;  %v1382_v42 = vmul.f32 0.5, %v1381_v35  ;;  %1738 = vmatpush.bf16.msrb.mxu1 %v2769_v60 }
 0x500   :  { %v3881_v33 = vadd.f32 1e-05, %v1277_v15  ;;  %v3885_v28 = vmul.f32 0.03125, %v1126_v24  ;;  %v1363_v24 = vsub.f32 1.5, %v1362_v32 }
 0x501   :  { %v1206_v17 = vpop.xlane.xlu1 %1205 }
 0x502   :  { %v1246_v50 = vmul.f32 %v3885_v28, %v3885_v28  ;;  %2884 = vrsqrt.f32 %v3881_v33  ;;  %v3908_v43 = vpop.eup %2882  ;;  %vm1405_vm7 = vweird.f32 %v3881_v33 }
 0x503   :  { %vm1396_vm6 = vweird.f32 %v3908_v43 }
 0x504   :  { %vm3972_vm8 = vmor %vm1395_vm5, %vm1396_vm6 }
 0x508   :  { %1217 = vadd.xlane.f32.xlu1 %v1216_v30  ;;  %v1169_v30 = vmul.f32 %v3778_v21, %v3778_v21 }
 0x509   :  { %v1129_v44 = vpop.xlane.xlu1 %1128 }
 0x50a   :  { %v3915_v32 = vmul.f32 0.03125, %v1129_v44 }
 0x50f   :  { %1137 = vadd.xlane.f32.xlu2 %v1136_v53  ;;  %v1132_v62 = vpop.xlane.xlu2 %1131  ;;  %v1230_v53 = vmul.f32 0.03125, %v1206_v17  ;;  %v1378_v17 = vsel %vm3893_vm12, %v3843_v2, %v1374_v3  ;;  %v2975_v2 = vld [vmem:[%s4715_s3 + $0x40] sm:$0xff] }
 0x510   :  { %v3872_v19 = vmul.f32 0.03125, %v1132_v62  ;;  %v1213_v62 = vsel %vm237_vm0, %v1169_v30, 0.0  ;;  %v3913_v30 = vpop.eup %2884 }
 0x511   :  { %v1212_v18 = vpop.xlane.xlu1 %1211  ;;  %v1262_v35 = vsub.f32 %v1230_v53, %v1246_v50  ;;  %v1247_v50 = vmul.f32 %v3915_v32, %v3915_v32  ;;  %v1400_v0 = vmul.f32 %v3913_v30, %v3881_v33  ;;  %vm1406_vm1 = vweird.f32 %v3913_v30 }
 0x512   :  { %v1248_v5 = vmul.f32 %v3872_v19, %v3872_v19  ;;  %v1232_v22 = vmul.f32 0.03125, %v1212_v18  ;;  %v1383_v18 = vsub.f32 1.5, %v1382_v42  ;;  %vm3985_vm11 = vmor %vm1405_vm7, %vm1406_vm1 }
 0x513   :  { %v1278_v3 = vmax.f32 %v1262_v35, 0.0 }
 0x514   :  { %v1264_v20 = vsub.f32 %v1232_v22, %v1248_v5  ;;  %v1364_v5 = vmul.f32 %v3860_v23, %v1363_v24  ;;  %v1209_v22 = vpop.xlane.xlu0 %1208  ;;  %v1384_v44 = vmul.f32 %v3863_v61, %v1383_v18 }
 0x515   :  { %v1231_v56 = vmul.f32 0.03125, %v1209_v22  ;;  %v3951_v35 = vadd.f32 1e-05, %v1278_v3  ;;  %v2976_v22 = vld [vmem:[%s4715_s3 + $0x38] sm:$0xff] }
 0x516   :  { %v1280_v51 = vmax.f32 %v1264_v20, 0.0  ;;  %v1482_v20 = vmul.f32 %v2975_v2, %v1378_v17  ;;  %v1368_v24 = vsel %vm3922_vm3, %v3860_v23, %v1364_v5  ;;  %v1388_v17 = vsel %vm3934_vm4, %v3863_v61, %v1384_v44  ;;  %v2977_v5 = vld [vmem:[%s4715_s3 + $0x48] sm:$0xff] }
 0x517   :  { %v1481_v60 = vmul.f32 %v2976_v22, %v1368_v24  ;;  %v1263_v12 = vsub.f32 %v1231_v56, %v1247_v50  ;;  %v1401_v23 = vmul.f32 %v3913_v30, %v1400_v0  ;;  %vm1415_vm13 = vweird.f32 %v3951_v35 }
 0x518   :  { %v3897_v15 = vadd.f32 1e-05, %v1280_v51  ;;  %1214 = vadd.xlane.f32.xlu0 %v1213_v62  ;;  %v1390_v51 = vmul.f32 %v3908_v43, %v3874_v7 }
 0x519   :  { %v1279_v61 = vmax.f32 %v1263_v12, 0.0  ;;  %v1402_v44 = vmul.f32 0.5, %v1401_v23  ;;  %v4038_v23 = vld [vmem:[%s4715_s3 + $0x78] sm:$0xff] }
 0x51a   :  { %2886 = vrsqrt.f32 %v3897_v15  ;;  %v1391_v18 = vmul.f32 %v3908_v43, %v1390_v51  ;;  %vm1435_vm9 = vweird.f32 %v3897_v15 }
 0x51b   :  { %2888 = vrsqrt.f32 %v3951_v35  ;;  %v3962_v24 = vadd.f32 1e-05, %v1279_v61  ;;  %v1403_v50 = vsub.f32 1.5, %v1402_v44  ;;  %v1459_v44 = vsub.f32 %v3659_v41, %v3790_v27 }
 0x51c   :  { %v1392_v51 = vmul.f32 0.5, %v1391_v18  ;;  %v3980_v18 = vpop.xlane.xlu1 %1134 }
 0x51d   :  { %2890 = vrsqrt.f32 %v3962_v24  ;;  %v1404_v33 = vmul.f32 %v3913_v30, %v1403_v50  ;;  %vm1425_vm2 = vweird.f32 %v3962_v24 }
 0x51e   :  { %v1393_v53 = vsub.f32 1.5, %v1392_v51 }
 0x520   :  { %v3938_v62 = vpop.eup %2886 }
 0x521   :  { %1528 = vperm.xlu1 %2799, %v1482_v20   ;;  %v1430_v1 = vmul.f32 %v3938_v62, %v3897_v15  ;;  %v1483_v20 = vmul.f32 %v2977_v5, %v1388_v17  ;;  %v3966_v56 = vpop.eup %2888  ;;  %vm1436_vm10 = vweird.f32 %v3938_v62 }
 0x522   :  { %v1410_v7 = vmul.f32 %v3966_v56, %v3951_v35  ;;  %vm3995_vm12 = vmor %vm1435_vm9, %vm1436_vm10  ;;  %vm1416_vm14 = vweird.f32 %v3966_v56 }
 0x523   :  { %v1431_v42 = vmul.f32 %v3938_v62, %v1430_v1  ;;  %v1394_v1 = vmul.f32 %v3908_v43, %v1393_v53  ;;  %vm1417_vm15 = vmor %vm1415_vm13, %vm1416_vm14 }
 0x525   :  { %v1432_v3 = vmul.f32 0.5, %v1431_v42  ;;  %v2978_v42 = vld [vmem:[%s4715_s3 + $0x58] sm:$0xff] }
 0x527   :  { %1523 = vperm.xlu2 %2800, %v1481_v60   ;;  %v1433_v0 = vsub.f32 1.5, %v1432_v3  ;;  %v1398_v60 = vsel %vm3972_vm8, %v3908_v43, %v1394_v1  ;;  %v1408_v43 = vsel %vm3985_vm11, %v3913_v30, %v1404_v33 }
 0x528   :  { %v1485_v3 = vmul.f32 %v2978_v42, %v1408_v43 }
 0x529   :  { %1533 = vperm.xlu1 %2799, %v1483_v20   ;;  %v1434_v15 = vmul.f32 %v3938_v62, %v1433_v0  ;;  %v1411_v20 = vmul.f32 %v3966_v56, %v1410_v7  ;;  %v4741_v0 = vmov 2   ;;  %v2980_v7 = vld [vmem:[%s4715_s3 + $0x70] sm:$0xff] }
 0x52b   :  { %v1438_v61 = vsel %vm3995_vm12, %v3938_v62, %v1434_v15  ;;  %v1412_v53 = vmul.f32 0.5, %v1411_v20 }
 0x52c   :  { %1612 = vperm.xlu0 %2802, %v2976_v22   ;;  %v1499_v22 = vpop.permute.xlu2 %1498  ;;  %v1488_v33 = vmul.f32 %v2980_v7, %v1438_v61 }
 0x52d   :  { %v1413_v27 = vsub.f32 1.5, %v1412_v53 }
 0x52f   :  { %2803 = vset.pattern.permute.xlu2 %v3021_v16  ;;  %v1414_v15 = vmul.f32 %v3966_v56, %v1413_v27 }
 0x530   :  { %1616 = vperm.xlu2 %2803, %v2975_v2   ;;  %v1460_v2 = vsub.f32 %v3667_v47, %v3794_v57  ;;  %v2979_v47 = vld [vmem:[%s4715_s3 + $0x50] sm:$0xff] }
 0x531   :  { %2804 = vset.pattern.permute.xlu1 %v3021_v16  ;;  %v1484_v57 = vmul.f32 %v2979_v47, %v1398_v60  ;;  %v1418_v35 = vsel %vm1417_vm15, %v3966_v56, %v1414_v15  ;;  %v1461_v56 = vsub.f32 %v3675_v59, %v3798_v25 }
 0x532   :  { %1620 = vperm.xlu1 %2804, %v2977_v5   ;;  %v2891_v5 = vpop.eup %2890  ;;  %v1572_v51 = vmul.f32 %v1499_v22, %v1460_v2  ;;  %v2981_v2 = vld [vmem:[%s4715_s3 + $0x60] sm:$0xff] }
 0x533   :  { %v1420_v30 = vmul.f32 %v2891_v5, %v3962_v24  ;;  %vm1426_vm3 = vweird.f32 %v2891_v5  ;;  %v1486_v20 = vmul.f32 %v2981_v2, %v1418_v35  ;;  %v2983_v24 = vld [vmem:[%s4715_s3 + $0x68] sm:$0xff] }
 0x534   :  { %1628 = vperm.xlu0 %2802, %v2978_v42   ;;  %v1652_v1 = vadd.f32 %v3748_v45, %v1572_v51  ;;  %vm1427_vm4 = vmor %vm1425_vm2, %vm1426_vm3  ;;  %v1504_v43 = vpop.permute.xlu2 %1503 }
 0x535   :  { %v1421_v62 = vmul.f32 %v2891_v5, %v1420_v30 }
 0x536   :  { %v1668_v17 = vmax.f32 %v1652_v1, 0.0  ;;  %v1463_v1 = vsub.f32 %v3691_v26, %v3807_v48 }
 0x537   :  { %v1422_v60 = vmul.f32 0.5, %v1421_v62 }
 0x538   :  { %v1494_v50 = vpop.permute.xlu1 %1493  ;;  %2805 = vset.pattern.permute.xlu2 %v4741_v0 }
 0x539   :  { %v1571_v12 = vmul.f32 %v1494_v50, %v1459_v44  ;;  %1538 = vperm.xlu2 %2805, %v1484_v57   ;;  %v1462_v57 = vsub.f32 %v3683_v54, %v3802_v40 }
 0x53a   :  { %2807 = vset.pattern.permute.xlu1 %v4741_v0 }
 0x53b   :  { %v1651_v41 = vadd.f32 %v3770_v58, %v1571_v12  ;;  %1543 = vperm.xlu1 %2807, %v1485_v3   ;;  %v1423_v58 = vsub.f32 1.5, %v1422_v60 }
 0x53c   :  { %2810 = vset.pattern.permute.xlu0 %v4741_v0 }
 0x53d   :  { %v1667_v22 = vmax.f32 %v1651_v41, 0.0  ;;  %1558 = vperm.xlu0 %2810, %v1488_v33   ;;  %v1424_v42 = vmul.f32 %v2891_v5, %v1423_v58 }
 0x53f   :  { %v1683_v45 = vpack.c.bf16 %v1668_v17, %v1667_v22  ;;  %v1428_v51 = vsel %vm1427_vm4, %v2891_v5, %v1424_v42  ;;  %v4067_v22 = vmul.f32 0.03125, %v3980_v18  ;;  %v1466_v18 = vsub.f32 %v3715_v10, %v3819_v63 }
 0x540   :  { %v1487_v61 = vmul.f32 %v2983_v24, %v1428_v51  ;;  %v1514_v5 = vpop.permute.xlu2 %1513  ;;  %v1468_v63 = vsub.f32 %v3731_v9, %v3846_v46 }
 0x541   :  { %2806 = vset.pattern.permute.xlu2 %v3021_v16  ;;  %2727 = vmatmul.msk.bf16.vlgmr.msrb.gmra.mxu1 %vm237_vm0, %v1683_v45  ;;  %v1575_v54 = vmul.f32 %v1514_v5, %v1463_v1  ;;  %v1249_v60 = vmul.f32 %v4067_v22, %v4067_v22 }
 0x542   :  { %1624 = vperm.xlu2 %2806, %v2979_v47   ;;  %v1573_v47 = vmul.f32 %v1504_v43, %v1461_v56 }
 0x543   :  { %2809 = vset.pattern.permute.xlu1 %v3021_v16  ;;  %v1655_v40 = vadd.f32 %v3775_v31, %v1575_v54 }
 0x544   :  { %1632 = vperm.xlu1 %2809, %v2981_v2   ;;  %v1653_v3 = vadd.f32 %v3785_v8, %v1573_v47  ;;  %v1464_v8 = vsub.f32 %v3699_v6, %v3812_v13 }
 0x545   :  { %2814 = vset.pattern.permute.xlu0 %v3021_v16  ;;  %v1671_v41 = vmax.f32 %v1655_v40, 0.0  ;;  %v1467_v40 = vsub.f32 %v3723_v11, %v3828_v55 }
 0x546   :  { %1644 = vperm.xlu0 %2814, %v4038_v23   ;;  %v1669_v59 = vmax.f32 %v1653_v3, 0.0  ;;  %v1465_v3 = vsub.f32 %v3707_v29, %v3824_v34 }
 0x54a   :  { %2808 = vset.pattern.permute.xlu2 %v4741_v0 }
 0x54b   :  { %1548 = vperm.xlu2 %2808, %v1486_v20  }
 0x54c   :  { %1636 = vperm.xlu1 %2809, %v2983_v24  }
 0x550   :  { %v1509_v44 = vpop.permute.xlu1 %1508 }
 0x551   :  { %v1574_v53 = vmul.f32 %v1509_v44, %v1462_v57 }
 0x553   :  { %v1654_v50 = vadd.f32 %v3761_v52, %v1574_v53  ;;  %1553 = vperm.xlu2 %2808, %v1487_v61  }
 0x554   :  { %2812 = vset.pattern.permute.xlu1 %v4741_v0 }
 0x555   :  { %v1670_v25 = vmax.f32 %v1654_v50, 0.0 }
 0x557   :  { %v1684_v30 = vpack.c.bf16 %v1670_v25, %v1669_v59 }
 0x559   :  { %2728 = vmatmul.msk.bf16.gmra.mxu1 %vm237_vm0, %v1684_v30 }
 0x55b   :  { %2811 = vset.pattern.permute.xlu2 %v3021_v16 }
 0x55c   :  { %1640 = vperm.xlu2 %2811, %v2980_v7  }
 0x560   :  { %v1519_v52 = vpop.permute.xlu0 %1518 }
 0x561   :  { %v1576_v12 = vmul.f32 %v1519_v52, %v1464_v8  ;;  %v2984_v52 = vld [vmem:[%s4715_s3 + $0x80] sm:$0xff] }
 0x563   :  { %v1656_v33 = vadd.f32 %v3773_v37, %v1576_v12 }
 0x564   :  { %2813 = vset.pattern.permute.xlu2 %v4741_v0 }
 0x565   :  { %v1672_v27 = vmax.f32 %v1656_v33, 0.0 }
 0x567   :  { %v1685_v62 = vpack.c.bf16 %v1672_v27, %v1671_v41 }
 0x569   :  { %2729 = vmatmul.msk.bf16.gmra.mxu1 %vm237_vm0, %v1685_v62 }
 0x57b   :  { %v1218_v26 = vpop.xlane.xlu1 %1217 }
 0x57c   :  { %v1234_v17 = vmul.f32 0.03125, %v1218_v26 }
 0x582   :  { %v1138_v48 = vpop.xlane.xlu2 %1137 }
 0x583   :  { %v4062_v7 = vmul.f32 0.03125, %v1138_v48 }
 0x585   :  { %v1250_v6 = vmul.f32 %v4062_v7, %v4062_v7 }
 0x587   :  { %v1266_v13 = vsub.f32 %v1234_v17, %v1250_v6 }
 0x589   :  { %v1282_v31 = vmax.f32 %v1266_v13, 0.0 }
 0x58a   :  { %v1524_v37 = vpop.permute.xlu2 %1523 }
 0x58b   :  { %v1298_v0 = vadd.f32 1e-05, %v1282_v31  ;;  %v1215_v45 = vpop.xlane.xlu0 %1214  ;;  %v1577_v30 = vmul.f32 %v1524_v37, %v1465_v3 }
 0x58c   :  { %v1233_v15 = vmul.f32 0.03125, %v1215_v45 }
 0x58d   :  { %2892 = vrsqrt.f32 %v1298_v0  ;;  %vm1455_vm6 = vweird.f32 %v1298_v0 }
 0x58e   :  { %v1265_v58 = vsub.f32 %v1233_v15, %v1249_v60  ;;  %v1469_v60 = vsub.f32 %v3736_v39, %v3852_v38 }
 0x590   :  { %v1281_v2 = vmax.f32 %v1265_v58, 0.0 }
 0x592   :  { %v1297_v35 = vadd.f32 1e-05, %v1281_v2  ;;  %v1617_v20 = vpop.permute.xlu2 %1616  ;;  %v1470_v2 = vsub.f32 %v3744_v49, %v3885_v28 }
 0x593   :  { %v2893_v42 = vpop.eup %2892  ;;  %v1529_v43 = vpop.permute.xlu1 %1528 }
 0x594   :  { %v1450_v56 = vmul.f32 %v2893_v42, %v1298_v0  ;;  %2894 = vrsqrt.f32 %v1297_v35  ;;  %v1578_v51 = vmul.f32 %v1529_v43, %v1466_v18  ;;  %vm1456_vm5 = vweird.f32 %v2893_v42 }
 0x595   :  { %vm1457_vm7 = vmor %vm1455_vm6, %vm1456_vm5  ;;  %vm1445_vm8 = vweird.f32 %v1297_v35  ;;  %v1471_v18 = vsub.f32 %v3757_v36, %v3915_v32 }
 0x596   :  { %v1451_v24 = vmul.f32 %v2893_v42, %v1450_v56  ;;  %v1658_v59 = vadd.f32 %v1617_v20, %v1578_v51 }
 0x598   :  { %v1452_v47 = vmul.f32 0.5, %v1451_v24  ;;  %v1674_v34 = vmax.f32 %v1658_v59, 0.0  ;;  %v1472_v24 = vsub.f32 %v3764_v4, %v3872_v19 }
 0x59a   :  { %v2895_v57 = vpop.eup %2894  ;;  %v1539_v61 = vpop.permute.xlu2 %1538  ;;  %v1453_v44 = vsub.f32 1.5, %v1452_v47 }
 0x59b   :  { %v1440_v53 = vmul.f32 %v2895_v57, %v1297_v35  ;;  %v1534_v50 = vpop.permute.xlu1 %1533  ;;  %v1580_v33 = vmul.f32 %v1539_v61, %v1468_v63  ;;  %vm1446_vm1 = vweird.f32 %v2895_v57 }
 0x59c   :  { %v1454_v25 = vmul.f32 %v2893_v42, %v1453_v44  ;;  %v1579_v62 = vmul.f32 %v1534_v50, %v1467_v40  ;;  %vm1447_vm9 = vmor %vm1445_vm8, %vm1446_vm1 }
 0x59d   :  { %v1441_v5 = vmul.f32 %v2895_v57, %v1440_v53 }
 0x59e   :  { %v1613_v1 = vpop.permute.xlu0 %1612  ;;  %v1458_v54 = vsel %vm1457_vm7, %v2893_v42, %v1454_v25 }
 0x59f   :  { %v1442_v10 = vmul.f32 0.5, %v1441_v5  ;;  %v1657_v8 = vadd.f32 %v1613_v1, %v1577_v30  ;;  %v1490_v29 = vmul.f32 %v2984_v52, %v1458_v54  ;;  %v1473_v1 = vsub.f32 %v3778_v21, %v4067_v22 }
 0x5a1   :  { %v1443_v12 = vsub.f32 1.5, %v1442_v10  ;;  %v1673_v41 = vmax.f32 %v1657_v8, 0.0  ;;  %1568 = vperm.xlu2 %2813, %v1490_v29   ;;  %v1474_v8 = vsub.f32 %v3839_v14, %v4062_v7 }
 0x5a2   :  { %v1625_v27 = vpop.permute.xlu2 %1624 }
 0x5a3   :  { %v1686_v26 = vpack.c.bf16 %v1674_v34, %v1673_v41  ;;  %v1660_v9 = vadd.f32 %v1625_v27, %v1580_v33  ;;  %v1444_v46 = vmul.f32 %v2895_v57, %v1443_v12 }
 0x5a4   :  { %v1621_v48 = vpop.permute.xlu1 %1620 }
 0x5a5   :  { %v1659_v17 = vadd.f32 %v1621_v48, %v1579_v62  ;;  %2730 = vmatmul.msk.bf16.gmra.mxu1 %vm237_vm0, %v1686_v26  ;;  %v1448_v6 = vsel %vm1447_vm9, %v2895_v57, %v1444_v46  ;;  %v1676_v11 = vmax.f32 %v1660_v9, 0.0 }
 0x5a6   :  { %v1489_v13 = vmul.f32 %v4038_v23, %v1448_v6  ;;  %v1629_v45 = vpop.permute.xlu0 %1628 }
 0x5a7   :  { %v1675_v55 = vmax.f32 %v1659_v17, 0.0 }
 0x5a8   :  { %1563 = vperm.xlu1 %2812, %v1489_v13  }
 0x5a9   :  { %v1687_v31 = vpack.c.bf16 %v1676_v11, %v1675_v55 }
 0x5aa   :  { %v1549_v37 = vpop.permute.xlu2 %1548 }
 0x5ab   :  { %v1582_v35 = vmul.f32 %v1549_v37, %v1470_v2  ;;  %v2986_v37 = vld [vmem:[%s4713_s1 + $0x8] sm:$0xff]  ;;  %v4134_v2 = vld [vmem:[%s4715_s3 + $0x20] sm:$0xff] }
 0x5ad   :  { %v1544_v0 = vpop.permute.xlu1 %1543 }
 0x5ae   :  { %v1581_v15 = vmul.f32 %v1544_v0, %v1469_v60  ;;  %v2987_v0 = vld [vmem:[%s4713_s1 + $0x10] sm:$0xff]  ;;  %v4115_v60 = vld [vmem:[%s4715_s3 + $0x8] sm:$0xff] }
 0x5af   :  { %v1559_v43 = vpop.permute.xlu0 %1558 }
 0x5b0   :  { %2815 = vset.pattern.permute.xlu1 %v3021_v16  ;;  %v1661_v23 = vadd.f32 %v1629_v45, %v1581_v15  ;;  %v1584_v16 = vmul.f32 %v1559_v43, %v1472_v24  ;;  %v4719_v45 = vmov 5   ;;  %v4122_v15 = vld [vmem:[%s4715_s3 + $0x10] sm:$0xff]  ;;  %v2998_v24 = vld [vmem:[%s4715_s3] sm:$0xff] }
 0x5b1   :  { %1648 = vperm.xlu1 %2815, %v2984_v52   ;;  %2817 = vset.pattern.permute.xlu2 %v4719_v45  ;;  %v2996_v43 = vld [vmem:[%s4713_s1 + $0x30] sm:$0xff] }
 0x5b2   :  { %v1554_v58 = vpop.permute.xlu2 %1553  ;;  %v1677_v56 = vmax.f32 %v1661_v23, 0.0  ;;  %2818 = vset.pattern.permute.xlu0 %v4719_v45  ;;  %2340 = vperm.xlu2 %2817, %v4122_v15   ;;  %v4143_v23 = vld [vmem:[%s4715_s3 + $0x30] sm:$0xff] }
 0x5b3   :  { %v1583_v47 = vmul.f32 %v1554_v58, %v1471_v18  ;;  %v4128_v58 = vld [vmem:[%s4715_s3 + $0x18] sm:$0xff] }
 0x5b4   :  { %2344 = vperm.xlu0 %2818, %v4128_v58  }
 0x5b5   :  { %2731 = vmatmul.msk.bf16.gmra.mxu1 %vm237_vm0, %v1687_v31  ;;  %v2985_v31 = vld [vmem:[%s4713_s1] sm:$0xff] }
 0x5b6   :  { %v1633_v20 = vpop.permute.xlu1 %1632 }
 0x5b7   :  { %v1662_v42 = vadd.f32 %v1633_v20, %v1582_v35  ;;  %v2992_v35 = vld [vmem:[%s4713_s1 + $0x18] sm:$0xff]  ;;  %v2994_v20 = vld [vmem:[%s4713_s1 + $0x20] sm:$0xff] }
 0x5b8   :  { %v1645_v63 = vpop.permute.xlu0 %1644 }
 0x5b9   :  { %v1678_v39 = vmax.f32 %v1662_v42, 0.0  ;;  %2816 = vset.pattern.permute.xlu1 %v4719_v45  ;;  %v2995_v42 = vld [vmem:[%s4713_s1 + $0x28] sm:$0xff] }
 0x5ba   :  { %v1641_v38 = vpop.permute.xlu2 %1640  ;;  %2336 = vperm.xlu1 %2816, %v4115_v60  }
 0x5bb   :  { %v1688_v51 = vpack.c.bf16 %v1678_v39, %v1677_v56  ;;  %v1664_v49 = vadd.f32 %v1641_v38, %v1584_v16  ;;  %v2997_v56 = vld [vmem:[%s4713_s1 + $0x38] sm:$0xff]  ;;  %v4161_v39 = vperm.slane %v2998_v24, 2 }
 0x5bd   :  { %v1680_v44 = vmax.f32 %v1664_v49, 0.0 }
 0x5be   :  { %v1637_v28 = vpop.permute.xlu1 %1636  ;;  %v1740_v57 = vpop.f32.mrf.mxu1 }
 0x5bf   :  { %v1663_v61 = vadd.f32 %v1637_v28, %v1583_v47 }
 0x5c1   :  { %v1679_v3 = vmax.f32 %v1663_v61, 0.0 }
 0x5c2   :  { %2348 = vperm.xlu1 %2816, %v4134_v2  }
 0x5c3   :  { %v1689_v53 = vpack.c.bf16 %v1680_v44, %v1679_v3 }
 0x5c5   :  { %2732 = vmatmul.msk.bf16.gmra.mxu1 %vm237_vm0, %v1688_v51 }
 0x5c6   :  { %v1742_v50 = vpop.f32.mrf.mxu1 }
 0x5c7   :  { %v1780_v59 = vpack.c.bf16 %v1742_v50, %v1740_v57 }
 0x5ca   :  { %2356 = vperm.xlu1 %2816, %v4143_v23  }
 0x5d5   :  { %2733 = vmatmul.msk.bf16.gmra.mxu1 %vm237_vm0, %v1689_v53 }
 0x5d6   :  { %v1745_v4 = vpop.f32.mrf.mxu1 }
 0x5de   :  { %v1747_v19 = vpop.f32.mrf.mxu1 }
 0x5df   :  { %v1781_v25 = vpack.c.bf16 %v1747_v19, %v1745_v4 }
 0x5e6   :  { %v1750_v30 = vpop.f32.mrf.mxu1 }
 0x5ee   :  { %v1752_v36 = vpop.f32.mrf.mxu1 }
 0x5ef   :  { %v1782_v32 = vpack.c.bf16 %v1752_v36, %v1750_v30 }
 0x5fb   :  { %v1569_v10 = vpop.permute.xlu2 %1568 }
 0x5fc   :  { %v1586_v52 = vmul.f32 %v1569_v10, %v1474_v8 }
 0x61a   :  { %v1564_v5 = vpop.permute.xlu1 %1563 }
 0x61b   :  { %v1585_v54 = vmul.f32 %v1564_v5, %v1473_v1 }
 0x61d   :  { %v1665_v29 = vadd.f32 %v1645_v63, %v1585_v54 }
 0x61f   :  { %v1681_v33 = vmax.f32 %v1665_v29, 0.0 }
 0x622   :  { %v1755_v34 = vpop.f32.mrf.mxu1 }
 0x623   :  { %v1649_v40 = vpop.permute.xlu1 %1648 }
 0x624   :  { %v1666_v12 = vadd.f32 %v1649_v40, %v1586_v52 }
 0x626   :  { %v1682_v41 = vmax.f32 %v1666_v12, 0.0 }
 0x628   :  { %v1690_v27 = vpack.c.bf16 %v1682_v41, %v1681_v33 }
 0x62a   :  { %v1757_v62 = vpop.f32.mrf.mxu1  ;;  %2734 = vmatmul.msk.bf16.gmra.mxu1 %vm237_vm0, %v1690_v27  ;;  %vm1838_vm0 = vcmask 130048  }
 0x62b   :  { %v1783_v26 = vpack.c.bf16 %v1757_v62, %v1755_v34 }
 0x632   :  { %v1760_v9 = vpop.f32.mrf.mxu1 }
 0x63a   :  { %v1762_v21 = vpop.f32.mrf.mxu1 }
 0x63b   :  { %v1784_v55 = vpack.c.bf16 %v1762_v21, %v1760_v9 }
 0x642   :  { %v1765_v22 = vpop.f32.mrf.mxu1 }
 0x64a   :  { %v1767_v46 = vpop.f32.mrf.mxu1 }
 0x64b   :  { %v1785_v11 = vpack.c.bf16 %v1767_v46, %v1765_v22 }
 0x652   :  { %v1770_v48 = vpop.f32.mrf.mxu1 }
 0x65a   :  { %v1772_v17 = vpop.f32.mrf.mxu1 }
 0x65b   :  { %v1786_v13 = vpack.c.bf16 %v1772_v17, %v1770_v48 }
 0x6a7   :  { %v1775_v6 = vpop.f32.mrf.mxu1 }
 0x6af   :  { %v1777_v14 = vpop.f32.mrf.mxu1 }
 0x6b0   :  { %v1787_v7 = vpack.c.bf16 %v1777_v14, %v1775_v6 }
 0x6b2   :  { %1789 = vmatpush.bf16.msrb.mxu2 %v1787_v7 }
 0x6b6   :  { %1790 = vmatpush.bf16.msrb.mxu2 %v1786_v13 }
 0x6ba   :  { %1791 = vmatpush.bf16.msrb.mxu2 %v1785_v11 }
 0x6be   :  { %1792 = vmatpush.bf16.msrb.mxu2 %v1784_v55 }
 0x6c2   :  { %1793 = vmatpush.bf16.msrb.mxu2 %v1783_v26 }
 0x6c6   :  { %1794 = vmatpush.bf16.msrb.mxu2 %v1782_v32 }
 0x6ca   :  { %1795 = vmatpush.bf16.msrb.mxu2 %v1781_v25 }
 0x6ce   :  { %1796 = vmatpush.bf16.msrb.mxu2 %v1780_v59 }
 0x6d1   :  { %1797 = vmatmul.bf16.vlgmr.msrb.gmra.mxu2 %v2985_v31 }
 0x6e1   :  { %1802 = vmatmul.bf16.gmra.mxu2 %v2986_v37 }
 0x6f1   :  { %1807 = vmatmul.bf16.gmra.mxu2 %v2987_v0 }
 0x701   :  { %1812 = vmatmul.bf16.gmra.mxu2 %v2992_v35 }
 0x711   :  { %1817 = vmatmul.bf16.gmra.mxu2 %v2994_v20 }
 0x721   :  { %1822 = vmatmul.bf16.gmra.mxu2 %v2995_v42 }
 0x731   :  { %1827 = vmatmul.bf16.gmra.mxu2 %v2996_v43 }
 0x741   :  { %1832 = vmatmul.bf16.gmra.mxu2 %v2997_v56 }
 0x754   :  { %v1798_v38 = vpop.f32.mrf.mxu2 }
 0x755   :  { %v4164_v16 = vadd.f32 %v1798_v38, %v4161_v39 }
 0x757   :  { %v1839_v18 = vsel %vm1838_vm0, %v4164_v16, 0.0  ;;  %v1903_v51 = vmul.f32 %v4164_v16, %v4164_v16 }
 0x758   :  { %1840 = vadd.xlane.f32.xlu2 %v1839_v18 }
 0x759   :  { %v1919_v47 = vsel %vm1838_vm0, %v1903_v51, 0.0 }
 0x75a   :  { %1920 = vadd.xlane.f32.xlu0 %v1919_v47 }
 0x75c   :  { %v1800_v49 = vpop.f32.mrf.mxu2 }
 0x75d   :  { %v4172_v28 = vadd.f32 %v1800_v49, %v4161_v39 }
 0x75f   :  { %v1842_v57 = vsel %vm1838_vm0, %v4172_v28, 0.0  ;;  %v1904_v61 = vmul.f32 %v4172_v28, %v4172_v28 }
 0x760   :  { %1843 = vadd.xlane.f32.xlu1 %v1842_v57  ;;  %v4262_v57 = vpop.permute.xlu1 %2336 }
 0x761   :  { %v1922_v44 = vsel %vm1838_vm0, %v1904_v61, 0.0 }
 0x762   :  { %1923 = vadd.xlane.f32.xlu2 %v1922_v44 }
 0x764   :  { %v1803_v3 = vpop.f32.mrf.mxu2 }
 0x765   :  { %v4180_v53 = vadd.f32 %v1803_v3, %v4161_v39 }
 0x767   :  { %v1845_v50 = vsel %vm1838_vm0, %v4180_v53, 0.0  ;;  %v1905_v59 = vmul.f32 %v4180_v53, %v4180_v53 }
 0x768   :  { %1846 = vadd.xlane.f32.xlu1 %v1845_v50 }
 0x769   :  { %v1925_v4 = vsel %vm1838_vm0, %v1905_v59, 0.0 }
 0x76a   :  { %1926 = vadd.xlane.f32.xlu0 %v1925_v4 }
 0x76c   :  { %v1805_v19 = vpop.f32.mrf.mxu2 }
 0x76d   :  { %v4188_v25 = vadd.f32 %v1805_v19, %v4161_v39 }
 0x76f   :  { %v1848_v30 = vsel %vm1838_vm0, %v4188_v25, 0.0  ;;  %v1906_v36 = vmul.f32 %v4188_v25, %v4188_v25 }
 0x770   :  { %1849 = vadd.xlane.f32.xlu2 %v1848_v30  ;;  %v4276_v30 = vpop.permute.xlu1 %2348 }
 0x771   :  { %v1928_v32 = vsel %vm1838_vm0, %v1906_v36, 0.0 }
 0x772   :  { %1929 = vadd.xlane.f32.xlu1 %v1928_v32  ;;  %v4279_v32 = vpop.permute.xlu2 %2340 }
 0x774   :  { %v1808_v5 = vpop.f32.mrf.mxu2 }
 0x775   :  { %v4196_v1 = vadd.f32 %v1808_v5, %v4161_v39 }
 0x777   :  { %v1851_v54 = vsel %vm1838_vm0, %v4196_v1, 0.0  ;;  %v1907_v10 = vmul.f32 %v4196_v1, %v4196_v1 }
 0x778   :  { %1852 = vadd.xlane.f32.xlu2 %v1851_v54  ;;  %v4281_v54 = vpop.permute.xlu0 %2344 }
 0x779   :  { %v1931_v63 = vsel %vm1838_vm0, %v1907_v10, 0.0 }
 0x77a   :  { %1932 = vadd.xlane.f32.xlu1 %v1931_v63 }
 0x77c   :  { %v1810_v8 = vpop.f32.mrf.mxu2 }
 0x77d   :  { %v4204_v52 = vadd.f32 %v1810_v8, %v4161_v39  ;;  %v4721_v8 = vmov 4  }
 0x77e   :  { %2820 = vset.pattern.permute.xlu0 %v4721_v8  ;;  %2819 = vset.pattern.permute.xlu2 %v4721_v8 }
 0x77f   :  { %v1854_v29 = vsel %vm1838_vm0, %v4204_v52, 0.0  ;;  %v1908_v34 = vmul.f32 %v4204_v52, %v4204_v52  ;;  %2821 = vset.pattern.permute.xlu1 %v4721_v8 }
 0x780   :  { %1855 = vadd.xlane.f32.xlu0 %v1854_v29  ;;  %v4289_v29 = vpop.permute.xlu1 %2356 }
 0x781   :  { %v1934_v40 = vsel %vm1838_vm0, %v1908_v34, 0.0 }
 0x782   :  { %1935 = vadd.xlane.f32.xlu2 %v1934_v40 }
 0x784   :  { %v1813_v12 = vpop.f32.mrf.mxu2 }
 0x785   :  { %v4212_v33 = vadd.f32 %v1813_v12, %v4161_v39 }
 0x787   :  { %v1857_v41 = vsel %vm1838_vm0, %v4212_v33, 0.0  ;;  %v1909_v27 = vmul.f32 %v4212_v33, %v4212_v33 }
 0x788   :  { %1858 = vadd.xlane.f32.xlu0 %v1857_v41 }
 0x789   :  { %v1937_v62 = vsel %vm1838_vm0, %v1909_v27, 0.0 }
 0x78a   :  { %1938 = vadd.xlane.f32.xlu2 %v1937_v62 }
 0x78c   :  { %v1815_v26 = vpop.f32.mrf.mxu2 }
 0x78d   :  { %v4220_v9 = vadd.f32 %v1815_v26, %v4161_v39 }
 0x78f   :  { %v1860_v21 = vsel %vm1838_vm0, %v4220_v9, 0.0  ;;  %v1910_v22 = vmul.f32 %v4220_v9, %v4220_v9 }
 0x790   :  { %1861 = vadd.xlane.f32.xlu1 %v1860_v21 }
 0x791   :  { %v1940_v46 = vsel %vm1838_vm0, %v1910_v22, 0.0 }
 0x792   :  { %1941 = vadd.xlane.f32.xlu0 %v1940_v46 }
 0x794   :  { %v1818_v48 = vpop.f32.mrf.mxu2 }
 0x795   :  { %v4228_v17 = vadd.f32 %v1818_v48, %v4161_v39 }
 0x797   :  { %v1863_v6 = vsel %vm1838_vm0, %v4228_v17, 0.0  ;;  %v1911_v14 = vmul.f32 %v4228_v17, %v4228_v17 }
 0x798   :  { %1864 = vadd.xlane.f32.xlu1 %v1863_v6 }
 0x799   :  { %v1943_v7 = vsel %vm1838_vm0, %v1911_v14, 0.0 }
 0x79a   :  { %1944 = vadd.xlane.f32.xlu0 %v1943_v7 }
 0x79c   :  { %v1820_v13 = vpop.f32.mrf.mxu2 }
 0x79d   :  { %v4236_v11 = vadd.f32 %v1820_v13, %v4161_v39 }
 0x79f   :  { %v1866_v55 = vsel %vm1838_vm0, %v4236_v11, 0.0  ;;  %v1912_v31 = vmul.f32 %v4236_v11, %v4236_v11 }
 0x7a0   :  { %1867 = vadd.xlane.f32.xlu2 %v1866_v55 }
 0x7a1   :  { %v1946_v37 = vsel %vm1838_vm0, %v1912_v31, 0.0 }
 0x7a2   :  { %1947 = vadd.xlane.f32.xlu1 %v1946_v37 }
 0x7a4   :  { %v1823_v0 = vpop.f32.mrf.mxu2 }
 0x7a5   :  { %v4244_v35 = vadd.f32 %v1823_v0, %v4161_v39 }
 0x7a7   :  { %v1869_v20 = vsel %vm1838_vm0, %v4244_v35, 0.0  ;;  %v1913_v42 = vmul.f32 %v4244_v35, %v4244_v35 }
 0x7a8   :  { %1870 = vadd.xlane.f32.xlu2 %v1869_v20 }
 0x7a9   :  { %v1949_v43 = vsel %vm1838_vm0, %v1913_v42, 0.0 }
 0x7aa   :  { %1950 = vadd.xlane.f32.xlu0 %v1949_v43 }
 0x7ac   :  { %v1825_v56 = vpop.f32.mrf.mxu2 }
 0x7ad   :  { %v4252_v24 = vadd.f32 %v1825_v56, %v4161_v39 }
 0x7af   :  { %v1872_v38 = vsel %vm1838_vm0, %v4252_v24, 0.0  ;;  %v1914_v18 = vmul.f32 %v4252_v24, %v4252_v24 }
 0x7b0   :  { %1873 = vadd.xlane.f32.xlu1 %v1872_v38 }
 0x7b1   :  { %v1952_v51 = vsel %vm1838_vm0, %v1914_v18, 0.0 }
 0x7b2   :  { %1953 = vadd.xlane.f32.xlu2 %v1952_v51 }
 0x7b4   :  { %v1828_v47 = vpop.f32.mrf.mxu2 }
 0x7b5   :  { %v4260_v49 = vadd.f32 %v1828_v47, %v4161_v39 }
 0x7b7   :  { %v1875_v61 = vsel %vm1838_vm0, %v4260_v49, 0.0  ;;  %v1915_v44 = vmul.f32 %v4260_v49, %v4260_v49 }
 0x7b9   :  { %v1955_v3 = vsel %vm1838_vm0, %v1915_v44, 0.0 }
 0x7ba   :  { %1876 = vadd.xlane.f32.xlu2 %v1875_v61  ;;  %1956 = vadd.xlane.f32.xlu0 %v1955_v3 }
 0x7bc   :  { %v1830_v50 = vpop.f32.mrf.mxu2 }
 0x7bd   :  { %v4270_v59 = vadd.f32 %v1830_v50, %v4161_v39 }
 0x7bf   :  { %v1878_v4 = vsel %vm1838_vm0, %v4270_v59, 0.0  ;;  %v1916_v19 = vmul.f32 %v4270_v59, %v4270_v59 }
 0x7c0   :  { %1879 = vadd.xlane.f32.xlu1 %v1878_v4 }
 0x7c1   :  { %v1958_v36 = vsel %vm1838_vm0, %v1916_v19, 0.0 }
 0x7c2   :  { %1959 = vadd.xlane.f32.xlu2 %v1958_v36 }
 0x7c4   :  { %v1833_v5 = vpop.f32.mrf.mxu2 }
 0x7c5   :  { %v4284_v10 = vadd.f32 %v1833_v5, %v4161_v39 }
 0x7c7   :  { %v1881_v63 = vsel %vm1838_vm0, %v4284_v10, 0.0 }
 0x7ca   :  { %1882 = vadd.xlane.f32.xlu2 %v1881_v63 }
 0x7cb   :  { %v1841_v34 = vpop.xlane.xlu2 %1840 }
 0x7cc   :  { %v4293_v40 = vmul.f32 0.0625, %v1841_v34 }
 0x7cd   :  { %v1921_v12 = vpop.xlane.xlu0 %1920 }
 0x7ce   :  { %v1983_v41 = vmul.f32 %v4293_v40, %v4293_v40  ;;  %v1967_v27 = vmul.f32 0.0625, %v1921_v12 }
 0x7d0   :  { %v1999_v62 = vsub.f32 %v1967_v27, %v1983_v41 }
 0x7d2   :  { %v2015_v26 = vmax.f32 %v1999_v62, 0.0 }
 0x7d3   :  { %v1844_v21 = vpop.xlane.xlu1 %1843 }
 0x7d4   :  { %v2031_v22 = vadd.f32 1e-05, %v2015_v26  ;;  %v4297_v46 = vmul.f32 0.0625, %v1844_v21 }
 0x7d5   :  { %v1924_v48 = vpop.xlane.xlu2 %1923 }
 0x7d6   :  { %2896 = vrsqrt.f32 %v2031_v22  ;;  %v1984_v6 = vmul.f32 %v4297_v46, %v4297_v46  ;;  %v1968_v14 = vmul.f32 0.0625, %v1924_v48  ;;  %vm2053_vm11 = vweird.f32 %v2031_v22 }
 0x7d8   :  { %v2000_v7 = vsub.f32 %v1968_v14, %v1984_v6 }
 0x7da   :  { %v2016_v13 = vmax.f32 %v2000_v7, 0.0 }
 0x7db   :  { %v1847_v55 = vpop.xlane.xlu1 %1846 }
 0x7dc   :  { %v2897_v31 = vpop.eup %2896  ;;  %v2032_v37 = vadd.f32 1e-05, %v2016_v13  ;;  %v4301_v0 = vmul.f32 0.0625, %v1847_v55 }
 0x7dd   :  { %v2048_v20 = vmul.f32 %v2897_v31, %v2031_v22  ;;  %v1927_v42 = vpop.xlane.xlu0 %1926  ;;  %vm2054_vm10 = vweird.f32 %v2897_v31 }
 0x7de   :  { %2898 = vrsqrt.f32 %v2032_v37  ;;  %v1985_v43 = vmul.f32 %v4301_v0, %v4301_v0  ;;  %v1969_v56 = vmul.f32 0.0625, %v1927_v42  ;;  %vm2055_vm12 = vmor %vm2053_vm11, %vm2054_vm10  ;;  %vm2063_vm14 = vweird.f32 %v2032_v37 }
 0x7df   :  { %v2049_v38 = vmul.f32 %v2897_v31, %v2048_v20 }
 0x7e0   :  { %v2001_v18 = vsub.f32 %v1969_v56, %v1985_v43 }
 0x7e1   :  { %v2050_v51 = vmul.f32 0.5, %v2049_v38 }
 0x7e2   :  { %v2017_v47 = vmax.f32 %v2001_v18, 0.0 }
 0x7e3   :  { %v2051_v61 = vsub.f32 1.5, %v2050_v51  ;;  %v1850_v44 = vpop.xlane.xlu2 %1849 }
 0x7e4   :  { %v2899_v3 = vpop.eup %2898  ;;  %v2033_v50 = vadd.f32 1e-05, %v2017_v47  ;;  %v4305_v4 = vmul.f32 0.0625, %v1850_v44 }
 0x7e5   :  { %v2058_v19 = vmul.f32 %v2899_v3, %v2032_v37  ;;  %v1930_v36 = vpop.xlane.xlu1 %1929  ;;  %v2052_v5 = vmul.f32 %v2897_v31, %v2051_v61  ;;  %vm2064_vm13 = vweird.f32 %v2899_v3 }
 0x7e6   :  { %2900 = vrsqrt.f32 %v2033_v50  ;;  %v1986_v63 = vmul.f32 %v4305_v4, %v4305_v4  ;;  %v1970_v34 = vmul.f32 0.0625, %v1930_v36  ;;  %vm2065_vm15 = vmor %vm2063_vm14, %vm2064_vm13  ;;  %vm2073_vm3 = vweird.f32 %v2033_v50 }
 0x7e7   :  { %v2059_v12 = vmul.f32 %v2899_v3, %v2058_v19  ;;  %v2056_v41 = vsel %vm2055_vm12, %v2897_v31, %v2052_v5 }
 0x7e8   :  { %v2002_v27 = vsub.f32 %v1970_v34, %v1986_v63  ;;  %v2223_v62 = vmul.f32 %v4115_v60, %v2056_v41 }
 0x7e9   :  { %v2060_v26 = vmul.f32 0.5, %v2059_v12 }
 0x7ea   :  { %v2018_v21 = vmax.f32 %v2002_v27, 0.0  ;;  %2241 = vperm.xlu2 %2819, %v2223_v62  }
 0x7eb   :  { %v2061_v48 = vsub.f32 1.5, %v2060_v26  ;;  %v1853_v6 = vpop.xlane.xlu2 %1852 }
 0x7ec   :  { %v2901_v22 = vpop.eup %2900  ;;  %v2034_v14 = vadd.f32 1e-05, %v2018_v21  ;;  %v4310_v7 = vmul.f32 0.0625, %v1853_v6 }
 0x7ed   :  { %v2068_v13 = vmul.f32 %v2901_v22, %v2033_v50  ;;  %v1933_v55 = vpop.xlane.xlu1 %1932  ;;  %v2062_v20 = vmul.f32 %v2899_v3, %v2061_v48  ;;  %vm2074_vm2 = vweird.f32 %v2901_v22 }
 0x7ee   :  { %2902 = vrsqrt.f32 %v2034_v14  ;;  %v1987_v31 = vmul.f32 %v4310_v7, %v4310_v7  ;;  %v1971_v42 = vmul.f32 0.0625, %v1933_v55  ;;  %vm2075_vm4 = vmor %vm2073_vm3, %vm2074_vm2  ;;  %vm2083_vm6 = vweird.f32 %v2034_v14 }
 0x7ef   :  { %v2069_v60 = vmul.f32 %v2901_v22, %v2068_v13  ;;  %v2066_v43 = vsel %vm2065_vm15, %v2899_v3, %v2062_v20 }
 0x7f0   :  { %v2003_v56 = vsub.f32 %v1971_v42, %v1987_v31  ;;  %v2224_v38 = vmul.f32 %v4122_v15, %v2066_v43 }
 0x7f1   :  { %v2070_v18 = vmul.f32 0.5, %v2069_v60 }
 0x7f2   :  { %v2019_v51 = vmax.f32 %v2003_v56, 0.0  ;;  %2246 = vperm.xlu0 %2820, %v2224_v38  }
 0x7f3   :  { %v2071_v47 = vsub.f32 1.5, %v2070_v18  ;;  %v1856_v37 = vpop.xlane.xlu0 %1855  ;;  %v2999_v18 = vld [vmem:[%s4715_s3 + $0x28] sm:$0xff] }
 0x7f4   :  { %v2903_v61 = vpop.eup %2902  ;;  %v2035_v44 = vadd.f32 1e-05, %v2019_v51  ;;  %v4315_v19 = vmul.f32 0.0625, %v1856_v37 }
 0x7f5   :  { %v2078_v36 = vmul.f32 %v2903_v61, %v2034_v14  ;;  %v1936_v5 = vpop.xlane.xlu2 %1935  ;;  %v2072_v63 = vmul.f32 %v2901_v22, %v2071_v47  ;;  %vm2084_vm5 = vweird.f32 %v2903_v61 }
 0x7f6   :  { %2904 = vrsqrt.f32 %v2035_v44  ;;  %v1988_v3 = vmul.f32 %v4315_v19, %v4315_v19  ;;  %v1972_v15 = vmul.f32 0.0625, %v1936_v5  ;;  %vm2085_vm7 = vmor %vm2083_vm6, %vm2084_vm5  ;;  %vm2093_vm8 = vweird.f32 %v2035_v44 }
 0x7f7   :  { %v2079_v34 = vmul.f32 %v2903_v61, %v2078_v36  ;;  %v2076_v12 = vsel %vm2075_vm4, %v2901_v22, %v2072_v63 }
 0x7f8   :  { %v2004_v41 = vsub.f32 %v1972_v15, %v1988_v3  ;;  %v2225_v27 = vmul.f32 %v4128_v58, %v2076_v12  ;;  %v1917_v15 = vmul.f32 %v4284_v10, %v4284_v10 }
 0x7f9   :  { %v2080_v62 = vmul.f32 0.5, %v2079_v34 }
 0x7fa   :  { %v2020_v26 = vmax.f32 %v2004_v41, 0.0  ;;  %2251 = vperm.xlu1 %2821, %v2225_v27   ;;  %2822 = vset.pattern.permute.xlu0 %v4719_v45 }
 0x7fb   :  { %v2081_v50 = vsub.f32 1.5, %v2080_v62  ;;  %v1859_v36 = vpop.xlane.xlu0 %1858 }
 0x7fc   :  { %v2905_v21 = vpop.eup %2904  ;;  %v2036_v48 = vadd.f32 1e-05, %v2020_v26  ;;  %v4328_v12 = vmul.f32 0.0625, %v1859_v36  ;;  %v1961_v26 = vsel %vm1838_vm0, %v1917_v15, 0.0 }
 0x7fd   :  { %v2088_v6 = vmul.f32 %v2905_v21, %v2035_v44  ;;  %v2082_v13 = vmul.f32 %v2903_v61, %v2081_v50  ;;  %vm2094_vm1 = vweird.f32 %v2905_v21  ;;  %v1939_v37 = vpop.xlane.xlu2 %1938 }
 0x7fe   :  { %2906 = vrsqrt.f32 %v2036_v48  ;;  %vm2095_vm9 = vmor %vm2093_vm8, %vm2094_vm1  ;;  %vm2103_vm11 = vweird.f32 %v2036_v48  ;;  %v1989_v27 = vmul.f32 %v4328_v12, %v4328_v12  ;;  %v1973_v62 = vmul.f32 0.0625, %v1939_v37 }
 0x7ff   :  { %v2089_v55 = vmul.f32 %v2905_v21, %v2088_v6  ;;  %v2086_v20 = vsel %vm2085_vm7, %v2903_v61, %v2082_v13 }
 0x800   :  { %v2226_v22 = vmul.f32 %v4134_v2, %v2086_v20 }
 0x801   :  { %v2090_v31 = vmul.f32 0.5, %v2089_v55 }
 0x802   :  { %2256 = vperm.xlu2 %2819, %v2226_v22  }
 0x803   :  { %v2091_v58 = vsub.f32 1.5, %v2090_v31  ;;  %v1862_v38 = vpop.xlane.xlu1 %1861 }
 0x804   :  { %v2907_v42 = vpop.eup %2906 }
 0x805   :  { %v2098_v60 = vmul.f32 %v2907_v42, %v2036_v48  ;;  %v2092_v43 = vmul.f32 %v2905_v21, %v2091_v58  ;;  %vm2104_vm10 = vweird.f32 %v2907_v42  ;;  %v1942_v34 = vpop.xlane.xlu0 %1941 }
 0x806   :  { %vm2105_vm12 = vmor %vm2103_vm11, %vm2104_vm10  ;;  %v1974_v55 = vmul.f32 0.0625, %v1942_v34 }
 0x807   :  { %v2099_v56 = vmul.f32 %v2907_v42, %v2098_v60  ;;  %v2096_v14 = vsel %vm2095_vm9, %v2905_v21, %v2092_v43  ;;  %v4333_v21 = vmul.f32 0.0625, %v1862_v38 }
 0x808   :  { %v2227_v51 = vmul.f32 %v2999_v18, %v2096_v14 }
 0x809   :  { %v2100_v47 = vmul.f32 0.5, %v2099_v56  ;;  %v1990_v6 = vmul.f32 %v4333_v21, %v4333_v21 }
 0x80a   :  { %2261 = vperm.xlu1 %2821, %v2227_v51  }
 0x80b   :  { %v2101_v2 = vsub.f32 1.5, %v2100_v47  ;;  %v1865_v63 = vpop.xlane.xlu1 %1864  ;;  %v2006_v60 = vsub.f32 %v1974_v55, %v1990_v6 }
 0x80c   :  { %v4337_v13 = vmul.f32 0.0625, %v1865_v63  ;;  %v1835_v63 = vpop.f32.mrf.mxu2 }
 0x80d   :  { %v2102_v61 = vmul.f32 %v2907_v42, %v2101_v2  ;;  %v1945_v48 = vpop.xlane.xlu0 %1944  ;;  %v2022_v2 = vmax.f32 %v2006_v60, 0.0 }
 0x80e   :  { %v1991_v20 = vmul.f32 %v4337_v13, %v4337_v13  ;;  %v1975_v31 = vmul.f32 0.0625, %v1945_v48 }
 0x80f   :  { %v2106_v44 = vsel %vm2105_vm12, %v2907_v42, %v2102_v61  ;;  %v4354_v34 = vadd.f32 1e-05, %v2022_v2 }
 0x810   :  { %v2228_v5 = vmul.f32 %v4143_v23, %v2106_v44  ;;  %v2005_v23 = vsub.f32 %v1973_v62, %v1989_v27  ;;  %v2007_v47 = vsub.f32 %v1975_v31, %v1991_v20 }
 0x811   :  { %vm2123_vm4 = vweird.f32 %v4354_v34 }
 0x812   :  { %2266 = vperm.xlu2 %2819, %v2228_v5   ;;  %v2021_v22 = vmax.f32 %v2005_v23, 0.0  ;;  %v2023_v5 = vmax.f32 %v2007_v47, 0.0 }
 0x813   :  { %v1868_v3 = vpop.xlane.xlu2 %1867 }
 0x814   :  { %v4345_v14 = vadd.f32 1e-05, %v2021_v22  ;;  %v4347_v51 = vmul.f32 0.0625, %v1868_v3  ;;  %v4357_v3 = vadd.f32 %v1835_v63, %v4161_v39  ;;  %v4361_v23 = vadd.f32 1e-05, %v2023_v5 }
 0x815   :  { %v1948_v41 = vpop.xlane.xlu1 %1947 }
 0x816   :  { %v1992_v61 = vmul.f32 %v4347_v51, %v4347_v51  ;;  %v1976_v44 = vmul.f32 0.0625, %v1948_v41  ;;  %2908 = vrsqrt.f32 %v4345_v14  ;;  %v1884_v39 = vsel %vm1838_vm0, %v4357_v3, 0.0 }
 0x817   :  { %v1918_v31 = vmul.f32 %v4357_v3, %v4357_v3  ;;  %vm2113_vm13 = vweird.f32 %v4345_v14  ;;  %vm2133_vm6 = vweird.f32 %v4361_v23 }
 0x818   :  { %v2008_v27 = vsub.f32 %v1976_v44, %v1992_v61 }
 0x819   :  { %v1964_v61 = vsel %vm1838_vm0, %v1918_v31, 0.0 }
 0x81a   :  { %v2024_v48 = vmax.f32 %v2008_v27, 0.0 }
 0x81b   :  { %v1871_v50 = vpop.xlane.xlu2 %1870 }
 0x81c   :  { %1962 = vadd.xlane.f32.xlu0 %v1961_v26  ;;  %v4359_v26 = vmul.f32 0.0625, %v1871_v50  ;;  %v4364_v41 = vpop.eup %2908 }
 0x81d   :  { %v1951_v62 = vpop.xlane.xlu0 %1950  ;;  %v2108_v50 = vmul.f32 %v4364_v41, %v4345_v14  ;;  %vm2114_vm14 = vweird.f32 %v4364_v41 }
 0x81e   :  { %v1993_v6 = vmul.f32 %v4359_v26, %v4359_v26  ;;  %v1977_v55 = vmul.f32 0.0625, %v1951_v62  ;;  %vm4420_vm15 = vmor %vm2113_vm13, %vm2114_vm14 }
 0x81f   :  { %v2109_v60 = vmul.f32 %v4364_v41, %v2108_v50 }
 0x820   :  { %v2009_v22 = vsub.f32 %v1977_v55, %v1993_v6 }
 0x821   :  { %v2110_v5 = vmul.f32 0.5, %v2109_v60 }
 0x823   :  { %v1874_v58 = vpop.xlane.xlu1 %1873 }
 0x824   :  { %v4341_v42 = vmul.f32 0.0625, %v1874_v58 }
 0x825   :  { %v1954_v43 = vpop.xlane.xlu2 %1953 }
 0x826   :  { %v1994_v56 = vmul.f32 %v4341_v42, %v4341_v42  ;;  %v1978_v38 = vmul.f32 0.0625, %v1954_v43 }
 0x828   :  { %v2010_v37 = vsub.f32 %v1978_v38, %v1994_v56  ;;  %v3000_v38 = vld [vmem:[%s4715_s3 + $0x38] sm:$0xff] }
 0x82a   :  { %v2026_v36 = vmax.f32 %v2010_v37, 0.0  ;;  %v2025_v37 = vmax.f32 %v2009_v22, 0.0  ;;  %v2111_v22 = vsub.f32 1.5, %v2110_v5 }
 0x82c   :  { %v4352_v15 = vadd.f32 1e-05, %v2026_v36  ;;  %v2112_v8 = vmul.f32 %v4364_v41, %v2111_v22 }
 0x82d   :  { %v1877_v56 = vpop.xlane.xlu2 %1876  ;;  %v1957_v44 = vpop.xlane.xlu0 %1956 }
 0x82e   :  { %2910 = vrsqrt.f32 %v4352_v15  ;;  %v4394_v36 = vmul.f32 0.0625, %v1877_v56  ;;  %v1979_v6 = vmul.f32 0.0625, %v1957_v44  ;;  %v3001_v56 = vld [vmem:[%s4715_s3 + $0x40] sm:$0xff]  ;;  %vm2163_vm2 = vweird.f32 %v4352_v15 }
 0x82f   :  { %2912 = vrsqrt.f32 %v4354_v34 }
 0x830   :  { %2352 = vperm.xlu0 %2822, %v2999_v18   ;;  %2914 = vrsqrt.f32 %v4361_v23  ;;  %v4376_v18 = vadd.f32 1e-05, %v2024_v48  ;;  %v1995_v62 = vmul.f32 %v4394_v36, %v4394_v36  ;;  %v4401_v48 = vadd.f32 1e-05, %v2025_v37 }
 0x832   :  { %2916 = vrsqrt.f32 %v4376_v18  ;;  %v2011_v37 = vsub.f32 %v1979_v6, %v1995_v62  ;;  %vm2143_vm10 = vweird.f32 %v4376_v18  ;;  %vm2153_vm13 = vweird.f32 %v4401_v48 }
 0x833   :  { %2918 = vrsqrt.f32 %v4401_v48 }
 0x834   :  { %1885 = vadd.xlane.f32.xlu1 %v1884_v39  ;;  %v4374_v20 = vpop.eup %2910  ;;  %v1880_v39 = vpop.xlane.xlu1 %1879  ;;  %v2027_v14 = vmax.f32 %v2011_v37, 0.0  ;;  %v2116_v37 = vsel %vm4420_vm15, %v4364_v41, %v2112_v8 }
 0x835   :  { %v4380_v58 = vpop.eup %2912  ;;  %v2158_v43 = vmul.f32 %v4374_v20, %v4352_v15  ;;  %v1960_v44 = vpop.xlane.xlu2 %1959  ;;  %vm2164_vm3 = vweird.f32 %v4374_v20 }
 0x836   :  { %v4388_v47 = vpop.eup %2914  ;;  %v2118_v2 = vmul.f32 %v4380_v58, %v4354_v34  ;;  %vm2124_vm5 = vweird.f32 %v4380_v58  ;;  %vm4439_vm7 = vmor %vm2163_vm2, %vm2164_vm3 }
 0x837   :  { %v2128_v63 = vmul.f32 %v4388_v47, %v4361_v23  ;;  %v2159_v27 = vmul.f32 %v4374_v20, %v2158_v43  ;;  %v4411_v43 = vmul.f32 0.0625, %v1880_v39  ;;  %vm2134_vm1 = vweird.f32 %v4388_v47  ;;  %vm4454_vm8 = vmor %vm2123_vm4, %vm2124_vm5  ;;  %v3004_v23 = vld [vmem:[%s4715_s3 + $0x50] sm:$0xff] }
 0x838   :  { %2360 = vperm.xlu0 %2822, %v3000_v38   ;;  %v2119_v55 = vmul.f32 %v4380_v58, %v2118_v2  ;;  %v4404_v50 = vpop.eup %2916  ;;  %vm4462_vm9 = vmor %vm2133_vm6, %vm2134_vm1 }
 0x839   :  { %v2129_v31 = vmul.f32 %v4388_v47, %v2128_v63  ;;  %v2160_v60 = vmul.f32 0.5, %v2159_v27  ;;  %v1996_v5 = vmul.f32 %v4411_v43, %v4411_v43  ;;  %v1980_v63 = vmul.f32 0.0625, %v1960_v44  ;;  %v2771_v44 = vld [vmem:[%s4714_s2 + $0x40] sm:$0xff] }
 0x83a   :  { %v2120_v2 = vmul.f32 0.5, %v2119_v55  ;;  %v4427_v55 = vpop.eup %2918  ;;  %2478 = vmatpush.bf16.msrb.mxu0 %v2771_v44  ;;  %vm2144_vm11 = vweird.f32 %v4404_v50 }
 0x83b   :  { %1965 = vadd.xlane.f32.xlu2 %v1964_v61  ;;  %v2138_v61 = vmul.f32 %v4404_v50, %v4376_v18  ;;  %v2130_v27 = vmul.f32 0.5, %v2129_v31  ;;  %v2161_v45 = vsub.f32 1.5, %v2160_v60  ;;  %v2012_v31 = vsub.f32 %v1980_v63, %v1996_v5  ;;  %v3002_v60 = vld [vmem:[%s4715_s3 + $0x48] sm:$0xff]  ;;  %vm2145_vm12 = vmor %vm2143_vm10, %vm2144_vm11 }
 0x83c   :  { %v2121_v62 = vsub.f32 1.5, %v2120_v2  ;;  %v2148_v8 = vmul.f32 %v4427_v55, %v4401_v48  ;;  %v2229_v63 = vmul.f32 %v3000_v38, %v2116_v37  ;;  %vm2154_vm14 = vweird.f32 %v4427_v55 }
 0x83d   :  { %v2139_v6 = vmul.f32 %v4404_v50, %v2138_v61  ;;  %v2131_v22 = vsub.f32 1.5, %v2130_v27  ;;  %v2162_v15 = vmul.f32 %v4374_v20, %v2161_v45  ;;  %v4443_v61 = vadd.f32 1e-05, %v2027_v14  ;;  %vm2155_vm15 = vmor %vm2153_vm13, %vm2154_vm14 }
 0x83e   :  { %v2122_v45 = vmul.f32 %v4380_v58, %v2121_v62  ;;  %v2028_v41 = vmax.f32 %v2012_v31, 0.0  ;;  %v2149_v62 = vmul.f32 %v4427_v55, %v2148_v8 }
 0x83f   :  { %v2140_v5 = vmul.f32 0.5, %v2139_v6  ;;  %v2166_v27 = vsel %vm4439_vm7, %v4374_v20, %v2162_v15  ;;  %v2132_v39 = vmul.f32 %v4388_v47, %v2131_v22  ;;  %2920 = vrsqrt.f32 %v4443_v61  ;;  %v4476_v20 = vld [vmem:[%s4715_s3 + $0x60] sm:$0xff] }
 0x840   :  { %2364 = vperm.xlu0 %2822, %v3001_v56   ;;  %v2126_v38 = vsel %vm4454_vm8, %v4380_v58, %v2122_v45  ;;  %v4471_v6 = vadd.f32 1e-05, %v2028_v41  ;;  %v2234_v31 = vmul.f32 %v4476_v20, %v2166_v27  ;;  %v4750_v22 = vmov 4  }
 0x841   :  { %v2141_v34 = vsub.f32 1.5, %v2140_v5  ;;  %v2136_v37 = vsel %vm4462_vm9, %v4388_v47, %v2132_v39  ;;  %v2230_v58 = vmul.f32 %v3001_v56, %v2126_v38  ;;  %v2150_v15 = vmul.f32 0.5, %v2149_v62  ;;  %v4489_v5 = vpop.xlane.xlu2 %1882 }
 0x842   :  { %2922 = vrsqrt.f32 %v4471_v6  ;;  %v2231_v18 = vmul.f32 %v3002_v60, %v2136_v37  ;;  %v4751_v41 = vmov 5   ;;  %v2207_v62 = vsub.f32 %v4164_v16, %v4293_v40  ;;  %v3006_v37 = vld [vmem:[%s4715_s3 + $0x58] sm:$0xff] }
 0x843   :  { %v2142_v2 = vmul.f32 %v4404_v50, %v2141_v34  ;;  %v2151_v8 = vsub.f32 1.5, %v2150_v15  ;;  %v2208_v16 = vsub.f32 %v4172_v28, %v4297_v46  ;;  %vm2173_vm2 = vweird.f32 %v4443_v61 }
 0x844   :  { %v2210_v28 = vsub.f32 %v4188_v25, %v4305_v4  ;;  %vm2183_vm5 = vweird.f32 %v4471_v6  ;;  %v2209_v25 = vsub.f32 %v4180_v53, %v4301_v0 }
 0x845   :  { %v4486_v44 = vpop.eup %2920  ;;  %v2146_v47 = vsel %vm2145_vm12, %v4404_v50, %v2142_v2  ;;  %v2152_v27 = vmul.f32 %v4427_v55, %v2151_v8  ;;  %v3005_v50 = vld [vmem:[%s4715_s3 + $0x68] sm:$0xff]  ;;  %v4520_v2 = vld [vmem:[%s4715_s3 + $0x80] sm:$0xff] }
 0x846   :  { %v2168_v45 = vmul.f32 %v4486_v44, %v4443_v61  ;;  %vm2174_vm3 = vweird.f32 %v4486_v44 }
 0x847   :  { %v2156_v34 = vsel %vm2155_vm15, %v4427_v55, %v2152_v27  ;;  %vm4529_vm4 = vmor %vm2173_vm2, %vm2174_vm3 }
 0x848   :  { %2368 = vperm.xlu0 %2822, %v3002_v60   ;;  %v4496_v56 = vpop.eup %2922  ;;  %v2232_v60 = vmul.f32 %v3004_v23, %v2146_v47 }
 0x849   :  { %v2178_v48 = vmul.f32 %v4496_v56, %v4471_v6  ;;  %v2242_v14 = vpop.permute.xlu2 %2241  ;;  %vm2184_vm6 = vweird.f32 %v4496_v56 }
 0x84a   :  { %vm2185_vm7 = vmor %vm2183_vm5, %vm2184_vm6 }
 0x84b   :  { %v2179_v38 = vmul.f32 %v4496_v56, %v2178_v48 }
 0x84d   :  { %2271 = vperm.xlu1 %2821, %v2229_v63   ;;  %v2169_v63 = vmul.f32 %v4486_v44, %v2168_v45  ;;  %v2180_v40 = vmul.f32 0.5, %v2179_v38 }
 0x84f   :  { %v2170_v39 = vmul.f32 0.5, %v2169_v63  ;;  %v2181_v61 = vsub.f32 1.5, %v2180_v40 }
 0x850   :  { %2824 = vset.pattern.permute.xlu0 %v4750_v22 }
 0x851   :  { %2296 = vperm.xlu0 %2824, %v2234_v31   ;;  %v2319_v31 = vmul.f32 %v2242_v14, %v2207_v62  ;;  %v2171_v15 = vsub.f32 1.5, %v2170_v39 }
 0x853   :  { %2276 = vperm.xlu2 %2819, %v2230_v58   ;;  %v2233_v58 = vmul.f32 %v3006_v37, %v2156_v34  ;;  %v2172_v47 = vmul.f32 %v4486_v44, %v2171_v15 }
 0x855   :  { %2281 = vperm.xlu1 %2821, %v2231_v18   ;;  %v2399_v18 = vadd.f32 %v4262_v57, %v2319_v31  ;;  %v2176_v57 = vsel %vm4529_vm4, %v4486_v44, %v2172_v47 }
 0x856   :  { %v2235_v14 = vmul.f32 %v3005_v50, %v2176_v57 }
 0x859   :  { %2828 = vset.pattern.permute.xlu0 %v4751_v41 }
 0x85a   :  { %2384 = vperm.xlu0 %2828, %v3005_v50  }
 0x85b   :  { %2286 = vperm.xlu2 %2819, %v2232_v60   ;;  %v2415_v60 = vmax.f32 %v2399_v18, 0.0 }
 0x85c   :  { %v2257_v45 = vpop.permute.xlu2 %2256 }
 0x85d   :  { %2823 = vset.pattern.permute.xlu1 %v4751_v41  ;;  %v2322_v63 = vmul.f32 %v2257_v45, %v2210_v28 }
 0x85e   :  { %2372 = vperm.xlu1 %2823, %v3004_v23  }
 0x85f   :  { %v2402_v6 = vadd.f32 %v4276_v30, %v2322_v63  ;;  %v4559_v30 = vmul.f32 0.0625, %v4489_v5 }
 0x861   :  { %v2418_v53 = vmax.f32 %v2402_v6, 0.0 }
 0x862   :  { %2396 = vperm.xlu0 %2828, %v4520_v2  }
 0x863   :  { %2291 = vperm.xlu2 %2819, %v2233_v58  }
 0x864   :  { %v2247_v55 = vpop.permute.xlu0 %2246 }
 0x865   :  { %v2320_v8 = vmul.f32 %v2247_v55, %v2208_v16  ;;  %v2212_v16 = vsub.f32 %v4204_v52, %v4315_v19 }
 0x866   :  { %2376 = vperm.xlu1 %2823, %v3006_v37  }
 0x867   :  { %v2400_v46 = vadd.f32 %v4279_v32, %v2320_v8  ;;  %v2182_v32 = vmul.f32 %v4496_v56, %v2181_v61 }
 0x869   :  { %v2416_v27 = vmax.f32 %v2400_v46, 0.0  ;;  %v2186_v34 = vsel %vm2185_vm7, %v4496_v56, %v2182_v32  ;;  %v1997_v56 = vmul.f32 %v4559_v30, %v4559_v30 }
 0x86b   :  { %v2431_v48 = vpack.c.bf16 %v2416_v27, %v2415_v60  ;;  %2825 = vset.pattern.permute.xlu2 %v4751_v41 }
 0x86c   :  { %v2252_v4 = vpop.permute.xlu1 %2251  ;;  %2380 = vperm.xlu2 %2825, %v4476_v20   ;;  %v3008_v20 = vld [vmem:[%s4715_s3 + $0x70] sm:$0xff]  ;;  %v2267_v15 = vpop.permute.xlu2 %2266 }
 0x86d   :  { %v2321_v39 = vmul.f32 %v2252_v4, %v2209_v25  ;;  %2739 = vmatmul.msk.bf16.vlgmr.msrb.gmra.mxu0 %vm1838_vm0, %v2431_v48  ;;  %v2236_v62 = vmul.f32 %v3008_v20, %v2186_v34  ;;  %v2324_v40 = vmul.f32 %v2267_v15, %v2212_v16  ;;  %v2214_v34 = vsub.f32 %v4220_v9, %v4333_v21 }
 0x86e   :  { %2826 = vset.pattern.permute.xlu1 %v4750_v22 }
 0x86f   :  { %v2401_v44 = vadd.f32 %v4281_v54, %v2321_v39  ;;  %2301 = vperm.xlu1 %2826, %v2235_v14   ;;  %v2404_v8 = vadd.f32 %v4289_v29, %v2324_v40  ;;  %v3009_v29 = vld [vmem:[%s4715_s3 + $0x78] sm:$0xff] }
 0x871   :  { %v2417_v0 = vmax.f32 %v2401_v44, 0.0  ;;  %v2420_v61 = vmax.f32 %v2404_v8, 0.0 }
 0x873   :  { %v2432_v38 = vpack.c.bf16 %v2418_v53, %v2417_v0 }
 0x874   :  { %2827 = vset.pattern.permute.xlu2 %v4750_v22 }
 0x875   :  { %2306 = vperm.xlu2 %2827, %v2236_v62  }
 0x877   :  { %2829 = vset.pattern.permute.xlu1 %v4751_v41 }
 0x878   :  { %2388 = vperm.xlu1 %2829, %v3008_v20  }
 0x87c   :  { %v2262_v18 = vpop.permute.xlu1 %2261 }
 0x87d   :  { %2740 = vmatmul.msk.bf16.gmra.mxu0 %vm1838_vm0, %v2432_v38  ;;  %v2213_v38 = vsub.f32 %v4212_v33, %v4328_v12  ;;  %v2215_v12 = vsub.f32 %v4228_v17, %v4337_v13  ;;  %v2217_v13 = vsub.f32 %v4244_v35, %v4359_v26  ;;  %v2220_v35 = vsub.f32 %v4270_v59, %v4411_v43 }
 0x880   :  { %2830 = vset.pattern.permute.xlu1 %v4750_v22  ;;  %v2211_v22 = vsub.f32 %v4196_v1, %v4310_v7 }
 0x882   :  { %v2323_v45 = vmul.f32 %v2262_v18, %v2211_v22 }
 0x88f   :  { %v1963_v54 = vpop.xlane.xlu0 %1962 }
 0x890   :  { %v1981_v50 = vmul.f32 0.0625, %v1963_v54 }
 0x892   :  { %v2013_v31 = vsub.f32 %v1981_v50, %v1997_v56 }
 0x894   :  { %v2029_v37 = vmax.f32 %v2013_v31, 0.0 }
 0x896   :  { %v2045_v58 = vadd.f32 1e-05, %v2029_v37 }
 0x898   :  { %2924 = vrsqrt.f32 %v2045_v58  ;;  %vm2193_vm8 = vweird.f32 %v2045_v58 }
 0x89e   :  { %v2925_v55 = vpop.eup %2924 }
 0x89f   :  { %v2188_v5 = vmul.f32 %v2925_v55, %v2045_v58  ;;  %vm2194_vm1 = vweird.f32 %v2925_v55 }
 0x8a0   :  { %vm2195_vm9 = vmor %vm2193_vm8, %vm2194_vm1 }
 0x8a1   :  { %v2189_v47 = vmul.f32 %v2925_v55, %v2188_v5 }
 0x8a2   :  { %v2353_v23 = vpop.permute.xlu0 %2352 }
 0x8a3   :  { %v2190_v28 = vmul.f32 0.5, %v2189_v47  ;;  %v2403_v46 = vadd.f32 %v2353_v23, %v2323_v45  ;;  %v2216_v45 = vsub.f32 %v4236_v11, %v4347_v51 }
 0x8a5   :  { %v2191_v60 = vsub.f32 1.5, %v2190_v28  ;;  %v2419_v63 = vmax.f32 %v2403_v46, 0.0 }
 0x8a7   :  { %v2433_v52 = vpack.c.bf16 %v2420_v61, %v2419_v63  ;;  %v2192_v19 = vmul.f32 %v2925_v55, %v2191_v60  ;;  %v1886_v27 = vpop.xlane.xlu1 %1885  ;;  %v2218_v60 = vsub.f32 %v4252_v24, %v4341_v42  ;;  %v2219_v24 = vsub.f32 %v4260_v49, %v4394_v36 }
 0x8a8   :  { %v4572_v57 = vmul.f32 0.0625, %v1886_v27 }
 0x8a9   :  { %2741 = vmatmul.msk.bf16.gmra.mxu0 %vm1838_vm0, %v2433_v52  ;;  %v2196_v1 = vsel %vm2195_vm9, %v2925_v55, %v2192_v19 }
 0x8aa   :  { %v2237_v7 = vmul.f32 %v3009_v29, %v2196_v1  ;;  %v1998_v25 = vmul.f32 %v4572_v57, %v4572_v57  ;;  %v2361_v39 = vpop.permute.xlu0 %2360 }
 0x8ac   :  { %2311 = vperm.xlu2 %2827, %v2237_v7  }
 0x8ae   :  { %v1966_v48 = vpop.xlane.xlu2 %1965 }
 0x8af   :  { %v1982_v4 = vmul.f32 0.0625, %v1966_v48 }
 0x8b1   :  { %v2014_v32 = vsub.f32 %v1982_v4, %v1998_v25 }
 0x8b2   :  { %v2365_v62 = vpop.permute.xlu0 %2364 }
 0x8b3   :  { %v2030_v6 = vmax.f32 %v2014_v32, 0.0 }
 0x8b4   :  { %2831 = vset.pattern.permute.xlu2 %v4751_v41 }
 0x8b5   :  { %v2046_v14 = vadd.f32 1e-05, %v2030_v6  ;;  %2392 = vperm.xlu2 %2831, %v3009_v29  }
 0x8b6   :  { %v2277_v44 = vpop.permute.xlu2 %2276 }
 0x8b7   :  { %2926 = vrsqrt.f32 %v2046_v14  ;;  %v2326_v53 = vmul.f32 %v2277_v44, %v2214_v34  ;;  %vm2203_vm11 = vweird.f32 %v2046_v14 }
 0x8b9   :  { %v2406_v50 = vadd.f32 %v2365_v62, %v2326_v53 }
 0x8ba   :  { %v2369_v18 = vpop.permute.xlu0 %2368 }
 0x8bb   :  { %v2422_v16 = vmax.f32 %v2406_v50, 0.0  ;;  %v2221_v50 = vsub.f32 %v4284_v10, %v4559_v30 }
 0x8bd   :  { %v2927_v0 = vpop.eup %2926 }
 0x8be   :  { %v2198_v20 = vmul.f32 %v2927_v0, %v2046_v14  ;;  %v2287_v31 = vpop.permute.xlu2 %2286  ;;  %vm2204_vm10 = vweird.f32 %v2927_v0 }
 0x8bf   :  { %v2272_v54 = vpop.permute.xlu1 %2271  ;;  %vm2205_vm12 = vmor %vm2203_vm11, %vm2204_vm10  ;;  %v2328_v47 = vmul.f32 %v2287_v31, %v2216_v45 }
 0x8c0   :  { %v2199_v56 = vmul.f32 %v2927_v0, %v2198_v20  ;;  %v2325_v37 = vmul.f32 %v2272_v54, %v2213_v38 }
 0x8c2   :  { %v2200_v41 = vmul.f32 0.5, %v2199_v56  ;;  %v2405_v58 = vadd.f32 %v2361_v39, %v2325_v37 }
 0x8c3   :  { %v2297_v61 = vpop.permute.xlu0 %2296 }
 0x8c4   :  { %v2201_v15 = vsub.f32 1.5, %v2200_v41  ;;  %v2421_v40 = vmax.f32 %v2405_v58, 0.0  ;;  %v2330_v17 = vmul.f32 %v2297_v61, %v2218_v60  ;;  %v2222_v41 = vsub.f32 %v4357_v3, %v4572_v57  ;;  %v3010_v60 = vld [vmem:[%s4713_s1] sm:$0xff] }
 0x8c6   :  { %v2434_v9 = vpack.c.bf16 %v2422_v16, %v2421_v40  ;;  %v2202_v21 = vmul.f32 %v2927_v0, %v2201_v15  ;;  %v2292_v5 = vpop.permute.xlu2 %2291 }
 0x8c7   :  { %v2282_v55 = vpop.permute.xlu1 %2281  ;;  %v2329_v27 = vmul.f32 %v2292_v5, %v2217_v13  ;;  %v3015_v13 = vld [vmem:[%s4713_s1 + $0x28] sm:$0xff] }
 0x8c8   :  { %2742 = vmatmul.msk.bf16.gmra.mxu0 %vm1838_vm0, %v2434_v9  ;;  %v2206_v33 = vsel %vm2205_vm12, %v2927_v0, %v2202_v21  ;;  %v2327_v8 = vmul.f32 %v2282_v55, %v2215_v12 }
 0x8c9   :  { %v2238_v22 = vmul.f32 %v4520_v2, %v2206_v33 }
 0x8ca   :  { %v2407_v23 = vadd.f32 %v2369_v18, %v2327_v8 }
 0x8cb   :  { %2316 = vperm.xlu1 %2830, %v2238_v22  }
 0x8cc   :  { %v2423_v63 = vmax.f32 %v2407_v23, 0.0  ;;  %v2385_v32 = vpop.permute.xlu0 %2384 }
 0x8ce   :  { %v2381_v19 = vpop.permute.xlu2 %2380 }
 0x8cf   :  { %v2410_v1 = vadd.f32 %v2381_v19, %v2330_v17  ;;  %v3013_v19 = vld [vmem:[%s4713_s1 + $0x18] sm:$0xff]  ;;  %v3014_v17 = vld [vmem:[%s4713_s1 + $0x20] sm:$0xff] }
 0x8d0   :  { %v2373_v28 = vpop.permute.xlu1 %2372 }
 0x8d1   :  { %v2408_v46 = vadd.f32 %v2373_v28, %v2328_v47  ;;  %v2426_v51 = vmax.f32 %v2410_v1, 0.0  ;;  %v3018_v1 = vld [vmem:[%s4715_s3] sm:$0xff] }
 0x8d3   :  { %v2424_v52 = vmax.f32 %v2408_v46, 0.0 }
 0x8d4   :  { %v2397_v40 = vpop.permute.xlu0 %2396 }
 0x8d5   :  { %v2435_v2 = vpack.c.bf16 %v2424_v52, %v2423_v63  ;;  %v3011_v63 = vld [vmem:[%s4713_s1 + $0x8] sm:$0xff]  ;;  %v3012_v52 = vld [vmem:[%s4713_s1 + $0x10] sm:$0xff] }
 0x8d6   :  { %v2307_v4 = vpop.permute.xlu2 %2306 }
 0x8d7   :  { %v2332_v26 = vmul.f32 %v2307_v4, %v2220_v35 }
 0x8d8   :  { %v2377_v29 = vpop.permute.xlu1 %2376  ;;  %2743 = vmatmul.msk.bf16.gmra.mxu0 %vm1838_vm0, %v2435_v2  ;;  %v3016_v2 = vld [vmem:[%s4713_s1 + $0x30] sm:$0xff] }
 0x8d9   :  { %v2409_v11 = vadd.f32 %v2377_v29, %v2329_v27  ;;  %v3017_v27 = vld [vmem:[%s4713_s1 + $0x38] sm:$0xff]  ;;  %v4630_v29 = vperm.slane %v3018_v1, 3 }
 0x8db   :  { %v2425_v7 = vmax.f32 %v2409_v11, 0.0 }
 0x8dd   :  { %v2436_v48 = vpack.c.bf16 %v2426_v51, %v2425_v7 }
 0x8e1   :  { %v2302_v25 = vpop.permute.xlu1 %2301 }
 0x8e2   :  { %v2331_v42 = vmul.f32 %v2302_v25, %v2219_v24 }
 0x8e4   :  { %v2411_v6 = vadd.f32 %v2385_v32, %v2331_v42 }
 0x8e6   :  { %v2427_v34 = vmax.f32 %v2411_v6, 0.0 }
 0x8e8   :  { %2744 = vmatmul.msk.bf16.gmra.mxu0 %vm1838_vm0, %v2436_v48 }
 0x8ea   :  { %v2389_v39 = vpop.permute.xlu1 %2388  ;;  %v2480_v14 = vpop.f32.mrf.mxu0 }
 0x8eb   :  { %v2412_v44 = vadd.f32 %v2389_v39, %v2332_v26 }
 0x8ed   :  { %v2428_v53 = vmax.f32 %v2412_v44, 0.0 }
 0x8ef   :  { %v2437_v0 = vpack.c.bf16 %v2428_v53, %v2427_v34 }
 0x8f2   :  { %v2482_v20 = vpop.f32.mrf.mxu0 }
 0x8f3   :  { %v2520_v62 = vpack.c.bf16 %v2482_v20, %v2480_v14 }
 0x8f8   :  { %2745 = vmatmul.msk.bf16.gmra.mxu0 %vm1838_vm0, %v2437_v0 }
 0x8fa   :  { %v2485_v49 = vpop.f32.mrf.mxu0 }
 0x902   :  { %v2487_v36 = vpop.f32.mrf.mxu0 }
 0x903   :  { %v2521_v38 = vpack.c.bf16 %v2487_v36, %v2485_v49 }
 0x906   :  { %v2312_v43 = vpop.permute.xlu2 %2311 }
 0x907   :  { %v2333_v37 = vmul.f32 %v2312_v43, %v2221_v50 }
 0x90f   :  { %v2393_v31 = vpop.permute.xlu2 %2392 }
 0x910   :  { %v2413_v15 = vadd.f32 %v2393_v31, %v2333_v37 }
 0x912   :  { %v2429_v21 = vmax.f32 %v2413_v15, 0.0 }
 0x926   :  { %v2490_v54 = vpop.f32.mrf.mxu0 }
 0x92e   :  { %v2492_v56 = vpop.f32.mrf.mxu0 }
 0x92f   :  { %v2522_v59 = vpack.c.bf16 %v2492_v56, %v2490_v54 }
 0x93d   :  { %v2317_v58 = vpop.permute.xlu1 %2316 }
 0x93e   :  { %v2334_v16 = vmul.f32 %v2317_v58, %v2222_v41 }
 0x940   :  { %v2414_v9 = vadd.f32 %v2397_v40, %v2334_v16 }
 0x942   :  { %v2430_v55 = vmax.f32 %v2414_v9, 0.0 }
 0x944   :  { %v2438_v18 = vpack.c.bf16 %v2430_v55, %v2429_v21 }
 0x945   :  { %v2495_v33 = vpop.f32.mrf.mxu0 }
 0x946   :  { %2746 = vmatmul.msk.bf16.gmra.mxu0 %vm1838_vm0, %v2438_v18  ;;  %vm2594_vm0 = vcmask 64512  }
 0x94d   :  { %v2497_v12 = vpop.f32.mrf.mxu0 }
 0x94e   :  { %v2523_v22 = vpack.c.bf16 %v2497_v12, %v2495_v33 }
 0x955   :  { %v2500_v5 = vpop.f32.mrf.mxu0 }
 0x95d   :  { %v2502_v10 = vpop.f32.mrf.mxu0 }
 0x95e   :  { %v2524_v61 = vpack.c.bf16 %v2502_v10, %v2500_v5 }
 0x965   :  { %v2505_v30 = vpop.f32.mrf.mxu0 }
 0x96d   :  { %v2507_v8 = vpop.f32.mrf.mxu0 }
 0x96e   :  { %v2525_v46 = vpack.c.bf16 %v2507_v8, %v2505_v30 }
 0x975   :  { %v2510_v45 = vpop.f32.mrf.mxu0 }
 0x97d   :  { %v2512_v47 = vpop.f32.mrf.mxu0 }
 0x97e   :  { %v2526_v28 = vpack.c.bf16 %v2512_v47, %v2510_v45 }
 0x9c3   :  { %v2515_v3 = vpop.f32.mrf.mxu0 }
 0x9cb   :  { %v2517_v57 = vpop.f32.mrf.mxu0 }
 0x9cc   :  { %v2527_v23 = vpack.c.bf16 %v2517_v57, %v2515_v3 }
 0x9ce   :  { %2529 = vmatpush.bf16.msrb.mxu3 %v2527_v23 }
 0x9d2   :  { %2530 = vmatpush.bf16.msrb.mxu3 %v2526_v28 }
 0x9d6   :  { %2531 = vmatpush.bf16.msrb.mxu3 %v2525_v46 }
 0x9da   :  { %2532 = vmatpush.bf16.msrb.mxu3 %v2524_v61 }
 0x9de   :  { %2533 = vmatpush.bf16.msrb.mxu3 %v2523_v22 }
 0x9e2   :  { %2534 = vmatpush.bf16.msrb.mxu3 %v2522_v59 }
 0x9e6   :  { %2535 = vmatpush.bf16.msrb.mxu3 %v2521_v38 }
 0x9ea   :  { %2536 = vmatpush.bf16.msrb.mxu3 %v2520_v62 }
 0x9ed   :  { %2537 = vmatmul.bf16.vlgmr.msrb.gmra.mxu3 %v3010_v60 }
 0x9fd   :  { %2542 = vmatmul.bf16.gmra.mxu3 %v3011_v63 }
 0xa0d   :  { %2547 = vmatmul.bf16.gmra.mxu3 %v3012_v52 }
 0xa1d   :  { %2552 = vmatmul.bf16.gmra.mxu3 %v3013_v19 }
 0xa2d   :  { %2557 = vmatmul.bf16.gmra.mxu3 %v3014_v17 }
 0xa3d   :  { %2562 = vmatmul.bf16.gmra.mxu3 %v3015_v13 }
 0xa4d   :  { %2567 = vmatmul.bf16.gmra.mxu3 %v3016_v2 }
 0xa5d   :  { %2572 = vmatmul.bf16.gmra.mxu3 %v3017_v27 }
 0xa70   :  { %v2538_v11 = vpop.f32.mrf.mxu3 }
 0xa71   :  { %v2539_v51 = vadd.f32 %v2538_v11, %v4630_v29 }
 0xa73   :  { %2928 = vtanh.f32 %v2539_v51 }
 0xa78   :  { %v2540_v7 = vpop.f32.mrf.mxu3 }
 0xa79   :  { %v2929_v48 = vpop.eup %2928  ;;  %v2541_v25 = vadd.f32 %v2540_v7, %v4630_v29 }
 0xa7a   :  { %2595 = vst.msk [vmem:[%s4716_s4] sm:$0xff] %vm2594_vm0, %v2929_v48 }
 0xa7b   :  { %2930 = vtanh.f32 %v2541_v25 }
 0xa80   :  { %v2543_v24 = vpop.f32.mrf.mxu3 }
 0xa81   :  { %v2931_v42 = vpop.eup %2930  ;;  %v2544_v4 = vadd.f32 %v2543_v24, %v4630_v29 }
 0xa82   :  { %2596 = vst.msk [vmem:[%s4716_s4 + $0x8] sm:$0xff] %vm2594_vm0, %v2931_v42 }
 0xa83   :  { %2932 = vtanh.f32 %v2544_v4 }
 0xa88   :  { %v2545_v32 = vpop.f32.mrf.mxu3 }
 0xa89   :  { %v2933_v35 = vpop.eup %2932  ;;  %v2546_v26 = vadd.f32 %v2545_v32, %v4630_v29 }
 0xa8a   :  { %2597 = vst.msk [vmem:[%s4716_s4 + $0x10] sm:$0xff] %vm2594_vm0, %v2933_v35 }
 0xa8b   :  { %2934 = vtanh.f32 %v2546_v26 }
 0xa90   :  { %v2548_v6 = vpop.f32.mrf.mxu3 }
 0xa91   :  { %v2935_v39 = vpop.eup %2934  ;;  %v2549_v14 = vadd.f32 %v2548_v6, %v4630_v29 }
 0xa92   :  { %2598 = vst.msk [vmem:[%s4716_s4 + $0x18] sm:$0xff] %vm2594_vm0, %v2935_v39 }
 0xa93   :  { %2936 = vtanh.f32 %v2549_v14 }
 0xa98   :  { %v2550_v44 = vpop.f32.mrf.mxu3 }
 0xa99   :  { %v2937_v34 = vpop.eup %2936  ;;  %v2551_v53 = vadd.f32 %v2550_v44, %v4630_v29 }
 0xa9a   :  { %2599 = vst.msk [vmem:[%s4716_s4 + $0x20] sm:$0xff] %vm2594_vm0, %v2937_v34 }
 0xa9b   :  { %2938 = vtanh.f32 %v2551_v53 }
 0xaa0   :  { %v2553_v0 = vpop.f32.mrf.mxu3 }
 0xaa1   :  { %v2939_v20 = vpop.eup %2938  ;;  %v2554_v62 = vadd.f32 %v2553_v0, %v4630_v29 }
 0xaa2   :  { %2600 = vst.msk [vmem:[%s4716_s4 + $0x28] sm:$0xff] %vm2594_vm0, %v2939_v20 }
 0xaa3   :  { %2940 = vtanh.f32 %v2554_v62 }
 0xaa8   :  { %v2555_v49 = vpop.f32.mrf.mxu3 }
 0xaa9   :  { %v2941_v36 = vpop.eup %2940  ;;  %v2556_v38 = vadd.f32 %v2555_v49, %v4630_v29 }
 0xaaa   :  { %2601 = vst.msk [vmem:[%s4716_s4 + $0x30] sm:$0xff] %vm2594_vm0, %v2941_v36 }
 0xaab   :  { %2942 = vtanh.f32 %v2556_v38 }
 0xab0   :  { %v2558_v54 = vpop.f32.mrf.mxu3 }
 0xab1   :  { %v2943_v56 = vpop.eup %2942  ;;  %v2559_v59 = vadd.f32 %v2558_v54, %v4630_v29 }
 0xab2   :  { %2602 = vst.msk [vmem:[%s4716_s4 + $0x38] sm:$0xff] %vm2594_vm0, %v2943_v56 }
 0xab3   :  { %2944 = vtanh.f32 %v2559_v59 }
 0xab8   :  { %v2560_v43 = vpop.f32.mrf.mxu3 }
 0xab9   :  { %v2945_v50 = vpop.eup %2944  ;;  %v2561_v31 = vadd.f32 %v2560_v43, %v4630_v29 }
 0xaba   :  { %2603 = vst.msk [vmem:[%s4716_s4 + $0x40] sm:$0xff] %vm2594_vm0, %v2945_v50 }
 0xabb   :  { %2946 = vtanh.f32 %v2561_v31 }
 0xac0   :  { %v2563_v37 = vpop.f32.mrf.mxu3 }
 0xac1   :  { %v2947_v41 = vpop.eup %2946  ;;  %v2564_v58 = vadd.f32 %v2563_v37, %v4630_v29 }
 0xac2   :  { %2604 = vst.msk [vmem:[%s4716_s4 + $0x48] sm:$0xff] %vm2594_vm0, %v2947_v41 }
 0xac3   :  { %2948 = vtanh.f32 %v2564_v58 }
 0xac8   :  { %v2565_v15 = vpop.f32.mrf.mxu3 }
 0xac9   :  { %v2949_v16 = vpop.eup %2948  ;;  %v2566_v40 = vadd.f32 %v2565_v15, %v4630_v29 }
 0xaca   :  { %2605 = vst.msk [vmem:[%s4716_s4 + $0x50] sm:$0xff] %vm2594_vm0, %v2949_v16 }
 0xacb   :  { %2950 = vtanh.f32 %v2566_v40 }
 0xad0   :  { %v2568_v9 = vpop.f32.mrf.mxu3 }
 0xad1   :  { %v2951_v21 = vpop.eup %2950  ;;  %v2569_v55 = vadd.f32 %v2568_v9, %v4630_v29 }
 0xad2   :  { %2606 = vst.msk [vmem:[%s4716_s4 + $0x58] sm:$0xff] %vm2594_vm0, %v2951_v21 }
 0xad3   :  { %2952 = vtanh.f32 %v2569_v55 }
 0xad8   :  { %v2570_v18 = vpop.f32.mrf.mxu3 }
 0xad9   :  { %v2953_v33 = vpop.eup %2952  ;;  %v2571_v12 = vadd.f32 %v2570_v18, %v4630_v29 }
 0xada   :  { %2607 = vst.msk [vmem:[%s4716_s4 + $0x60] sm:$0xff] %vm2594_vm0, %v2953_v33 }
 0xadb   :  { %2954 = vtanh.f32 %v2571_v12 }
 0xae0   :  { %v2573_v22 = vpop.f32.mrf.mxu3 }
 0xae1   :  { %v2955_v5 = vpop.eup %2954  ;;  %v2574_v10 = vadd.f32 %v2573_v22, %v4630_v29 }
 0xae2   :  { %2608 = vst.msk [vmem:[%s4716_s4 + $0x68] sm:$0xff] %vm2594_vm0, %v2955_v5 }
 0xae3   :  { %2956 = vtanh.f32 %v2574_v10 }
 0xae8   :  { %v2575_v30 = vpop.f32.mrf.mxu3 }
 0xae9   :  { %v2957_v8 = vpop.eup %2956  ;;  %v2576_v45 = vadd.f32 %v2575_v30, %v4630_v29 }
 0xaea   :  { %2609 = vst.msk [vmem:[%s4716_s4 + $0x70] sm:$0xff] %vm2594_vm0, %v2957_v8 }
 0xaeb   :  { %2958 = vtanh.f32 %v2576_v45 }
 0xaf1   :  { %v2959_v47 = vpop.eup %2958 }
 0xaf2   :  { %2610 = vst.msk [vmem:[%s4716_s4 + $0x78] sm:$0xff] %vm2594_vm0, %v2959_v47 }

</bundles_post_ra>
